<compile_context>
chip_gen: v6e
topology: v6e:2x2x1
jax: 0.10.0
libtpu: 0.0.40
codegen_flags: <defaults>
</compile_context>

<pallas_src>
import math

import jax
import jax.numpy as jnp
from jax.experimental import pallas as pl
from jax.experimental.pallas import tpu as pltpu

D_MODEL = 32
HEADS = 4
SEQ = 32          # must equal D_MODEL (see NOTE above)
BATCH = 2
EPS = 1e-5        # PyTorch LayerNorm default


def _round_up(n, m):
    return ((n + m - 1) // m) * m


# ----------------------------------------------------------------------------
# Parameter / constant packing (plain JAX, once per call): pre-transpose, fold
# affine scales, precompute structural 0/1 matrices, pack into two slabs:
#   wpack (bf16): every MXU matmul operand
#   fpack (f32) : every VPU-path constant (biases, LN affines, masks, bias matrix)
# ----------------------------------------------------------------------------
def pack_params(params, S, B, D, H):
    (ln1w, ln1b, w1a, b1a, w1b, b1b,
     inw, inb, outw, outb,
     clnw, clnb, dww, dwb, pww, pwb,
     ln2w, ln2b, w2a, b2a, w2b, b2b,
     flnw, flnb) = params
    hd = D // H
    N = B * S                      # flattened (batch, time) rows
    R = B * H * S                  # packed attention rows (batch, head, time)
    f32 = jnp.float32

    # fold the 1/sqrt(head_dim) query scale into the in-projection
    scale = 1.0 / math.sqrt(hd)
    inw_s = inw.at[:D, :].multiply(scale)            # (3D, D)
    inb_s = inb.at[:, :D].multiply(scale)            # (1, 3D)

    # fold the FFN pre-LayerNorm affine into the first FFN matmul
    w1a_f = ln1w.reshape(D, 1) * w1a.T               # (D, 4D)
    b1a_f = b1a + ln1b.reshape(1, D) @ w1a.T         # (1, 4D)
    w2a_f = ln2w.reshape(D, 1) * w2a.T
    b2a_f = b2a + ln2b.reshape(1, D) @ w2a.T

    # --- static structural matrices (built here, never in-kernel) ---
    r_idx = jnp.arange(R)
    r_b, r_h, r_t = r_idx // (H * S), (r_idx // S) % H, r_idx % S
    c_idx = jnp.arange(N)
    c_b, c_t = c_idx // S, c_idx % S
    # query replication: packed row (b,h,t) <- q row (b,t)
    p_qexp = ((r_b[:, None] == c_b[None, :]) &
              (r_t[:, None] == c_t[None, :])).astype(f32)                 # (R, N)
    p_sel = p_qexp.T                                                      # (N, R)
    # head mask over the feature axis
    m_head = (jnp.arange(D)[None, :] // hd == r_h[:, None]).astype(f32)   # (R, D)
    # additive score bias: cross-batch keys -> -1e9 (vanish in the softmax)
    bias_mask = jnp.where(r_b[:, None] == c_b[None, :], 0.0, -1e9).astype(f32)  # (R, N)
    # conv module: block-diagonal time-average and k=3 shift matrices
    same_b = c_b[:, None] == c_b[None, :]
    avg = same_b.astype(f32) / S                                          # (N, N)
    sh_prev = (same_b & (c_idx[None, :] == c_idx[:, None] - 1)).astype(f32)
    sh_next = (same_b & (c_idx[None, :] == c_idx[:, None] + 1)).astype(f32)

    # --- bf16 MXU-operand pack (weights pre-transposed to (in, out)) ---
    w_blocks = [
        ('w1a', w1a_f), ('w1b', w1b.T),              # FFN1 (LN affine folded)
        ('win', inw_s.T), ('wout', outw.T),          # MHA projections
        ('wpw', pww.T),                              # pointwise conv
        ('w2a', w2a_f), ('w2b', w2b.T),              # FFN2 (LN affine folded)
        ('pqx', p_qexp), ('psel', p_sel),            # attention packing
        ('avg', avg), ('shp', sh_prev), ('shn', sh_next),   # conv structure
    ]
    LW = _round_up(max(m.shape[1] for _, m in w_blocks), 128)
    wofs, blocks, r = {}, [], 0
    for name, m in w_blocks:
        h, w = m.shape
        wofs[name] = (r, h, w)
        blocks.append(jnp.pad(m.astype(jnp.bfloat16), ((0, 0), (0, LW - w))))
        r += h
    wpack = jnp.concatenate(blocks, axis=0)
    pad = (-wpack.shape[0]) % 16
    if pad:
        wpack = jnp.pad(wpack, ((0, pad), (0, 0)))

    # --- f32 pack: VPU-path 2-D constants first (8-row aligned), then 1-row vectors ---
    f_blocks = [
        ('clnw', jnp.tile(jnp.broadcast_to(clnw.reshape(S, 1), (S, D)), (B, 1))),  # (N, D)
        ('clnb', jnp.tile(jnp.broadcast_to(clnb.reshape(S, 1), (S, D)), (B, 1))),
        ('mhead', m_head),                # (R, D)
        ('bmask', bias_mask),             # (R, N)
    ]
    vecs = [
        ('b1a', b1a_f), ('b1b', b1b),
        ('bin', inb_s), ('bout', outb),
        ('dw0', dww[0:1]), ('dw1', dww[1:2]), ('dw2', dww[2:3]), ('dwb', dwb),
        ('pwb', pwb),
        ('b2a', b2a_f), ('b2b', b2b),
        ('flnw', flnw), ('flnb', flnb),
    ]
    FW = _round_up(max([m.shape[1] for _, m in f_blocks] +
                       [v.reshape(1, -1).shape[1] for _, v in vecs]), 128)
    fofs, fblk, r = {}, [], 0
    for name, m in f_blocks:
        h, w = m.shape
        fofs[name] = (r, h, w)
        fblk.append(jnp.pad(m.astype(f32), ((0, 0), (0, FW - w))))
        r += h
    for name, v in vecs:
        v2 = v.reshape(1, -1).astype(f32)
        fofs[name] = (r, 1, v2.shape[1])
        fblk.append(jnp.pad(v2, ((0, 0), (0, FW - v2.shape[1]))))
        r += 1
    fpack = jnp.concatenate(fblk, axis=0)
    pad = (-fpack.shape[0]) % 8
    if pad:
        fpack = jnp.pad(fpack, ((0, pad), (0, 0)))
    return wpack, fpack, wofs, fofs


# ----------------------------------------------------------------------------
# Kernel builder: single grid step over the whole flattened (B*S, D) problem.
# ----------------------------------------------------------------------------
def _build_kernel(N, S, D, wofs, fofs):
    nb = N // S                                   # batch elements in this call

    def kernel(x_ref, wp_ref, fp_ref, o_ref):
        bf16, f32 = jnp.bfloat16, jnp.float32

        def W(name):                              # bf16 matmul-operand block
            r, h, w = wofs[name]
            return wp_ref[r:r + h, 0:w]

        def F(name):                              # f32 constant / bias row
            r, h, w = fofs[name]
            return fp_ref[r:r + h, 0:w]

        def mmx(a, b):                            # single-pass bf16 MXU, f32 accum
            return jnp.dot(a.astype(bf16), b.astype(bf16),
                           preferred_element_type=f32)

        def ffn(v, wa, ba, wb, bb):               # pre-LN affine folded into wa/ba
            m = jnp.mean(v, axis=-1, keepdims=True)
            var = jnp.mean((v - m) ** 2, axis=-1, keepdims=True)
            nrm = (v - m) * jax.lax.rsqrt(var + EPS)
            h = jnp.maximum(mmx(nrm, wa) + ba, 0.0)
            return mmx(h, wb) + bb

        x = x_ref[...].astype(f32)                # (N, D) residual stream (f32)

        # ----- FFN1 (half residual) -----
        x = x + 0.5 * ffn(x, W('w1a'), F('b1a'), W('w1b'), F('b1b'))

        # ----- Multi-head self-attention, batch+head packed -----
        qkv = mmx(x, W('win')) + F('bin')         # (N, 3D), q pre-scaled
        q, k, v = qkv[:, :D], qkv[:, D:2 * D], qkv[:, 2 * D:]
        # packed rows index (batch, head, time); columns index (batch, time)
        q_bd = mmx(W('pqx'), q) * F('mhead')      # (R, D) head-masked queries
        k_t = jnp.concatenate([k[b * S:(b + 1) * S, :].T for b in range(nb)],
                              axis=1)             # (D, N)
        s = mmx(q_bd, k_t) + F('bmask')           # (R, N); cross-batch keys -> -1e9
        s = s - jnp.max(s, axis=-1, keepdims=True)
        e = jnp.exp(s)
        attn = e * pl.reciprocal(jnp.sum(e, axis=-1, keepdims=True), approx=True)
        ctxh = mmx(attn, v) * F('mhead')          # (R, D) per-head context
        ctx = mmx(W('psel'), ctxh)                # (N, D) heads re-assembled
        x = x + mmx(ctx, W('wout')) + F('bout')   # dropout = identity

        # ----- Conv module (block-diagonal over batch, no Python loop) -----
        mean = mmx(W('avg'), x)                   # per-(batch, channel) time mean
        meansq = mmx(W('avg'), x * x)
        var = jnp.maximum(meansq - mean * mean, 0.0)
        y = (x - mean) * jax.lax.rsqrt(var + EPS) * F('clnw') + F('clnb')
        # depthwise conv1d (k=3, pad=1, groups=D) along time via shift matmuls
        y = (F('dw0') * mmx(W('shp'), y) + F('dw1') * y +
             F('dw2') * mmx(W('shn'), y) + F('dwb'))
        y = jnp.maximum(y, 0.0)
        y = mmx(y, W('wpw')) + F('pwb')           # pointwise conv (k=1)
        x = x + y                                 # dropout = identity

        # ----- FFN2 (half residual) -----
        x = x + 0.5 * ffn(x, W('w2a'), F('b2a'), W('w2b'), F('b2b'))

        # ----- Final LayerNorm -----
        m = jnp.mean(x, axis=-1, keepdims=True)
        var = jnp.mean((x - m) ** 2, axis=-1, keepdims=True)
        x = (x - m) * jax.lax.rsqrt(var + EPS) * F('flnw') + F('flnb')
        o_ref[...] = x.astype(o_ref.dtype)

    return kernel


# ----------------------------------------------------------------------------
# Wrapper
# ----------------------------------------------------------------------------
def conformer_block(x_sbd, params, heads=HEADS):
    S, B, D = x_sbd.shape
    assert S == D, "ConformerBlock conv module requires seq_len == d_model"
    assert D % heads == 0
    N = B * S

    wpack, fpack, wofs, fofs = pack_params(params, S, B, D, heads)
    x_flat = jnp.transpose(x_sbd, (1, 0, 2)).reshape(N, D)       # (B*S, D)
    kernel = _build_kernel(N, S, D, wofs, fofs)

    out = pl.pallas_call(
        kernel,
        out_shape=jax.ShapeDtypeStruct((N, D), x_sbd.dtype),
        grid=(1,),
        in_specs=[
            pl.BlockSpec((N, D), lambda i: (0, 0)),
            pl.BlockSpec(wpack.shape, lambda i: (0, 0)),
            pl.BlockSpec(fpack.shape, lambda i: (0, 0)),
        ],
        out_specs=pl.BlockSpec((N, D), lambda i: (0, 0)),
        compiler_params=pltpu.CompilerParams(dimension_semantics=("arbitrary",)),
    )(x_flat, wpack, fpack)
    return jnp.transpose(out.reshape(B, S, D), (1, 0, 2))        # back to (S, B, D)


# ----------------------------------------------------------------------------
# Pure-JAX reference (mirrors PyTorch forward semantics) for a sanity check
# ----------------------------------------------------------------------------
def reference(x, p):
    (ln1w, ln1b, w1a, b1a, w1b, b1b,
     inw, inb, outw, outb,
     clnw, clnb, dww, dwb, pww, pwb,
     ln2w, ln2b, w2a, b2a, w2b, b2b,
     flnw, flnb) = p
    S, B, D = x.shape
    H, hd = HEADS, D // HEADS

    def ln(v, w, b):
        m = v.mean(-1, keepdims=True)
        var = ((v - m) ** 2).mean(-1, keepdims=True)
        return (v - m) / jnp.sqrt(var + EPS) * w + b

    def ffn(v, lw, lb, wa, ba, wb, bb):
        h = ln(v, lw[0], lb[0])
        h = jnp.maximum(h @ wa.T + ba[0], 0.0)
        return h @ wb.T + bb[0]

    x = x + 0.5 * ffn(x, ln1w, ln1b, w1a, b1a, w1b, b1b)

    qkv = x @ inw.T + inb[0]
    q = qkv[..., :D] / math.sqrt(hd)
    k = qkv[..., D:2 * D]
    v = qkv[..., 2 * D:]
    split = lambda t: t.reshape(S, B, H, hd).transpose(1, 2, 0, 3)
    attn = jax.nn.softmax(jnp.einsum('bhsd,bhtd->bhst', split(q), split(k)), axis=-1)
    ctx = jnp.einsum('bhst,bhtd->bhsd', attn, split(v)).transpose(2, 0, 1, 3).reshape(S, B, D)
    x = x + (ctx @ outw.T + outb[0])

    # conv module, exactly as PyTorch: on (B, D, S)
    y = jnp.transpose(x, (1, 2, 0))                          # (B, D, S)
    y = ln(y, clnw[:, 0], clnb[:, 0])                        # LN over last axis (S == d_model)
    yp = jnp.pad(y, ((0, 0), (0, 0), (1, 1)))
    dwt = dww.T                                              # (D, 3)
    y = (dwt[None, :, 0:1] * yp[:, :, :-2]
         + dwt[None, :, 1:2] * yp[:, :, 1:-1]
         + dwt[None, :, 2:3] * yp[:, :, 2:]) + dwb[0][None, :, None]
    y = jnp.maximum(y, 0.0)
    y = jnp.einsum('cd,bds->bcs', pww, y) + pwb[0][None, :, None]
    x = x + jnp.transpose(y, (2, 0, 1))

    x = x + 0.5 * ffn(x, ln2w, ln2b, w2a, b2a, w2b, b2b)
    return ln(x, flnw[0], flnb[0])


# ----------------------------------------------------------------------------
if __name__ == "__main__":
    D, S, B = D_MODEL, SEQ, BATCH
    keys = jax.random.split(jax.random.PRNGKey(0), 32)

    def nrm(k, shape, scale=0.1):
        return jax.random.normal(k, shape, jnp.float32) * scale

    params = [
        1.0 + nrm(keys[0], (1, D)), nrm(keys[1], (1, D)),            # ffn1 LN  (gamma, beta)
        nrm(keys[2], (4 * D, D)), nrm(keys[3], (1, 4 * D)),          # ffn1 Linear(D, 4D)
        nrm(keys[4], (D, 4 * D)), nrm(keys[5], (1, D)),              # ffn1 Linear(4D, D)
        nrm(keys[6], (3 * D, D)), nrm(keys[7], (1, 3 * D)),          # mha in_proj (W, b)
        nrm(keys[8], (D, D)), nrm(keys[9], (1, D)),                  # mha out_proj
        1.0 + nrm(keys[10], (S, 1)), nrm(keys[11], (S, 1)),          # conv LN (S == d_model)
        nrm(keys[12], (3, D)), nrm(keys[13], (1, D)),                # depthwise conv (taps x chan), bias
        nrm(keys[14], (D, D)), nrm(keys[15], (1, D)),                # pointwise conv (k=1)
        1.0 + nrm(keys[16], (1, D)), nrm(keys[17], (1, D)),          # ffn2 LN
        nrm(keys[18], (4 * D, D)), nrm(keys[19], (1, 4 * D)),        # ffn2 Linear(D, 4D)
        nrm(keys[20], (D, 4 * D)), nrm(keys[21], (1, D)),            # ffn2 Linear(4D, D)
        1.0 + nrm(keys[22], (1, D)), nrm(keys[23], (1, D)),          # final LN
    ]

    x = jax.random.normal(keys[24], (S, B, D), jnp.float32)

    out = jax.block_until_ready(conformer_block(x, params))

    with jax.default_matmul_precision("highest"):
        ref = jax.block_until_ready(reference(x, params))

    assert out.shape == (S, B, D)
    max_err = float(jnp.max(jnp.abs(out - ref)))
    # bf16 MXU operands (per perf review) vs. an all-f32 reference -> ~1e-3..1e-2 abs error
    assert jnp.allclose(out, ref, atol=2e-2, rtol=2e-2), max_err
    print("KERNEL_OK")
</pallas_src>

<mosaic_0001>
module attributes {stable_mosaic.version = 11 : i64} {
  func.func @kernel(%arg0: i32, %arg1: memref<64x32xf32, #tpu.memory_space<vmem>>, %arg2: memref<928x256xbf16, #tpu.memory_space<vmem>>, %arg3: memref<656x128xf32, #tpu.memory_space<vmem>>, %arg4: memref<64x32xf32, #tpu.memory_space<vmem>>) attributes {dimension_semantics = [#tpu.dimension_semantics<arbitrary>], iteration_bounds = array<i64: 1>, scalar_prefetch = 0 : i64, scratch_operands = 0 : i64, tpu.core_type = #tpu.core_type<tc>, window_params = [{pipeline_mode = #tpu.pipeline_mode<synchronous>, transform_indices = @transform_0, window_bounds = array<i64: 64, 32>}, {pipeline_mode = #tpu.pipeline_mode<synchronous>, transform_indices = @transform_1, window_bounds = array<i64: 928, 256>}, {pipeline_mode = #tpu.pipeline_mode<synchronous>, transform_indices = @transform_2, window_bounds = array<i64: 656, 128>}, {pipeline_mode = #tpu.pipeline_mode<synchronous>, transform_indices = @transform_3, window_bounds = array<i64: 64, 32>}]} {
    %c0 = arith.constant 0 : index
    %c0_0 = arith.constant 0 : index
    %0 = vector.load %arg1[%c0, %c0_0] : memref<64x32xf32, #tpu.memory_space<vmem>>, vector<64x32xf32>
    %c0_1 = arith.constant 0 : index
    %c0_2 = arith.constant 0 : index
    %1 = vector.load %arg2[%c0_1, %c0_2] : memref<928x256xbf16, #tpu.memory_space<vmem>>, vector<32x128xbf16>
    %c640 = arith.constant 640 : index
    %c0_3 = arith.constant 0 : index
    %2 = vector.load %arg3[%c640, %c0_3] : memref<656x128xf32, #tpu.memory_space<vmem>>, vector<1x128xf32>
    %c32 = arith.constant 32 : index
    %c0_4 = arith.constant 0 : index
    %3 = vector.load %arg2[%c32, %c0_4] : memref<928x256xbf16, #tpu.memory_space<vmem>>, vector<128x32xbf16>
    %c641 = arith.constant 641 : index
    %c0_5 = arith.constant 0 : index
    %4 = vector.load %arg3[%c641, %c0_5] : memref<656x128xf32, #tpu.memory_space<vmem>>, vector<1x32xf32>
    %cst = arith.constant dense<0.000000e+00> : vector<64xf32>
    %5 = vector.multi_reduction <add>, %0, %cst [1] : vector<64x32xf32> to vector<64xf32>
    %6 = vector.shape_cast %5 : vector<64xf32> to vector<64x1xf32>
    %cst_6 = arith.constant 3.200000e+01 : f32
    %7 = vector.broadcast %cst_6 : f32 to vector<64x1xf32>
    %8 = arith.divf %6, %7 : vector<64x1xf32>
    %9 = vector.broadcast %8 : vector<64x1xf32> to vector<64x32xf32>
    %10 = arith.subf %0, %9 : vector<64x32xf32>
    %11 = arith.mulf %10, %10 : vector<64x32xf32>
    %cst_7 = arith.constant dense<0.000000e+00> : vector<64xf32>
    %12 = vector.multi_reduction <add>, %11, %cst_7 [1] : vector<64x32xf32> to vector<64xf32>
    %13 = vector.shape_cast %12 : vector<64xf32> to vector<64x1xf32>
    %cst_8 = arith.constant 3.200000e+01 : f32
    %14 = vector.broadcast %cst_8 : f32 to vector<64x1xf32>
    %15 = arith.divf %13, %14 : vector<64x1xf32>
    %16 = vector.broadcast %8 : vector<64x1xf32> to vector<64x32xf32>
    %17 = arith.subf %0, %16 : vector<64x32xf32>
    %cst_9 = arith.constant 9.99999974E-6 : f32
    %18 = vector.broadcast %cst_9 : f32 to vector<64x1xf32>
    %19 = arith.addf %15, %18 : vector<64x1xf32>
    %20 = math.rsqrt %19 : vector<64x1xf32>
    %21 = vector.broadcast %20 : vector<64x1xf32> to vector<64x32xf32>
    %22 = arith.mulf %17, %21 : vector<64x32xf32>
    %23 = arith.truncf %22 : vector<64x32xf32> to vector<64x32xbf16>
    %cst_10 = arith.constant dense<0.000000e+00> : vector<64x128xf32>
    %24 = tpu.matmul %23, %1, %cst_10 {dimension_numbers = #tpu.dot_dimension_numbers<[1], [0], [0], [1], [0, 0, 1, 1], [], []>} : vector<64x32xbf16>, vector<32x128xbf16>, vector<64x128xf32> -> vector<64x128xf32>
    %25 = vector.broadcast %2 : vector<1x128xf32> to vector<64x128xf32>
    %26 = arith.addf %24, %25 : vector<64x128xf32>
    %cst_11 = arith.constant 0.000000e+00 : f32
    %27 = vector.broadcast %cst_11 : f32 to vector<64x128xf32>
    %28 = arith.maximumf %26, %27 : vector<64x128xf32>
    %29 = arith.truncf %28 : vector<64x128xf32> to vector<64x128xbf16>
    %cst_12 = arith.constant dense<0.000000e+00> : vector<64x32xf32>
    %30 = tpu.matmul %29, %3, %cst_12 {dimension_numbers = #tpu.dot_dimension_numbers<[1], [0], [0], [1], [0, 0, 1, 1], [], []>} : vector<64x128xbf16>, vector<128x32xbf16>, vector<64x32xf32> -> vector<64x32xf32>
    %31 = vector.broadcast %4 : vector<1x32xf32> to vector<64x32xf32>
    %32 = arith.addf %30, %31 : vector<64x32xf32>
    %cst_13 = arith.constant 5.000000e-01 : f32
    %33 = vector.broadcast %cst_13 : f32 to vector<64x32xf32>
    %34 = arith.mulf %33, %32 : vector<64x32xf32>
    %35 = arith.addf %0, %34 : vector<64x32xf32>
    %c160 = arith.constant 160 : index
    %c0_14 = arith.constant 0 : index
    %36 = vector.load %arg2[%c160, %c0_14] : memref<928x256xbf16, #tpu.memory_space<vmem>>, vector<32x96xbf16>
    %37 = arith.truncf %35 : vector<64x32xf32> to vector<64x32xbf16>
    %cst_15 = arith.constant dense<0.000000e+00> : vector<64x96xf32>
    %38 = tpu.matmul %37, %36, %cst_15 {dimension_numbers = #tpu.dot_dimension_numbers<[1], [0], [0], [1], [0, 0, 1, 1], [], []>} : vector<64x32xbf16>, vector<32x96xbf16>, vector<64x96xf32> -> vector<64x96xf32>
    %c642 = arith.constant 642 : index
    %c0_16 = arith.constant 0 : index
    %39 = vector.load %arg3[%c642, %c0_16] : memref<656x128xf32, #tpu.memory_space<vmem>>, vector<1x96xf32>
    %40 = vector.broadcast %39 : vector<1x96xf32> to vector<64x96xf32>
    %41 = arith.addf %38, %40 : vector<64x96xf32>
    %42 = vector.extract_strided_slice %41 {offsets = [0, 0], sizes = [64, 32], strides = [1, 1]} : vector<64x96xf32> to vector<64x32xf32>
    %43 = vector.extract_strided_slice %41 {offsets = [0, 32], sizes = [64, 32], strides = [1, 1]} : vector<64x96xf32> to vector<64x32xf32>
    %44 = vector.extract_strided_slice %41 {offsets = [0, 64], sizes = [64, 32], strides = [1, 1]} : vector<64x96xf32> to vector<64x32xf32>
    %c416 = arith.constant 416 : index
    %c0_17 = arith.constant 0 : index
    %45 = vector.load %arg2[%c416, %c0_17] : memref<928x256xbf16, #tpu.memory_space<vmem>>, vector<256x64xbf16>
    %46 = arith.truncf %42 : vector<64x32xf32> to vector<64x32xbf16>
    %cst_18 = arith.constant dense<0.000000e+00> : vector<256x32xf32>
    %47 = tpu.matmul %45, %46, %cst_18 {dimension_numbers = #tpu.dot_dimension_numbers<[1], [0], [0], [1], [0, 0, 1, 1], [], []>} : vector<256x64xbf16>, vector<64x32xbf16>, vector<256x32xf32> -> vector<256x32xf32>
    %c128 = arith.constant 128 : index
    %c0_19 = arith.constant 0 : index
    %48 = vector.load %arg3[%c128, %c0_19] : memref<656x128xf32, #tpu.memory_space<vmem>>, vector<256x32xf32>
    %49 = arith.mulf %47, %48 : vector<256x32xf32>
    %50 = vector.extract_strided_slice %43 {offsets = [0, 0], sizes = [32, 32], strides = [1, 1]} : vector<64x32xf32> to vector<32x32xf32>
    %51 = tpu.transpose %50, [1, 0] : vector<32x32xf32> -> vector<32x32xf32>
    %52 = vector.extract_strided_slice %43 {offsets = [32, 0], sizes = [32, 32], strides = [1, 1]} : vector<64x32xf32> to vector<32x32xf32>
    %53 = tpu.transpose %52, [1, 0] : vector<32x32xf32> -> vector<32x32xf32>
    %54 = tpu.concatenate %51, %53 in 1 : vector<32x32xf32>, vector<32x32xf32> -> vector<32x64xf32>
    %55 = arith.truncf %49 : vector<256x32xf32> to vector<256x32xbf16>
    %56 = arith.truncf %54 : vector<32x64xf32> to vector<32x64xbf16>
    %cst_20 = arith.constant dense<0.000000e+00> : vector<256x64xf32>
    %57 = tpu.matmul %55, %56, %cst_20 {dimension_numbers = #tpu.dot_dimension_numbers<[1], [0], [0], [1], [0, 0, 1, 1], [], []>} : vector<256x32xbf16>, vector<32x64xbf16>, vector<256x64xf32> -> vector<256x64xf32>
    %c384 = arith.constant 384 : index
    %c0_21 = arith.constant 0 : index
    %58 = vector.load %arg3[%c384, %c0_21] : memref<656x128xf32, #tpu.memory_space<vmem>>, vector<256x64xf32>
    %59 = arith.addf %57, %58 : vector<256x64xf32>
    %cst_22 = arith.constant dense<0xFF800000> : vector<256xf32>
    %60 = vector.multi_reduction <maximumf>, %59, %cst_22 [1] : vector<256x64xf32> to vector<256xf32>
    %61 = vector.shape_cast %60 : vector<256xf32> to vector<256x1xf32>
    %62 = vector.broadcast %61 : vector<256x1xf32> to vector<256x64xf32>
    %63 = arith.subf %59, %62 : vector<256x64xf32>
    %64 = math.exp %63 : vector<256x64xf32>
    %cst_23 = arith.constant dense<0.000000e+00> : vector<256xf32>
    %65 = vector.multi_reduction <add>, %64, %cst_23 [1] : vector<256x64xf32> to vector<256xf32>
    %66 = vector.shape_cast %65 : vector<256xf32> to vector<256x1xf32>
    %67 = tpu.reciprocal %66 {approx = true} : vector<256x1xf32> -> vector<256x1xf32>
    %68 = vector.broadcast %67 : vector<256x1xf32> to vector<256x64xf32>
    %69 = arith.mulf %64, %68 : vector<256x64xf32>
    %70 = arith.truncf %69 : vector<256x64xf32> to vector<256x64xbf16>
    %71 = arith.truncf %44 : vector<64x32xf32> to vector<64x32xbf16>
    %cst_24 = arith.constant dense<0.000000e+00> : vector<256x32xf32>
    %72 = tpu.matmul %70, %71, %cst_24 {dimension_numbers = #tpu.dot_dimension_numbers<[1], [0], [0], [1], [0, 0, 1, 1], [], []>} : vector<256x64xbf16>, vector<64x32xbf16>, vector<256x32xf32> -> vector<256x32xf32>
    %c128_25 = arith.constant 128 : index
    %c0_26 = arith.constant 0 : index
    %73 = vector.load %arg3[%c128_25, %c0_26] : memref<656x128xf32, #tpu.memory_space<vmem>>, vector<256x32xf32>
    %74 = arith.mulf %72, %73 : vector<256x32xf32>
    %c672 = arith.constant 672 : index
    %c0_27 = arith.constant 0 : index
    %75 = vector.load %arg2[%c672, %c0_27] : memref<928x256xbf16, #tpu.memory_space<vmem>>, vector<64x256xbf16>
    %76 = arith.truncf %74 : vector<256x32xf32> to vector<256x32xbf16>
    %cst_28 = arith.constant dense<0.000000e+00> : vector<64x32xf32>
    %77 = tpu.matmul %75, %76, %cst_28 {dimension_numbers = #tpu.dot_dimension_numbers<[1], [0], [0], [1], [0, 0, 1, 1], [], []>} : vector<64x256xbf16>, vector<256x32xbf16>, vector<64x32xf32> -> vector<64x32xf32>
    %c192 = arith.constant 192 : index
    %c0_29 = arith.constant 0 : index
    %78 = vector.load %arg2[%c192, %c0_29] : memref<928x256xbf16, #tpu.memory_space<vmem>>, vector<32x32xbf16>
    %79 = arith.truncf %77 : vector<64x32xf32> to vector<64x32xbf16>
    %cst_30 = arith.constant dense<0.000000e+00> : vector<64x32xf32>
    %80 = tpu.matmul %79, %78, %cst_30 {dimension_numbers = #tpu.dot_dimension_numbers<[1], [0], [0], [1], [0, 0, 1, 1], [], []>} : vector<64x32xbf16>, vector<32x32xbf16>, vector<64x32xf32> -> vector<64x32xf32>
    %81 = arith.addf %35, %80 : vector<64x32xf32>
    %c643 = arith.constant 643 : index
    %c0_31 = arith.constant 0 : index
    %82 = vector.load %arg3[%c643, %c0_31] : memref<656x128xf32, #tpu.memory_space<vmem>>, vector<1x32xf32>
    %83 = vector.broadcast %82 : vector<1x32xf32> to vector<64x32xf32>
    %84 = arith.addf %81, %83 : vector<64x32xf32>
    %c736 = arith.constant 736 : index
    %c0_32 = arith.constant 0 : index
    %85 = vector.load %arg2[%c736, %c0_32] : memref<928x256xbf16, #tpu.memory_space<vmem>>, vector<64x64xbf16>
    %86 = arith.truncf %84 : vector<64x32xf32> to vector<64x32xbf16>
    %cst_33 = arith.constant dense<0.000000e+00> : vector<64x32xf32>
    %87 = tpu.matmul %85, %86, %cst_33 {dimension_numbers = #tpu.dot_dimension_numbers<[1], [0], [0], [1], [0, 0, 1, 1], [], []>} : vector<64x64xbf16>, vector<64x32xbf16>, vector<64x32xf32> -> vector<64x32xf32>
    %c736_34 = arith.constant 736 : index
    %c0_35 = arith.constant 0 : index
    %88 = vector.load %arg2[%c736_34, %c0_35] : memref<928x256xbf16, #tpu.memory_space<vmem>>, vector<64x64xbf16>
    %89 = arith.mulf %84, %84 : vector<64x32xf32>
    %90 = arith.truncf %89 : vector<64x32xf32> to vector<64x32xbf16>
    %cst_36 = arith.constant dense<0.000000e+00> : vector<64x32xf32>
    %91 = tpu.matmul %88, %90, %cst_36 {dimension_numbers = #tpu.dot_dimension_numbers<[1], [0], [0], [1], [0, 0, 1, 1], [], []>} : vector<64x64xbf16>, vector<64x32xbf16>, vector<64x32xf32> -> vector<64x32xf32>
    %92 = arith.mulf %87, %87 : vector<64x32xf32>
    %93 = arith.subf %91, %92 : vector<64x32xf32>
    %cst_37 = arith.constant 0.000000e+00 : f32
    %94 = vector.broadcast %cst_37 : f32 to vector<64x32xf32>
    %95 = arith.maximumf %93, %94 : vector<64x32xf32>
    %96 = arith.subf %84, %87 : vector<64x32xf32>
    %cst_38 = arith.constant 9.99999974E-6 : f32
    %97 = vector.broadcast %cst_38 : f32 to vector<64x32xf32>
    %98 = arith.addf %95, %97 : vector<64x32xf32>
    %99 = math.rsqrt %98 : vector<64x32xf32>
    %100 = arith.mulf %96, %99 : vector<64x32xf32>
    %c0_39 = arith.constant 0 : index
    %c0_40 = arith.constant 0 : index
    %101 = vector.load %arg3[%c0_39, %c0_40] : memref<656x128xf32, #tpu.memory_space<vmem>>, vector<64x32xf32>
    %102 = arith.mulf %100, %101 : vector<64x32xf32>
    %c64 = arith.constant 64 : index
    %c0_41 = arith.constant 0 : index
    %103 = vector.load %arg3[%c64, %c0_41] : memref<656x128xf32, #tpu.memory_space<vmem>>, vector<64x32xf32>
    %104 = arith.addf %102, %103 : vector<64x32xf32>
    %c644 = arith.constant 644 : index
    %c0_42 = arith.constant 0 : index
    %105 = vector.load %arg3[%c644, %c0_42] : memref<656x128xf32, #tpu.memory_space<vmem>>, vector<1x32xf32>
    %c800 = arith.constant 800 : index
    %c0_43 = arith.constant 0 : index
    %106 = vector.load %arg2[%c800, %c0_43] : memref<928x256xbf16, #tpu.memory_space<vmem>>, vector<64x64xbf16>
    %107 = arith.truncf %104 : vector<64x32xf32> to vector<64x32xbf16>
    %cst_44 = arith.constant dense<0.000000e+00> : vector<64x32xf32>
    %108 = tpu.matmul %106, %107, %cst_44 {dimension_numbers = #tpu.dot_dimension_numbers<[1], [0], [0], [1], [0, 0, 1, 1], [], []>} : vector<64x64xbf16>, vector<64x32xbf16>, vector<64x32xf32> -> vector<64x32xf32>
    %109 = vector.broadcast %105 : vector<1x32xf32> to vector<64x32xf32>
    %110 = arith.mulf %109, %108 : vector<64x32xf32>
    %c645 = arith.constant 645 : index
    %c0_45 = arith.constant 0 : index
    %111 = vector.load %arg3[%c645, %c0_45] : memref<656x128xf32, #tpu.memory_space<vmem>>, vector<1x32xf32>
    %112 = vector.broadcast %111 : vector<1x32xf32> to vector<64x32xf32>
    %113 = arith.mulf %112, %104 : vector<64x32xf32>
    %114 = arith.addf %110, %113 : vector<64x32xf32>
    %c646 = arith.constant 646 : index
    %c0_46 = arith.constant 0 : index
    %115 = vector.load %arg3[%c646, %c0_46] : memref<656x128xf32, #tpu.memory_space<vmem>>, vector<1x32xf32>
    %c864 = arith.constant 864 : index
    %c0_47 = arith.constant 0 : index
    %116 = vector.load %arg2[%c864, %c0_47] : memref<928x256xbf16, #tpu.memory_space<vmem>>, vector<64x64xbf16>
    %117 = arith.truncf %104 : vector<64x32xf32> to vector<64x32xbf16>
    %cst_48 = arith.constant dense<0.000000e+00> : vector<64x32xf32>
    %118 = tpu.matmul %116, %117, %cst_48 {dimension_numbers = #tpu.dot_dimension_numbers<[1], [0], [0], [1], [0, 0, 1, 1], [], []>} : vector<64x64xbf16>, vector<64x32xbf16>, vector<64x32xf32> -> vector<64x32xf32>
    %119 = vector.broadcast %115 : vector<1x32xf32> to vector<64x32xf32>
    %120 = arith.mulf %119, %118 : vector<64x32xf32>
    %121 = arith.addf %114, %120 : vector<64x32xf32>
    %c647 = arith.constant 647 : index
    %c0_49 = arith.constant 0 : index
    %122 = vector.load %arg3[%c647, %c0_49] : memref<656x128xf32, #tpu.memory_space<vmem>>, vector<1x32xf32>
    %123 = vector.broadcast %122 : vector<1x32xf32> to vector<64x32xf32>
    %124 = arith.addf %121, %123 : vector<64x32xf32>
    %cst_50 = arith.constant 0.000000e+00 : f32
    %125 = vector.broadcast %cst_50 : f32 to vector<64x32xf32>
    %126 = arith.maximumf %124, %125 : vector<64x32xf32>
    %c224 = arith.constant 224 : index
    %c0_51 = arith.constant 0 : index
    %127 = vector.load %arg2[%c224, %c0_51] : memref<928x256xbf16, #tpu.memory_space<vmem>>, vector<32x32xbf16>
    %128 = arith.truncf %126 : vector<64x32xf32> to vector<64x32xbf16>
    %cst_52 = arith.constant dense<0.000000e+00> : vector<64x32xf32>
    %129 = tpu.matmul %128, %127, %cst_52 {dimension_numbers = #tpu.dot_dimension_numbers<[1], [0], [0], [1], [0, 0, 1, 1], [], []>} : vector<64x32xbf16>, vector<32x32xbf16>, vector<64x32xf32> -> vector<64x32xf32>
    %c648 = arith.constant 648 : index
    %c0_53 = arith.constant 0 : index
    %130 = vector.load %arg3[%c648, %c0_53] : memref<656x128xf32, #tpu.memory_space<vmem>>, vector<1x32xf32>
    %131 = vector.broadcast %130 : vector<1x32xf32> to vector<64x32xf32>
    %132 = arith.addf %129, %131 : vector<64x32xf32>
    %133 = arith.addf %84, %132 : vector<64x32xf32>
    %c256 = arith.constant 256 : index
    %c0_54 = arith.constant 0 : index
    %134 = vector.load %arg2[%c256, %c0_54] : memref<928x256xbf16, #tpu.memory_space<vmem>>, vector<32x128xbf16>
    %c649 = arith.constant 649 : index
    %c0_55 = arith.constant 0 : index
    %135 = vector.load %arg3[%c649, %c0_55] : memref<656x128xf32, #tpu.memory_space<vmem>>, vector<1x128xf32>
    %c288 = arith.constant 288 : index
    %c0_56 = arith.constant 0 : index
    %136 = vector.load %arg2[%c288, %c0_56] : memref<928x256xbf16, #tpu.memory_space<vmem>>, vector<128x32xbf16>
    %c650 = arith.constant 650 : index
    %c0_57 = arith.constant 0 : index
    %137 = vector.load %arg3[%c650, %c0_57] : memref<656x128xf32, #tpu.memory_space<vmem>>, vector<1x32xf32>
    %cst_58 = arith.constant dense<0.000000e+00> : vector<64xf32>
    %138 = vector.multi_reduction <add>, %133, %cst_58 [1] : vector<64x32xf32> to vector<64xf32>
    %139 = vector.shape_cast %138 : vector<64xf32> to vector<64x1xf32>
    %cst_59 = arith.constant 3.200000e+01 : f32
    %140 = vector.broadcast %cst_59 : f32 to vector<64x1xf32>
    %141 = arith.divf %139, %140 : vector<64x1xf32>
    %142 = vector.broadcast %141 : vector<64x1xf32> to vector<64x32xf32>
    %143 = arith.subf %133, %142 : vector<64x32xf32>
    %144 = arith.mulf %143, %143 : vector<64x32xf32>
    %cst_60 = arith.constant dense<0.000000e+00> : vector<64xf32>
    %145 = vector.multi_reduction <add>, %144, %cst_60 [1] : vector<64x32xf32> to vector<64xf32>
    %146 = vector.shape_cast %145 : vector<64xf32> to vector<64x1xf32>
    %cst_61 = arith.constant 3.200000e+01 : f32
    %147 = vector.broadcast %cst_61 : f32 to vector<64x1xf32>
    %148 = arith.divf %146, %147 : vector<64x1xf32>
    %149 = vector.broadcast %141 : vector<64x1xf32> to vector<64x32xf32>
    %150 = arith.subf %133, %149 : vector<64x32xf32>
    %cst_62 = arith.constant 9.99999974E-6 : f32
    %151 = vector.broadcast %cst_62 : f32 to vector<64x1xf32>
    %152 = arith.addf %148, %151 : vector<64x1xf32>
    %153 = math.rsqrt %152 : vector<64x1xf32>
    %154 = vector.broadcast %153 : vector<64x1xf32> to vector<64x32xf32>
    %155 = arith.mulf %150, %154 : vector<64x32xf32>
    %156 = arith.truncf %155 : vector<64x32xf32> to vector<64x32xbf16>
    %cst_63 = arith.constant dense<0.000000e+00> : vector<64x128xf32>
    %157 = tpu.matmul %156, %134, %cst_63 {dimension_numbers = #tpu.dot_dimension_numbers<[1], [0], [0], [1], [0, 0, 1, 1], [], []>} : vector<64x32xbf16>, vector<32x128xbf16>, vector<64x128xf32> -> vector<64x128xf32>
    %158 = vector.broadcast %135 : vector<1x128xf32> to vector<64x128xf32>
    %159 = arith.addf %157, %158 : vector<64x128xf32>
    %cst_64 = arith.constant 0.000000e+00 : f32
    %160 = vector.broadcast %cst_64 : f32 to vector<64x128xf32>
    %161 = arith.maximumf %159, %160 : vector<64x128xf32>
    %162 = arith.truncf %161 : vector<64x128xf32> to vector<64x128xbf16>
    %cst_65 = arith.constant dense<0.000000e+00> : vector<64x32xf32>
    %163 = tpu.matmul %162, %136, %cst_65 {dimension_numbers = #tpu.dot_dimension_numbers<[1], [0], [0], [1], [0, 0, 1, 1], [], []>} : vector<64x128xbf16>, vector<128x32xbf16>, vector<64x32xf32> -> vector<64x32xf32>
    %164 = vector.broadcast %137 : vector<1x32xf32> to vector<64x32xf32>
    %165 = arith.addf %163, %164 : vector<64x32xf32>
    %cst_66 = arith.constant 5.000000e-01 : f32
    %166 = vector.broadcast %cst_66 : f32 to vector<64x32xf32>
    %167 = arith.mulf %166, %165 : vector<64x32xf32>
    %168 = arith.addf %133, %167 : vector<64x32xf32>
    %cst_67 = arith.constant dense<0.000000e+00> : vector<64xf32>
    %169 = vector.multi_reduction <add>, %168, %cst_67 [1] : vector<64x32xf32> to vector<64xf32>
    %170 = vector.shape_cast %169 : vector<64xf32> to vector<64x1xf32>
    %cst_68 = arith.constant 3.200000e+01 : f32
    %171 = vector.broadcast %cst_68 : f32 to vector<64x1xf32>
    %172 = arith.divf %170, %171 : vector<64x1xf32>
    %173 = vector.broadcast %172 : vector<64x1xf32> to vector<64x32xf32>
    %174 = arith.subf %168, %173 : vector<64x32xf32>
    %175 = arith.mulf %174, %174 : vector<64x32xf32>
    %cst_69 = arith.constant dense<0.000000e+00> : vector<64xf32>
    %176 = vector.multi_reduction <add>, %175, %cst_69 [1] : vector<64x32xf32> to vector<64xf32>
    %177 = vector.shape_cast %176 : vector<64xf32> to vector<64x1xf32>
    %cst_70 = arith.constant 3.200000e+01 : f32
    %178 = vector.broadcast %cst_70 : f32 to vector<64x1xf32>
    %179 = arith.divf %177, %178 : vector<64x1xf32>
    %180 = vector.broadcast %172 : vector<64x1xf32> to vector<64x32xf32>
    %181 = arith.subf %168, %180 : vector<64x32xf32>
    %cst_71 = arith.constant 9.99999974E-6 : f32
    %182 = vector.broadcast %cst_71 : f32 to vector<64x1xf32>
    %183 = arith.addf %179, %182 : vector<64x1xf32>
    %184 = math.rsqrt %183 : vector<64x1xf32>
    %185 = vector.broadcast %184 : vector<64x1xf32> to vector<64x32xf32>
    %186 = arith.mulf %181, %185 : vector<64x32xf32>
    %c651 = arith.constant 651 : index
    %c0_72 = arith.constant 0 : index
    %187 = vector.load %arg3[%c651, %c0_72] : memref<656x128xf32, #tpu.memory_space<vmem>>, vector<1x32xf32>
    %188 = vector.broadcast %187 : vector<1x32xf32> to vector<64x32xf32>
    %189 = arith.mulf %186, %188 : vector<64x32xf32>
    %c652 = arith.constant 652 : index
    %c0_73 = arith.constant 0 : index
    %190 = vector.load %arg3[%c652, %c0_73] : memref<656x128xf32, #tpu.memory_space<vmem>>, vector<1x32xf32>
    %191 = vector.broadcast %190 : vector<1x32xf32> to vector<64x32xf32>
    %192 = arith.addf %189, %191 : vector<64x32xf32>
    %c0_74 = arith.constant 0 : index
    %c0_75 = arith.constant 0 : index
    %193 = vector.load %arg4[%c0_74, %c0_75] : memref<64x32xf32, #tpu.memory_space<vmem>>, vector<64x32xf32>
    tpu.vector_store %arg4[%c0_74, %c0_75], %192 {strides = array<i32>} : memref<64x32xf32, #tpu.memory_space<vmem>>, vector<64x32xf32>,
    return
  }
  func.func @transform_0(%arg0: i32) -> (i32, i32) {
    %c0_i32 = arith.constant 0 : i32
    %c0_i32_0 = arith.constant 0 : i32
    %c0_i32_1 = arith.constant 0 : i32
    return %c0_i32, %c0_i32_0 : i32, i32
  }
  func.func @transform_1(%arg0: i32) -> (i32, i32) {
    %c0_i32 = arith.constant 0 : i32
    %c0_i32_0 = arith.constant 0 : i32
    %c0_i32_1 = arith.constant 0 : i32
    return %c0_i32, %c0_i32_0 : i32, i32
  }
  func.func @transform_2(%arg0: i32) -> (i32, i32) {
    %c0_i32 = arith.constant 0 : i32
    %c0_i32_0 = arith.constant 0 : i32
    %c0_i32_1 = arith.constant 0 : i32
    return %c0_i32, %c0_i32_0 : i32, i32
  }
  func.func @transform_3(%arg0: i32) -> (i32, i32) {
    %c0_i32 = arith.constant 0 : i32
    %c0_i32_0 = arith.constant 0 : i32
    %c0_i32_1 = arith.constant 0 : i32
    return %c0_i32, %c0_i32_0 : i32, i32
  }
}

</mosaic_0001>

<bundles_post_ra>
// kernel: tpu_custom_call.1
= control target key start
LH: loop header
LB: loop body
LE: loop exit
PB: predicated region body
PF: predicated region fallthrough
CT: control target
= control target key end

     0   :  { %8 = vsyncpa [#allocation3], 0  ;;  %s5344_s0 = inlined_call_operand.vmem [shape: f32[64,32], index: 0, kind: input, shape index: {}]   ;;  %s5345_s1 = inlined_call_operand.hbm [shape: bf16[928,256], index: 1, kind: input, shape index: {}]   ;;  %s5346_s2 = inlined_call_operand.hbm [shape: f32[656,128], index: 2, kind: input, shape index: {}]   ;;  %s5347_s3 = inlined_call_operand.vmem [shape: f32[64,32], index: 3, kind: output, shape index: {}]  }
   0x1   :  { %9 = vsyncpa [#allocation5], 0  ;;  %s4339_s12 = smov [#allocation2]  }
   0x2   :  { %s17_s13 = sshll.u32 %s4339_s12, 4  ;;  %s18_s13 = int_to_ptr.vmem [resolvable:$true] %s17_s13 }
   0x3   :  { %s4303_s14 = scalar_lea.vmem %s18_s13, 14848  ;;  %p4308_p1 = scmp.lt.s32.totalorder %s18_s13, %s18_s13 }
   0x4   :  { %p4304_p0 = scmp.ne.s32.totalorder %s18_s13, %s4303_s14  ;;  %p4309_p2 = scmp.lt.s32.totalorder %s4303_s14, %s4303_s14 }
   0x6   :  { %p4310_p3 = por %p4309_p2, %p4308_p1 }
   0x8   :  { %p4311_p4 = pnand %p4310_p3, %p4304_p0 }
   0xa   :  { %4314 = shalt.err (!%p4311_p4)
}
   0xb   :  { %s4340_s15 = smov 128   ;;  %s4341_s16 = smov 8  }
   0xc   :  { %23 = dma.hbm_to_vmem [thread:$0]  %s5345_s1, 14848, %s18_s13, [#allocation3], %s4340_s15, %s4340_s15, %s4341_s16  }
   0xd   :  { %s4342_s19 = smov [#allocation4]  }
   0xe   :  { %s29_s20 = sshll.u32 %s4342_s19, 4  ;;  %s30_s20 = int_to_ptr.vmem [resolvable:$true] %s29_s20 }
   0xf   :  { %s4323_s21 = scalar_lea.vmem %s30_s20, 10496  ;;  %p4328_p6 = scmp.lt.s32.totalorder %s30_s20, %s30_s20 }
  0x10   :  { %p4324_p5 = scmp.ne.s32.totalorder %s30_s20, %s4323_s21  ;;  %p4329_p7 = scmp.lt.s32.totalorder %s4323_s21, %s4323_s21 }
  0x12   :  { %p4330_p8 = por %p4329_p7, %p4328_p6 }
  0x14   :  { %p4331_p9 = pnand %p4330_p8, %p4324_p5 }
  0x16   :  { %4334 = shalt.err (!%p4331_p9)
}
  0x17   :  { %35 = dma.hbm_to_vmem [thread:$0]  %s5346_s2, 10496, %s30_s20, [#allocation5], %s4340_s15, %s4340_s15, %s4341_s16  }
  0x18   :  { %4335 = dma.done.wait [#allocation3], 14848  }
  0x19   :  { %4336 = vsyncadd [#allocation3], 4294952448 }
  0x1a   :  { %4337 = dma.done.wait [#allocation5], 10496  }
  0x1b   :  { %4338 = vsyncadd [#allocation5], 4294956800  ;;  %vm73_vm0 = vcmask 261120   ;;  %v4375_v0 = vld [vmem:[%s5344_s0] sm:$0xff]  ;;  %v4380_v1 = vld [vmem:[%s5344_s0 + $0x10] sm:$0xff]  ;;  %vm639_vm1 = vcmask 523264  }
  0x1c   :  { %v4385_v2 = vld [vmem:[%s5344_s0 + $0x8] sm:$0xff]  ;;  %v74_v3 = vsel %vm73_vm0, %v4375_v0, 0.0  ;;  %v80_v4 = vsel %vm73_vm0, %v4380_v1, 0.0  ;;  %v4396_v6 = vld [vmem:[%s5344_s0 + $0x18] sm:$0xff]  ;;  %v4401_v7 = vld [vmem:[%s5344_s0 + $0x20] sm:$0xff]  ;;  %s4344_s11 = smov 64  }
  0x1d   :  { %v77_v5 = vsel %vm73_vm0, %v4385_v2, 0.0  ;;  %v4406_v8 = vld [vmem:[%s5344_s0 + $0x28] sm:$0xff]  ;;  %75 = vadd.xlane.f32.xlu0 %v74_v3  ;;  %81 = vadd.xlane.f32.xlu1 %v80_v4  ;;  %v83_v9 = vsel %vm73_vm0, %v4396_v6, 0.0  ;;  %v86_v10 = vsel %vm73_vm0, %v4401_v7, 0.0  ;;  %v4417_v12 = vld [vmem:[%s5344_s0 + $0x30] sm:$0xff]  ;;  %v4422_v13 = vld [vmem:[%s5344_s0 + $0x38] sm:$0xff] }
  0x1e   :  { %v89_v11 = vsel %vm73_vm0, %v4406_v8, 0.0  ;;  %v92_v14 = vsel %vm73_vm0, %v4417_v12, 0.0  ;;  %v95_v15 = vsel %vm73_vm0, %v4422_v13, 0.0  ;;  %v4005_v56 = vld [vmem:[#allocation2 + $0x10] ss:$8 sps:$4 sm:$0xff]   ;;  %s4343_s0 = smov 96  }
  0x1f   :  { %v4006_v57 = vld [vmem:[#allocation2] ss:$8 sps:$4 sm:$0xff]   ;;  %3689 = vmatprep.subr.bf16.mxu0 %v4005_v56  ;;  %v4007_v58 = vld [vmem:[#allocation2 + $0x90] ss:$8 sps:$4 sm:$0xff]   ;;  %s4345_s12 = smov 32  }
  0x20   :  { %3690 = vmatpush3.bf16.msra.mxu0 %v4005_v56  ;;  %v4008_v59 = vld [vmem:[#allocation2 + $0x80] ss:$8 sps:$4 sm:$0xff]   ;;  %3701 = vmatprep.subr.bf16.mxu1 %v4007_v58  ;;  %v4009_v60 = vld [vmem:[#allocation2 + $0x70] ss:$8 sps:$4 sm:$0xff]  }
  0x21   :  { %78 = vadd.xlane.f32.xlu0 %v77_v5  ;;  %84 = vadd.xlane.f32.xlu1 %v83_v9  ;;  %v4010_v61 = vld [vmem:[#allocation2 + $0x60] ss:$8 sps:$4 sm:$0xff]   ;;  %v4011_v62 = vld [vmem:[#allocation2 + $0x50] ss:$8 sps:$4 sm:$0xff]  }
  0x22   :  { %3691 = vmatprep.subr.bf16.mxu0 %v4006_v57  ;;  %3702 = vmatpush3.bf16.msra.mxu1 %v4007_v58  ;;  %v4013_v56 = vld [vmem:[#allocation2 + $0x30] ss:$8 sps:$4 sm:$0xff]   ;;  %v3346_v58 = vld [vmem:[#allocation4 + $0x280] ss:$0 sm:$0xff] }
  0x23   :  { %3703 = vmatprep.subr.bf16.mxu1 %v4008_v59 }
  0x24   :  { %3692 = vmatpush3.bf16.msra.mxu0 %v4006_v57 }
  0x25   :  { %87 = vadd.xlane.f32.xlu0 %v86_v10  ;;  %90 = vadd.xlane.f32.xlu1 %v89_v11 }
  0x26   :  { %3704 = vmatpush3.bf16.msra.mxu1 %v4008_v59 }
  0x27   :  { %3705 = vmatprep.subr.bf16.mxu1 %v4009_v60 }
  0x29   :  { %93 = vadd.xlane.f32.xlu0 %v92_v14  ;;  %96 = vadd.xlane.f32.xlu1 %v95_v15 }
  0x2a   :  { %3706 = vmatpush3.bf16.msra.mxu1 %v4009_v60 }
  0x2b   :  { %3707 = vmatprep.subr.bf16.mxu1 %v4010_v61 }
  0x2e   :  { %3708 = vmatpush3.bf16.msra.mxu1 %v4010_v61 }
  0x2f   :  { %3709 = vmatprep.subr.bf16.mxu1 %v4011_v62 }
  0x32   :  { %3710 = vmatpush3.bf16.msra.mxu1 %v4011_v62 }
  0xa6   :  { %v76_v16 = vpop.xlane.xlu0 %75  ;;  %v82_v17 = vpop.xlane.xlu1 %81 }
  0xa7   :  { %v99_v18 = vmul.f32 0.03125, %v76_v16  ;;  %v101_v19 = vmul.f32 0.03125, %v82_v17 }
  0xa9   :  { %v4429_v20 = vsub.f32 %v4375_v0, %v99_v18  ;;  %v4432_v21 = vsub.f32 %v4380_v1, %v101_v19 }
  0xaa   :  { %v79_v22 = vpop.xlane.xlu0 %78  ;;  %v85_v23 = vpop.xlane.xlu1 %84 }
  0xab   :  { %v100_v24 = vmul.f32 0.03125, %v79_v22  ;;  %v102_v25 = vmul.f32 0.03125, %v85_v23  ;;  %v115_v26 = vmul.f32 %v4429_v20, %v4429_v20  ;;  %v117_v27 = vmul.f32 %v4432_v21, %v4432_v21 }
  0xad   :  { %v4439_v28 = vsub.f32 %v4385_v2, %v100_v24  ;;  %v4442_v29 = vsub.f32 %v4396_v6, %v102_v25  ;;  %v123_v30 = vsel %vm73_vm0, %v115_v26, 0.0  ;;  %v129_v33 = vsel %vm73_vm0, %v117_v27, 0.0 }
  0xae   :  { %124 = vadd.xlane.f32.xlu0 %v123_v30  ;;  %v88_v31 = vpop.xlane.xlu0 %87  ;;  %v91_v32 = vpop.xlane.xlu1 %90 }
  0xaf   :  { %v103_v34 = vmul.f32 0.03125, %v88_v31  ;;  %v104_v35 = vmul.f32 0.03125, %v91_v32  ;;  %v116_v36 = vmul.f32 %v4439_v28, %v4439_v28  ;;  %v118_v37 = vmul.f32 %v4442_v29, %v4442_v29 }
  0xb1   :  { %v4451_v38 = vsub.f32 %v4401_v7, %v103_v34  ;;  %v4454_v39 = vsub.f32 %v4406_v8, %v104_v35  ;;  %v126_v40 = vsel %vm73_vm0, %v116_v36, 0.0  ;;  %v132_v43 = vsel %vm73_vm0, %v118_v37, 0.0 }
  0xb2   :  { %130 = vadd.xlane.f32.xlu0 %v129_v33  ;;  %127 = vadd.xlane.f32.xlu1 %v126_v40  ;;  %v94_v41 = vpop.xlane.xlu0 %93  ;;  %v97_v42 = vpop.xlane.xlu1 %96 }
  0xb3   :  { %v105_v44 = vmul.f32 0.03125, %v94_v41  ;;  %v106_v45 = vmul.f32 0.03125, %v97_v42  ;;  %v119_v46 = vmul.f32 %v4451_v38, %v4451_v38  ;;  %v120_v47 = vmul.f32 %v4454_v39, %v4454_v39 }
  0xb5   :  { %v4463_v48 = vsub.f32 %v4417_v12, %v105_v44  ;;  %v4466_v49 = vsub.f32 %v4422_v13, %v106_v45  ;;  %v135_v50 = vsel %vm73_vm0, %v119_v46, 0.0  ;;  %v138_v51 = vsel %vm73_vm0, %v120_v47, 0.0 }
  0xb6   :  { %133 = vadd.xlane.f32.xlu1 %v132_v43  ;;  %136 = vadd.xlane.f32.xlu0 %v135_v50 }
  0xb7   :  { %v121_v52 = vmul.f32 %v4463_v48, %v4463_v48  ;;  %v122_v53 = vmul.f32 %v4466_v49, %v4466_v49 }
  0xb9   :  { %v141_v54 = vsel %vm73_vm0, %v121_v52, 0.0  ;;  %v144_v55 = vsel %vm73_vm0, %v122_v53, 0.0 }
  0xba   :  { %139 = vadd.xlane.f32.xlu1 %v138_v51  ;;  %142 = vadd.xlane.f32.xlu0 %v141_v54 }
  0xbe   :  { %145 = vadd.xlane.f32.xlu1 %v144_v55 }
 0x137   :  { %v125_v63 = vpop.xlane.xlu0 %124 }
 0x138   :  { %v147_v3 = vmul.f32 0.03125, %v125_v63 }
 0x13a   :  { %v155_v4 = vadd.f32 1e-05, %v147_v3 }
 0x13b   :  { %v128_v5 = vpop.xlane.xlu1 %127  ;;  %v131_v9 = vpop.xlane.xlu0 %130 }
 0x13c   :  { %v148_v10 = vmul.f32 0.03125, %v128_v5  ;;  %v149_v11 = vmul.f32 0.03125, %v131_v9  ;;  %4071 = vrsqrt.f32 %v155_v4 }
 0x13e   :  { %v156_v14 = vadd.f32 1e-05, %v148_v10  ;;  %v157_v15 = vadd.f32 1e-05, %v149_v11 }
 0x13f   :  { %v134_v16 = vpop.xlane.xlu1 %133  ;;  %v137_v17 = vpop.xlane.xlu0 %136 }
 0x140   :  { %4073 = vrsqrt.f32 %v156_v14  ;;  %v150_v18 = vmul.f32 0.03125, %v134_v16  ;;  %v151_v19 = vmul.f32 0.03125, %v137_v17 }
 0x141   :  { %4075 = vrsqrt.f32 %v157_v15 }
 0x142   :  { %v158_v22 = vadd.f32 1e-05, %v150_v18  ;;  %v159_v23 = vadd.f32 1e-05, %v151_v19 }
 0x143   :  { %v140_v24 = vpop.xlane.xlu1 %139  ;;  %v143_v25 = vpop.xlane.xlu0 %142 }
 0x144   :  { %4077 = vrsqrt.f32 %v158_v22  ;;  %v152_v26 = vmul.f32 0.03125, %v140_v24  ;;  %v153_v27 = vmul.f32 0.03125, %v143_v25 }
 0x145   :  { %4079 = vrsqrt.f32 %v159_v23 }
 0x146   :  { %v160_v30 = vadd.f32 1e-05, %v152_v26  ;;  %v161_v31 = vadd.f32 1e-05, %v153_v27 }
 0x147   :  { %v146_v32 = vpop.xlane.xlu1 %145 }
 0x148   :  { %4081 = vrsqrt.f32 %v160_v30  ;;  %v154_v33 = vmul.f32 0.03125, %v146_v32  ;;  %v4016_v32 = vld [vmem:[#allocation2 + $0xa0] ss:$8 sps:$4 sm:$0xff]  }
 0x149   :  { %4083 = vrsqrt.f32 %v161_v31  ;;  %v4072_v35 = vpop.eup %4071  ;;  %v4015_v31 = vld [vmem:[#allocation2 + $0xb0] ss:$8 sps:$4 sm:$0xff]  }
 0x14a   :  { %v162_v34 = vadd.f32 1e-05, %v154_v33  ;;  %v171_v37 = vmul.f32 %v4072_v35, %v4429_v20  ;;  %3725 = vmatprep.subr.bf16.mxu0 %v4015_v31 }
 0x14c   :  { %4085 = vrsqrt.f32 %v162_v34  ;;  %v3353_v34 = vld [vmem:[#allocation4 + $0x281] ss:$0 sm:$0xff] }
 0x14d   :  { %v4074_v36 = vpop.eup %4073 }
 0x14e   :  { %v172_v40 = vmul.f32 %v4074_v36, %v4439_v28  ;;  %v4076_v41 = vpop.eup %4075 }
 0x14f   :  { %v173_v44 = vmul.f32 %v4076_v41, %v4432_v21 }
 0x150   :  { %v179_v42 = vpack.c.bf16 %v172_v40, %v171_v37 }
 0x151   :  { %v4078_v43 = vpop.eup %4077 }
 0x152   :  { %3693 = vmatprep.mubr.msk.bf16.mxu0 %vm73_vm0, %v179_v42  ;;  %v174_v45 = vmul.f32 %v4078_v43, %v4442_v29  ;;  %v4080_v46 = vpop.eup %4079  ;;  %v4012_v29 = vld [vmem:[#allocation2 + $0x40] ss:$8 sps:$4 sm:$0xff]  }
 0x153   :  { %v175_v51 = vmul.f32 %v4080_v46, %v4451_v38  ;;  %3711 = vmatprep.subr.bf16.mxu1 %v4012_v29  ;;  %v4014_v38 = vld [vmem:[#allocation2 + $0x20] ss:$8 sps:$4 sm:$0xff]  }
 0x154   :  { %v180_v47 = vpack.c.bf16 %v174_v45, %v173_v44  ;;  %3712 = vmatpush3.bf16.msra.mxu1 %v4012_v29 }
 0x155   :  { %v4082_v50 = vpop.eup %4081  ;;  %3713 = vmatprep.subr.bf16.mxu1 %v4013_v56 }
 0x156   :  { %3694 = vmatmul.mubr.msk.bf16.vlgmr.msra.gmra.mxu0 %vm73_vm0, %v180_v47  ;;  %v176_v20 = vmul.f32 %v4082_v50, %v4454_v39  ;;  %v4084_v52 = vpop.eup %4083 }
 0x157   :  { %v177_v54 = vmul.f32 %v4084_v52, %v4463_v48  ;;  %3726 = vmatpush3.bf16.msra.mxu0 %v4015_v31 }
 0x158   :  { %v181_v28 = vpack.c.bf16 %v176_v20, %v175_v51  ;;  %3714 = vmatpush3.bf16.msra.mxu1 %v4013_v56  ;;  %3727 = vmatprep.subr.bf16.mxu0 %v4016_v32 }
 0x159   :  { %v4086_v53 = vpop.eup %4085  ;;  %3715 = vmatprep.subr.bf16.mxu1 %v4014_v38 }
 0x15a   :  { %3697 = vmatprep.mubr.msk.bf16.mxu0 %vm73_vm0, %v181_v28  ;;  %v178_v21 = vmul.f32 %v4086_v53, %v4466_v49 }
 0x15b   :  { %3728 = vmatpush3.bf16.msra.mxu0 %v4016_v32 }
 0x15c   :  { %v182_v55 = vpack.c.bf16 %v178_v21, %v177_v54  ;;  %3716 = vmatpush3.bf16.msra.mxu1 %v4014_v38 }
 0x15e   :  { %3698 = vmatmul.mubr.msk.bf16.gmra.mxu0 %vm73_vm0, %v182_v55 }
 0x216   :  { %v3695_v39 = vpop.f32.mrf.mxu0 }
 0x217   :  { %v254_v61 = vadd.f32 %v3695_v39, %v3346_v58 }
 0x218   :  { %v245_v57 = vpop.f32.mrf.mxu0 }
 0x219   :  { %v246_v60 = vadd.f32 %v3346_v58, %v245_v57  ;;  %v278_v9 = vmax.f32 %v254_v61, 0.0 }
 0x21a   :  { %v3696_v59 = vpop.f32.mrf.mxu0 }
 0x21b   :  { %v257_v48 = vadd.f32 %v3696_v59, %v3346_v58  ;;  %v276_v4 = vmax.f32 %v246_v60, 0.0 }
 0x21c   :  { %v248_v49 = vpop.f32.mrf.mxu0 }
 0x21d   :  { %v249_v62 = vadd.f32 %v3346_v58, %v248_v49  ;;  %v279_v63 = vmax.f32 %v257_v48, 0.0 }
 0x21e   :  { %v3699_v3 = vpop.f32.mrf.mxu0 }
 0x21f   :  { %v277_v5 = vmax.f32 %v249_v62, 0.0  ;;  %v285_v14 = vpack.c.bf16 %v279_v63, %v278_v9  ;;  %v270_v18 = vadd.f32 %v3699_v3, %v3346_v58  ;;  %v3362_v3 = vld [vmem:[#allocation4 + $0x282] ss:$0 sm:$0xff] }
 0x220   :  { %v261_v10 = vpop.f32.mrf.mxu0 }
 0x221   :  { %v284_v11 = vpack.c.bf16 %v277_v5, %v276_v4  ;;  %v262_v16 = vadd.f32 %v3346_v58, %v261_v10  ;;  %v282_v26 = vmax.f32 %v270_v18, 0.0 }
 0x222   :  { %v3700_v15 = vpop.f32.mrf.mxu0 }
 0x223   :  { %v273_v17 = vadd.f32 %v3700_v15, %v3346_v58  ;;  %3717 = vmatprep.mubr.bf16.mxu1 %v284_v11  ;;  %v280_v24 = vmax.f32 %v262_v16, 0.0 }
 0x224   :  { %v264_v19 = vpop.f32.mrf.mxu0  ;;  %3718 = vmatmul.mubr.bf16.vlgmr.msra.gmra.mxu1 %v285_v14 }
 0x225   :  { %v265_v22 = vadd.f32 %v3346_v58, %v264_v19  ;;  %v283_v23 = vmax.f32 %v273_v17, 0.0 }
 0x227   :  { %v281_v25 = vmax.f32 %v265_v22, 0.0  ;;  %v287_v30 = vpack.c.bf16 %v283_v23, %v282_v26 }
 0x229   :  { %v286_v27 = vpack.c.bf16 %v281_v25, %v280_v24 }
 0x22b   :  { %3721 = vmatprep.mubr.bf16.mxu1 %v286_v27  ;;  %v4017_v27 = vld [vmem:[#allocation2 + $0x1a0] ss:$8 sps:$4 sm:$0xff]  }
 0x22c   :  { %3722 = vmatmul.mubr.bf16.gmra.mxu1 %v287_v30  ;;  %v4018_v30 = vld [vmem:[#allocation2 + $0x1b0] ss:$8 sps:$4 sm:$0xff]  }
 0x2e4   :  { %v3719_v33 = vpop.f32.mrf.mxu1 }
 0x2e5   :  { %v383_v37 = vadd.f32 %v3719_v33, %v3353_v34 }
 0x2e6   :  { %v374_v35 = vpop.f32.mrf.mxu1 }
 0x2e7   :  { %v375_v36 = vadd.f32 %v3353_v34, %v374_v35  ;;  %v407_v46 = vmul.f32 0.5, %v383_v37  ;;  %v4019_v35 = vld [vmem:[#allocation2 + $0x1c0] ss:$8 sps:$4 sm:$0xff]  }
 0x2e8   :  { %v3720_v40 = vpop.f32.mrf.mxu1  ;;  %v4021_v37 = vld [vmem:[#allocation2 + $0x1e0] ss:$8 sps:$4 sm:$0xff]  }
 0x2e9   :  { %v386_v41 = vadd.f32 %v3720_v40, %v3353_v34  ;;  %v405_v43 = vmul.f32 0.5, %v375_v36  ;;  %v4498_v54 = vadd.f32 %v407_v46, %v4380_v1  ;;  %v4020_v36 = vld [vmem:[#allocation2 + $0x1d0] ss:$8 sps:$4 sm:$0xff]  }
 0x2ea   :  { %v377_v42 = vpop.f32.mrf.mxu1  ;;  %v4022_v40 = vld [vmem:[#allocation2 + $0x1f0] ss:$8 sps:$4 sm:$0xff]  }
 0x2eb   :  { %v408_v44 = vmul.f32 0.5, %v386_v41  ;;  %v378_v45 = vadd.f32 %v3353_v34, %v377_v42  ;;  %v4492_v52 = vadd.f32 %v405_v43, %v4375_v0  ;;  %v4023_v41 = vld [vmem:[#allocation2 + $0x200] ss:$8 sps:$4 sm:$0xff]   ;;  %v4024_v42 = vld [vmem:[#allocation2 + $0x210] ss:$8 sps:$4 sm:$0xff]  }
 0x2ec   :  { %v3723_v47 = vpop.f32.mrf.mxu1  ;;  %v4025_v43 = vld [vmem:[#allocation2 + $0x220] ss:$8 sps:$4 sm:$0xff]   ;;  %v4028_v46 = vld [vmem:[#allocation2 + $0x250] ss:$8 sps:$4 sm:$0xff]  }
 0x2ed   :  { %v406_v50 = vmul.f32 0.5, %v378_v45  ;;  %v4489_v51 = vadd.f32 %v408_v44, %v4396_v6  ;;  %v399_v21 = vadd.f32 %v3723_v47, %v3353_v34  ;;  %v4026_v44 = vld [vmem:[#allocation2 + $0x230] ss:$8 sps:$4 sm:$0xff]   ;;  %v4027_v45 = vld [vmem:[#allocation2 + $0x240] ss:$8 sps:$4 sm:$0xff]  }
 0x2ee   :  { %v390_v20 = vpop.f32.mrf.mxu1  ;;  %v4029_v47 = vld [vmem:[#allocation2 + $0x260] ss:$8 sps:$4 sm:$0xff]  }
 0x2ef   :  { %v4495_v28 = vadd.f32 %v406_v50, %v4385_v2  ;;  %v391_v53 = vadd.f32 %v3353_v34, %v390_v20  ;;  %v426_v6 = vpack.c.bf16 %v4489_v51, %v4498_v54  ;;  %v411_v2 = vmul.f32 0.5, %v399_v21  ;;  %v4030_v50 = vld [vmem:[#allocation2 + $0x270] ss:$8 sps:$4 sm:$0xff]   ;;  %v4031_v20 = vld [vmem:[#allocation2 + $0x280] ss:$8 sps:$4 sm:$0xff]  }
 0x2f0   :  { %v3724_v55 = vpop.f32.mrf.mxu1 }
 0x2f1   :  { %v425_v29 = vpack.c.bf16 %v4495_v28, %v4492_v52  ;;  %v402_v56 = vadd.f32 %v3724_v55, %v3353_v34  ;;  %v409_v39 = vmul.f32 0.5, %v391_v53  ;;  %v4516_v48 = vadd.f32 %v411_v2, %v4417_v12  ;;  %v4032_v53 = vld [vmem:[#allocation2 + $0x290] ss:$8 sps:$4 sm:$0xff]  }
 0x2f2   :  { %v393_v38 = vpop.f32.mrf.mxu1 }
 0x2f3   :  { %v412_v0 = vmul.f32 0.5, %v402_v56  ;;  %v394_v57 = vadd.f32 %v3353_v34, %v393_v38  ;;  %3729 = vmatprep.mubr.msk.bf16.mxu0 %vm73_vm0, %v425_v29  ;;  %v4510_v59 = vadd.f32 %v409_v39, %v4401_v7 }
 0x2f4   :  { %3730 = vmatmul.mubr.msk.bf16.vlgmr.msra.gmra.mxu0 %vm73_vm0, %v426_v6 }
 0x2f5   :  { %v410_v1 = vmul.f32 0.5, %v394_v57  ;;  %v4507_v58 = vadd.f32 %v412_v0, %v4422_v13 }
 0x2f7   :  { %v4513_v60 = vadd.f32 %v410_v1, %v4406_v8  ;;  %v428_v49 = vpack.c.bf16 %v4507_v58, %v4516_v48 }
 0x2f9   :  { %v427_v61 = vpack.c.bf16 %v4513_v60, %v4510_v59 }
 0x2fb   :  { %3733 = vmatprep.mubr.msk.bf16.mxu0 %vm73_vm0, %v427_v61 }
 0x2fc   :  { %3734 = vmatmul.mubr.msk.bf16.gmra.mxu0 %vm73_vm0, %v428_v49  ;;  %v851_v49 = vld [vmem:[#allocation4 + $0x90] sm:$0xff] }
 0x2fd   :  { %3745 = vmatprep.mubr.msk.bf16.mxu0 %vm639_vm1, %v4017_v27 }
 0x3b4   :  { %v3731_v13 = vpop.f32.mrf.mxu0 }
 0x3b5   :  { %v501_v23 = vadd.f32 %v3731_v13, %v3362_v3 }
 0x3b6   :  { %v492_v62 = vpop.f32.mrf.mxu0 }
 0x3b7   :  { %v493_v14 = vadd.f32 %v3362_v3, %v492_v62  ;;  %v849_v62 = vld [vmem:[#allocation4 + $0x80] sm:$0xff] }
 0x3b8   :  { %v3732_v7 = vpop.f32.mrf.mxu0 }
 0x3b9   :  { %v504_v19 = vadd.f32 %v3732_v7, %v3362_v3  ;;  %v852_v7 = vld [vmem:[#allocation4 + $0x98] sm:$0xff] }
 0x3ba   :  { %v495_v63 = vpop.f32.mrf.mxu0 }
 0x3bb   :  { %v496_v9 = vadd.f32 %v3362_v3, %v495_v63  ;;  %v4527_v24 = vpack.c.bf16 %v504_v19, %v501_v23  ;;  %v3990_v25 = vpack.i.bf16 %v504_v19, %v501_v23 }
 0x3bc   :  { %v3735_v8 = vpop.f32.mrf.mxu0 }
 0x3bd   :  { %v517_v4 = vadd.f32 %v3735_v8, %v3362_v3  ;;  %v3985_v18 = vpack.i.bf16 %v496_v9, %v493_v14  ;;  %v4531_v26 = vpack.c.bf16 %v496_v9, %v493_v14  ;;  %v850_v9 = vld [vmem:[#allocation4 + $0x88] sm:$0xff] }
 0x3be   :  { %v508_v5 = vpop.f32.mrf.mxu0 }
 0x3bf   :  { %v509_v12 = vadd.f32 %v3362_v3, %v508_v5  ;;  %969 = vrot.lane.b32.xlu1 %v517_v4, %s4343_s0 }
 0x3c0   :  { %v3736_v10 = vpop.f32.mrf.mxu0 }
 0x3c1   :  { %v520_v11 = vadd.f32 %v3736_v10, %v3362_v3  ;;  %965 = vrot.lane.b32.xlu0 %v509_v12, %s4343_s0 }
 0x3c2   :  { %v511_v15 = vpop.f32.mrf.mxu0 }
 0x3c3   :  { %v558_v16 = vpack.c.bf16 %v520_v11, %v517_v4  ;;  %v512_v17 = vadd.f32 %v3362_v3, %v511_v15 }
 0x3c5   :  { %v4524_v22 = vpack.c.bf16 %v512_v17, %v509_v12  ;;  %3737 = vmatprep.subr.bf16.mxu0 %v558_v16  ;;  %967 = vrot.lane.b32.xlu1 %v512_v17, %s4343_s0 }
 0x3c6   :  { %3986 = vrot.lane.b32.xlu0 %v3985_v18, %s4343_s0  ;;  %3738 = vmatpush3.bf16.msra.mxu0 %v558_v16 }
 0x3c7   :  { %3739 = vmatprep.subr.bf16.mxu0 %v4524_v22 }
 0x3c9   :  { %971 = vrot.lane.b32.xlu1 %v520_v11, %s4343_s0 }
 0x3ca   :  { %3740 = vmatpush3.bf16.msra.mxu0 %v4524_v22 }
 0x3cb   :  { %3741 = vmatprep.subr.bf16.mxu0 %v4527_v24 }
 0x3cd   :  { %3991 = vrot.lane.b32.xlu1 %v3990_v25, %s4343_s0 }
 0x3ce   :  { %3742 = vmatpush3.bf16.msra.mxu0 %v4527_v24 }
 0x3cf   :  { %3743 = vmatprep.subr.bf16.mxu0 %v4531_v26 }
 0x3d2   :  { %3744 = vmatpush3.bf16.msra.mxu0 %v4531_v26 }
 0x3d5   :  { %3746 = vmatmul.mubr.msk.bf16.vlgmr.msra.gmra.mxu0 %vm639_vm1, %v4018_v30 }
 0x3d6   :  { %3749 = vmatprep.mubr.msk.bf16.mxu0 %vm639_vm1, %v4019_v35 }
 0x3dd   :  { %3750 = vmatmul.mubr.msk.bf16.gmra.mxu0 %vm639_vm1, %v4020_v36 }
 0x3de   :  { %3753 = vmatprep.mubr.msk.bf16.mxu0 %vm639_vm1, %v4021_v37 }
 0x3e5   :  { %3754 = vmatmul.mubr.msk.bf16.gmra.mxu0 %vm639_vm1, %v4022_v40 }
 0x3e6   :  { %3757 = vmatprep.mubr.msk.bf16.mxu0 %vm639_vm1, %v4023_v41 }
 0x3ed   :  { %3758 = vmatmul.mubr.msk.bf16.gmra.mxu0 %vm639_vm1, %v4024_v42 }
 0x3ee   :  { %3761 = vmatprep.mubr.msk.bf16.mxu0 %vm639_vm1, %v4025_v43 }
 0x3f5   :  { %3762 = vmatmul.mubr.msk.bf16.gmra.mxu0 %vm639_vm1, %v4026_v44 }
 0x3f6   :  { %3765 = vmatprep.mubr.msk.bf16.mxu0 %vm639_vm1, %v4027_v45 }
 0x3fd   :  { %3766 = vmatmul.mubr.msk.bf16.gmra.mxu0 %vm639_vm1, %v4028_v46 }
 0x3fe   :  { %3769 = vmatprep.mubr.msk.bf16.mxu0 %vm639_vm1, %v4029_v47 }
 0x405   :  { %3770 = vmatmul.mubr.msk.bf16.gmra.mxu0 %vm639_vm1, %v4030_v50 }
 0x406   :  { %3773 = vmatprep.mubr.msk.bf16.mxu0 %vm639_vm1, %v4031_v20 }
 0x40d   :  { %3774 = vmatmul.mubr.msk.bf16.gmra.mxu0 %vm639_vm1, %v4032_v53 }
 0x431   :  { %v970_v31 = vpop.permute.xlu1 %969 }
 0x433   :  { %v966_v32 = vpop.permute.xlu0 %965 }
 0x434   :  { %977 = vxpose.xlu0.b32.start [1/4] (short) (narrow) %v966_v32, 32 }
 0x437   :  { %v968_v33 = vpop.permute.xlu1 %967 }
 0x438   :  { %978 = vxpose.xlu0.b32.cont [2/4] (short) (narrow) %v968_v33, 32  ;;  %v3987_v21 = vpop.permute.xlu0 %3986 }
 0x439   :  { %v3988_v57 = vunpack.i.l.bf16 %v3987_v21  ;;  %v3989_v2 = vunpack.i.h.bf16 %v3987_v21 }
 0x43b   :  { %v972_v34 = vpop.permute.xlu1 %971 }
 0x43c   :  { %979 = vxpose.xlu0.b32.cont [3/4] (short) (narrow) %v970_v31, 32 }
 0x43f   :  { %v3992_v61 = vpop.permute.xlu1 %3991 }
 0x440   :  { %980 = vxpose.xlu0.b32.end [4/4] (short) (narrow) %v972_v34, 32  ;;  %v3993_v63 = vunpack.i.l.bf16 %v3992_v61  ;;  %v3994_v10 = vunpack.i.h.bf16 %v3992_v61  ;;  %v855_v61 = vld [vmem:[#allocation4 + $0xb0] sm:$0xff] }
 0x469   :  { %1666 = vrot.lane.b32.xlu0 %v558_v16, %s4344_s11 }
 0x495   :  { %v3747_v1 = vpop.f32.mrf.mxu0 }
 0x496   :  { %v883_v3 = vmul.f32 %v3747_v1, %v851_v49  ;;  %v856_v49 = vld [vmem:[#allocation4 + $0xb8] sm:$0xff] }
 0x497   :  { %v722_v13 = vpop.f32.mrf.mxu0 }
 0x498   :  { %v881_v4 = vmul.f32 %v849_v62, %v722_v13  ;;  %v857_v62 = vld [vmem:[#allocation4 + $0xc0] sm:$0xff] }
 0x499   :  { %v3748_v8 = vpop.f32.mrf.mxu0 }
 0x49a   :  { %v884_v5 = vmul.f32 %v3748_v8, %v852_v7  ;;  %v858_v7 = vld [vmem:[#allocation4 + $0xc8] sm:$0xff] }
 0x49b   :  { %v725_v12 = vpop.f32.mrf.mxu0 }
 0x49c   :  { %v1030_v11 = vpack.c.bf16 %v884_v5, %v883_v3  ;;  %v882_v14 = vmul.f32 %v850_v9, %v725_v12 }
 0x49d   :  { %v3751_v16 = vpop.f32.mrf.mxu0 }
 0x49e   :  { %v1029_v15 = vpack.c.bf16 %v882_v14, %v881_v4  ;;  %v887_v3 = vmul.f32 %v3751_v16, %v855_v61  ;;  %v860_v14 = vld [vmem:[#allocation4 + $0xd8] sm:$0xff] }
 0x49f   :  { %v738_v17 = vpop.f32.mrf.mxu0 }
 0x4a0   :  { %3781 = vmatprep.mubr.msk.bf16.mxu1 %vm73_vm0, %v1029_v15 }
 0x4a1   :  { %v3752_v18 = vpop.f32.mrf.mxu0 }
 0x4a2   :  { %v888_v8 = vmul.f32 %v3752_v18, %v856_v49  ;;  %v873_v49 = vld [vmem:[#allocation4 + $0x140] sm:$0xff] }
 0x4a3   :  { %v741_v19 = vpop.f32.mrf.mxu0 }
 0x4a4   :  { %v1032_v9 = vpack.c.bf16 %v888_v8, %v887_v3 }
 0x4a5   :  { %v3755_v23 = vpop.f32.mrf.mxu0 }
 0x4a7   :  { %v754_v25 = vpop.f32.mrf.mxu0 }
 0x4a8   :  { %v889_v4 = vmul.f32 %v857_v62, %v754_v25  ;;  %v863_v25 = vld [vmem:[#allocation4 + $0xf0] sm:$0xff] }
 0x4a9   :  { %v3756_v27 = vpop.f32.mrf.mxu0 }
 0x4ab   :  { %v757_v30 = vpop.f32.mrf.mxu0 }
 0x4ac   :  { %v890_v5 = vmul.f32 %v858_v7, %v757_v30  ;;  %v864_v30 = vld [vmem:[#allocation4 + $0xf8] sm:$0xff] }
 0x4ad   :  { %v4554_v31 = vpop.f32.mrf.mxu0 }
 0x4ae   :  { %v1033_v15 = vpack.c.bf16 %v890_v5, %v889_v4  ;;  %v875_v4 = vld [vmem:[#allocation4 + $0x150] sm:$0xff]  ;;  %v876_v5 = vld [vmem:[#allocation4 + $0x158] sm:$0xff] }
 0x4af   :  { %v770_v32 = vpop.f32.mrf.mxu0 }
 0x4b0   :  { %v993_v55 = vpop.trf.xlu0 }
 0x4b1   :  { %v4556_v34 = vpop.f32.mrf.mxu0 }
 0x4b3   :  { %v773_v36 = vpop.f32.mrf.mxu0 }
 0x4b4   :  { %v994_v29 = vpop.trf.xlu0 }
 0x4b5   :  { %v3995_v56 = vpack.i.bf16 %v994_v29, %v993_v55  ;;  %v4558_v40 = vpop.f32.mrf.mxu0 }
 0x4b7   :  { %3996 = vrot.lane.b32.xlu1 %v3995_v56, %s4345_s12  ;;  %v786_v42 = vpop.f32.mrf.mxu0  ;;  %v853_v56 = vld [vmem:[#allocation4 + $0xa0] sm:$0xff] }
 0x4b8   :  { %v995_v6 = vpop.trf.xlu0 }
 0x4b9   :  { %v4560_v44 = vpop.f32.mrf.mxu0 }
 0x4bc   :  { %v996_v38 = vpop.trf.xlu0 }
 0x4bd   :  { %v4000_v39 = vpack.i.bf16 %v996_v38, %v995_v6  ;;  %v854_v6 = vld [vmem:[#allocation4 + $0xa8] sm:$0xff]  ;;  %v789_v38 = vpop.f32.mrf.mxu0 }
 0x4bf   :  { %4001 = vrot.lane.b32.xlu1 %v4000_v39, %s4345_s12  ;;  %v4566_v1 = vpop.f32.mrf.mxu0 }
 0x4db   :  { %v1667_v0 = vpop.permute.xlu0 %1666 }
 0x4dc   :  { %3813 = vmatprep.subr.bf16.mxu0 %v1667_v0 }
 0x4dd   :  { %3814 = vmatpush3.bf16.msra.mxu0 %v1667_v0 }
 0x4e8   :  { %929 = vxpose.xlu1.b32.start [1/4] (short) (narrow) %v3988_v57, 32  ;;  %v885_v57 = vmul.f32 %v853_v56, %v738_v17  ;;  %v861_v17 = vld [vmem:[#allocation4 + $0xe0] sm:$0xff]  ;;  %v870_v56 = vld [vmem:[#allocation4 + $0x128] sm:$0xff] }
 0x4ec   :  { %930 = vxpose.xlu1.b32.cont [2/4] (short) (narrow) %v3989_v2, 32  ;;  %v886_v2 = vmul.f32 %v854_v6, %v741_v19  ;;  %v862_v19 = vld [vmem:[#allocation4 + $0xe8] sm:$0xff] }
 0x4ee   :  { %v1031_v13 = vpack.c.bf16 %v886_v2, %v885_v57  ;;  %v871_v57 = vld [vmem:[#allocation4 + $0x130] sm:$0xff]  ;;  %v872_v2 = vld [vmem:[#allocation4 + $0x138] sm:$0xff] }
 0x4ef   :  { %v903_v7 = vmul.f32 %v4566_v1, %v871_v57 }
 0x4f0   :  { %931 = vxpose.xlu1.b32.cont [3/4] (short) (narrow) %v3993_v63, 32  ;;  %v802_v63 = vpop.f32.mrf.mxu0 }
 0x4f2   :  { %v3768_v12 = vpop.f32.mrf.mxu0 }
 0x4f3   :  { %v904_v3 = vmul.f32 %v3768_v12, %v872_v2 }
 0x4f4   :  { %932 = vxpose.xlu1.b32.end [4/4] (short) (narrow) %v3994_v10, 32  ;;  %v859_v10 = vld [vmem:[#allocation4 + $0xd0] sm:$0xff] }
 0x4f5   :  { %v1040_v8 = vpack.c.bf16 %v904_v3, %v903_v7 }
 0x529   :  { %v3997_v33 = vpop.permute.xlu1 %3996 }
 0x52a   :  { %v3999_v45 = vunpack.i.h.bf16 %v3997_v33  ;;  %v3998_v20 = vunpack.i.l.bf16 %v3997_v33  ;;  %v805_v33 = vpop.f32.mrf.mxu0 }
 0x52c   :  { %v3771_v16 = vpop.f32.mrf.mxu0 }
 0x531   :  { %v4002_v35 = vpop.permute.xlu1 %4001 }
 0x532   :  { %v4004_v46 = vunpack.i.h.bf16 %v4002_v35  ;;  %v4003_v47 = vunpack.i.l.bf16 %v4002_v35  ;;  %v891_v35 = vmul.f32 %v3755_v23, %v859_v10  ;;  %v877_v10 = vld [vmem:[#allocation4 + $0x160] sm:$0xff] }
 0x564   :  { %v945_v37 = vpop.trf.xlu1 }
 0x565   :  { %v1025_v39 = vsel %vm73_vm0, %v945_v37, %v3998_v20  ;;  %v892_v37 = vmul.f32 %v3756_v27, %v860_v14  ;;  %v896_v20 = vmul.f32 %v4556_v34, %v864_v30 }
 0x567   :  { %v1034_v18 = vpack.c.bf16 %v892_v37, %v891_v35  ;;  %v879_v35 = vld [vmem:[#allocation4 + $0x170] sm:$0xff]  ;;  %v880_v37 = vld [vmem:[#allocation4 + $0x178] sm:$0xff] }
 0x568   :  { %v946_v41 = vpop.trf.xlu1 }
 0x569   :  { %v1026_v53 = vsel %vm73_vm0, %v946_v41, %v3999_v45  ;;  %v893_v41 = vmul.f32 %v861_v17, %v770_v32  ;;  %v865_v45 = vld [vmem:[#allocation4 + $0x100] sm:$0xff]  ;;  %v907_v17 = vmul.f32 %v3771_v16, %v875_v4  ;;  %v1049_v16 = vld [vmem:[#allocation4 + $0x190] sm:$0xff] }
 0x56a   :  { %v1045_v0 = vpack.c.bf16 %v1026_v53, %v1025_v39  ;;  %v897_v23 = vmul.f32 %v865_v45, %v786_v42  ;;  %v867_v53 = vld [vmem:[#allocation4 + $0x110] sm:$0xff]  ;;  %v902_v42 = vmul.f32 %v870_v56, %v805_v33 }
 0x56b   :  { %v899_v39 = vmul.f32 %v4558_v40, %v867_v53 }
 0x56c   :  { %v947_v43 = vpop.trf.xlu1 }
 0x56d   :  { %v1027_v21 = vsel %vm73_vm0, %v947_v43, %v4003_v47  ;;  %v818_v47 = vpop.f32.mrf.mxu0 }
 0x56e   :  { %v905_v40 = vmul.f32 %v873_v49, %v818_v47 }
 0x56f   :  { %v3772_v32 = vpop.f32.mrf.mxu0 }
 0x570   :  { %v948_v50 = vpop.trf.xlu1 }
 0x571   :  { %v1028_v55 = vsel %vm73_vm0, %v948_v50, %v4004_v46  ;;  %v866_v46 = vld [vmem:[#allocation4 + $0x108] sm:$0xff]  ;;  %v895_v50 = vmul.f32 %v4554_v31, %v863_v25  ;;  %v821_v6 = vpop.f32.mrf.mxu0 }
 0x572   :  { %v1046_v29 = vpack.c.bf16 %v1028_v55, %v1027_v21  ;;  %v898_v27 = vmul.f32 %v866_v46, %v789_v38  ;;  %v868_v21 = vld [vmem:[#allocation4 + $0x118] sm:$0xff] }
 0x573   :  { %v900_v31 = vmul.f32 %v4560_v44, %v868_v21 }
 0x574   :  { %3777 = vmatprep.subr.bf16.mxu1 %v1046_v29  ;;  %v1037_v55 = vpack.c.bf16 %v898_v27, %v897_v23  ;;  %v1048_v27 = vld [vmem:[#allocation4 + $0x188] sm:$0xff] }
 0x575   :  { %3778 = vmatpush3.bf16.msra.mxu1 %v1046_v29  ;;  %v869_v29 = vld [vmem:[#allocation4 + $0x120] sm:$0xff]  ;;  %v1038_v38 = vpack.c.bf16 %v900_v31, %v899_v39 }
 0x576   :  { %3779 = vmatprep.subr.bf16.mxu1 %v1045_v0  ;;  %v901_v34 = vmul.f32 %v869_v29, %v802_v63 }
 0x578   :  { %v1039_v61 = vpack.c.bf16 %v902_v42, %v901_v34 }
 0x579   :  { %3780 = vmatpush3.bf16.msra.mxu1 %v1045_v0  ;;  %v3775_v0 = vpop.f32.mrf.mxu0 }
 0x57b   :  { %v834_v62 = vpop.f32.mrf.mxu0 }
 0x57c   :  { %3782 = vmatmul.mubr.msk.bf16.vlgmr.msra.gmra.mxu1 %vm73_vm0, %v1030_v11  ;;  %v894_v11 = vmul.f32 %v862_v19, %v773_v36  ;;  %v1036_v36 = vpack.c.bf16 %v896_v20, %v895_v50  ;;  %v908_v19 = vmul.f32 %v3772_v32, %v876_v5  ;;  %v909_v1 = vmul.f32 %v877_v10, %v834_v62  ;;  %v1050_v20 = vld [vmem:[#allocation4 + $0x198] sm:$0xff] }
 0x57d   :  { %3785 = vmatprep.mubr.msk.bf16.mxu1 %vm73_vm0, %v1031_v13  ;;  %v874_v13 = vld [vmem:[#allocation4 + $0x148] sm:$0xff]  ;;  %v3776_v63 = vpop.f32.mrf.mxu0 }
 0x57e   :  { %v1035_v43 = vpack.c.bf16 %v894_v11, %v893_v41  ;;  %v906_v44 = vmul.f32 %v874_v13, %v821_v6  ;;  %v1042_v33 = vpack.c.bf16 %v908_v19, %v907_v17  ;;  %v911_v11 = vmul.f32 %v3775_v0, %v879_v35 }
 0x57f   :  { %v837_v14 = vpop.f32.mrf.mxu0 }
 0x584   :  { %3786 = vmatmul.mubr.msk.bf16.gmra.mxu1 %vm73_vm0, %v1032_v9  ;;  %v1041_v9 = vpack.c.bf16 %v906_v44, %v905_v40  ;;  %v1054_v40 = vld [vmem:[#allocation4 + $0x1b8] sm:$0xff]  ;;  %v1053_v44 = vld [vmem:[#allocation4 + $0x1b0] sm:$0xff] }
 0x585   :  { %3789 = vmatprep.mubr.msk.bf16.mxu1 %vm73_vm0, %v1033_v15  ;;  %v878_v15 = vld [vmem:[#allocation4 + $0x168] sm:$0xff] }
 0x586   :  { %v910_v12 = vmul.f32 %v878_v15, %v837_v14 }
 0x588   :  { %v1043_v41 = vpack.c.bf16 %v910_v12, %v909_v1  ;;  %v1052_v12 = vld [vmem:[#allocation4 + $0x1a8] sm:$0xff] }
 0x58c   :  { %3790 = vmatmul.mubr.msk.bf16.gmra.mxu1 %vm73_vm0, %v1034_v18  ;;  %v912_v18 = vmul.f32 %v3776_v63, %v880_v37  ;;  %v1058_v63 = vld [vmem:[#allocation4 + $0x1d8] sm:$0xff] }
 0x58d   :  { %3793 = vmatprep.mubr.msk.bf16.mxu1 %vm73_vm0, %v1035_v43  ;;  %v1047_v43 = vld [vmem:[#allocation4 + $0x180] sm:$0xff] }
 0x58e   :  { %v1044_v25 = vpack.c.bf16 %v912_v18, %v911_v11 }
 0x594   :  { %3794 = vmatmul.mubr.msk.bf16.gmra.mxu1 %vm73_vm0, %v1036_v36 }
 0x595   :  { %3797 = vmatprep.mubr.msk.bf16.mxu1 %vm73_vm0, %v1037_v55 }
 0x59c   :  { %3798 = vmatmul.mubr.msk.bf16.gmra.mxu1 %vm73_vm0, %v1038_v38 }
 0x59d   :  { %3801 = vmatprep.mubr.msk.bf16.mxu1 %vm73_vm0, %v1039_v61 }
 0x5a4   :  { %3802 = vmatmul.mubr.msk.bf16.gmra.mxu1 %vm73_vm0, %v1040_v8 }
 0x5a5   :  { %3805 = vmatprep.mubr.msk.bf16.mxu1 %vm73_vm0, %v1041_v9  ;;  %v1051_v9 = vld [vmem:[#allocation4 + $0x1a0] sm:$0xff] }
 0x5ac   :  { %3806 = vmatmul.mubr.msk.bf16.gmra.mxu1 %vm73_vm0, %v1042_v33  ;;  %v1062_v33 = vld [vmem:[#allocation4 + $0x1f8] sm:$0xff] }
 0x5ad   :  { %3809 = vmatprep.mubr.msk.bf16.mxu1 %vm73_vm0, %v1043_v41 }
 0x5b4   :  { %3810 = vmatmul.mubr.msk.bf16.gmra.mxu1 %vm73_vm0, %v1044_v25  ;;  %v1057_v25 = vld [vmem:[#allocation4 + $0x1d0] sm:$0xff] }
 0x63c   :  { %v3783_v30 = vpop.f32.mrf.mxu1 }
 0x63d   :  { %v4588_v45 = vadd.f32 %v3783_v30, %v1049_v16  ;;  %v1060_v16 = vld [vmem:[#allocation4 + $0x1e8] sm:$0xff] }
 0x63e   :  { %v1161_v46 = vpop.f32.mrf.mxu1 }
 0x63f   :  { %v4590_v47 = vadd.f32 %v1161_v46, %v1047_v43  ;;  %v1294_v50 = vsel %vm639_vm1, %v4588_v45, -inf }
 0x640   :  { %1295 = vmax.xlane.f32.xlu0 %v1294_v50  ;;  %v3784_v23 = vpop.f32.mrf.mxu1 }
 0x641   :  { %v4594_v36 = vadd.f32 %v3784_v23, %v1050_v20  ;;  %v1288_v21 = vsel %vm639_vm1, %v4590_v47, -inf  ;;  %v1055_v23 = vld [vmem:[#allocation4 + $0x1c0] sm:$0xff] }
 0x642   :  { %v1164_v32 = vpop.f32.mrf.mxu1 }
 0x643   :  { %v4596_v53 = vadd.f32 %v1164_v32, %v1048_v27  ;;  %v1297_v6 = vsel %vm639_vm1, %v4594_v36, -inf  ;;  %v1066_v27 = vld [vmem:[#allocation4 + $0x218] sm:$0xff] }
 0x644   :  { %1289 = vmax.xlane.f32.xlu0 %v1288_v21  ;;  %v3787_v55 = vpop.f32.mrf.mxu1 }
 0x645   :  { %v1291_v29 = vsel %vm639_vm1, %v4596_v53, -inf }
 0x646   :  { %1292 = vmax.xlane.f32.xlu1 %v1291_v29  ;;  %v1177_v56 = vpop.f32.mrf.mxu1 }
 0x647   :  { %v4626_v15 = vadd.f32 %v1177_v56, %v1051_v9  ;;  %v1068_v9 = vld [vmem:[#allocation4 + $0x228] sm:$0xff] }
 0x648   :  { %1298 = vmax.xlane.f32.xlu0 %v1297_v6  ;;  %v3788_v39 = vpop.f32.mrf.mxu1  ;;  %v1061_v6 = vld [vmem:[#allocation4 + $0x1f0] sm:$0xff] }
 0x649   :  { %v4616_v4 = vadd.f32 %v3788_v39, %v1054_v40  ;;  %v1300_v41 = vsel %vm639_vm1, %v4626_v15, -inf  ;;  %v1064_v39 = vld [vmem:[#allocation4 + $0x208] sm:$0xff]  ;;  %v1065_v40 = vld [vmem:[#allocation4 + $0x210] sm:$0xff] }
 0x64a   :  { %v1180_v31 = vpop.f32.mrf.mxu1 }
 0x64b   :  { %v1309_v14 = vsel %vm639_vm1, %v4616_v4, -inf  ;;  %v4634_v37 = vadd.f32 %v1180_v31, %v1052_v12 }
 0x64c   :  { %v3791_v34 = vpop.f32.mrf.mxu1 }
 0x64d   :  { %v4642_v43 = vadd.f32 %v3791_v34, %v1057_v25  ;;  %v1303_v46 = vsel %vm639_vm1, %v4634_v37, -inf }
 0x64e   :  { %v1193_v42 = vpop.f32.mrf.mxu1 }
 0x64f   :  { %v4652_v21 = vadd.f32 %v1193_v42, %v1055_v23  ;;  %v1067_v23 = vld [vmem:[#allocation4 + $0x220] sm:$0xff] }
 0x650   :  { %v3792_v0 = vpop.f32.mrf.mxu1 }
 0x651   :  { %v4620_v5 = vadd.f32 %v3792_v0, %v1058_v63  ;;  %v1312_v0 = vsel %vm639_vm1, %v4652_v21, -inf }
 0x652   :  { %v1196_v38 = vpop.f32.mrf.mxu1 }
 0x653   :  { %v1321_v1 = vsel %vm639_vm1, %v4620_v5, -inf }
 0x654   :  { %v3795_v57 = vpop.f32.mrf.mxu1 }
 0x655   :  { %v4660_v34 = vadd.f32 %v3795_v57, %v1061_v6 }
 0x656   :  { %v4606_v2 = vpop.f32.mrf.mxu1 }
 0x657   :  { %1664 = vrot.lane.b32.xlu1 %v4524_v22, %s4344_s11  ;;  %v4618_v22 = vadd.f32 %v3787_v55, %v1053_v44  ;;  %v1318_v55 = vsel %vm639_vm1, %v4642_v43, -inf  ;;  %v1330_v57 = vsel %vm639_vm1, %v4660_v34, -inf }
 0x658   :  { %v3796_v61 = vpop.f32.mrf.mxu1 }
 0x659   :  { %v1306_v17 = vsel %vm639_vm1, %v4618_v22, -inf  ;;  %v4640_v18 = vadd.f32 %v3796_v61, %v1062_v33  ;;  %v1059_v61 = vld [vmem:[#allocation4 + $0x1e0] sm:$0xff]  ;;  %v1074_v33 = vld [vmem:[#allocation4 + $0x258] sm:$0xff] }
 0x65a   :  { %v1212_v49 = vpop.f32.mrf.mxu1  ;;  %v4669_v44 = vadd.f32 %v4606_v2, %v1059_v61 }
 0x65b   :  { %v4646_v50 = vadd.f32 %v1212_v49, %v1060_v16  ;;  %v1333_v20 = vsel %vm639_vm1, %v4640_v18, -inf  ;;  %v1070_v49 = vld [vmem:[#allocation4 + $0x238] sm:$0xff] }
 0x65c   :  { %v4610_v13 = vpop.f32.mrf.mxu1  ;;  %v1324_v2 = vsel %vm639_vm1, %v4669_v44, -inf }
 0x65d   :  { %v1327_v29 = vsel %vm639_vm1, %v4646_v50, -inf }
 0x65e   :  { %1662 = vrot.lane.b32.xlu0 %v4527_v24, %s4344_s11  ;;  %v4612_v62 = vpop.f32.mrf.mxu1  ;;  %v1056_v24 = vld [vmem:[#allocation4 + $0x1c8] sm:$0xff] }
 0x65f   :  { %v4630_v19 = vadd.f32 %v1196_v38, %v1056_v24 }
 0x660   :  { %v3800_v7 = vpop.f32.mrf.mxu1 }
 0x661   :  { %v1315_v11 = vsel %vm639_vm1, %v4630_v19, -inf  ;;  %v4658_v56 = vadd.f32 %v3800_v7, %v1066_v27 }
 0x662   :  { %v1228_v3 = vpop.f32.mrf.mxu1 }
 0x663   :  { %v4664_v42 = vadd.f32 %v1228_v3, %v1064_v39  ;;  %v1345_v38 = vsel %vm639_vm1, %v4658_v56, -inf }
 0x664   :  { %v4614_v8 = vpop.f32.mrf.mxu1 }
 0x665   :  { %v1339_v63 = vsel %vm639_vm1, %v4664_v42, -inf }
 0x666   :  { %v4622_v10 = vpop.f32.mrf.mxu1 }
 0x667   :  { %v4705_v39 = vadd.f32 %v4622_v10, %v1067_v23 }
 0x668   :  { %v3804_v35 = vpop.f32.mrf.mxu1 }
 0x669   :  { %v4675_v3 = vadd.f32 %v3804_v35, %v1070_v49  ;;  %v1348_v10 = vsel %vm639_vm1, %v4705_v39, -inf }
 0x66a   :  { %v1244_v30 = vpop.f32.mrf.mxu1 }
 0x66b   :  { %v1357_v12 = vsel %vm639_vm1, %v4675_v3, -inf }
 0x66c   :  { %v4650_v32 = vpop.f32.mrf.mxu1 }
 0x66e   :  { %v1257_v31 = vpop.f32.mrf.mxu1 }
 0x670   :  { %v3808_v7 = vpop.f32.mrf.mxu1 }
 0x671   :  { %v4693_v16 = vadd.f32 %v3808_v7, %v1074_v33  ;;  %v1076_v7 = vld [vmem:[#allocation4 + $0x268] sm:$0xff] }
 0x672   :  { %v1260_v24 = vpop.f32.mrf.mxu1 }
 0x674   :  { %v3811_v35 = vpop.f32.mrf.mxu1 }
 0x67b   :  { %1310 = vmax.xlane.f32.xlu1 %v1309_v14  ;;  %v4678_v14 = vadd.f32 %v4610_v13, %v1065_v40 }
 0x67d   :  { %1307 = vmax.xlane.f32.xlu0 %v1306_v17  ;;  %v1063_v17 = vld [vmem:[#allocation4 + $0x200] sm:$0xff]  ;;  %v1342_v13 = vsel %vm639_vm1, %v4678_v14, -inf }
 0x67f   :  { %1322 = vmax.xlane.f32.xlu1 %v1321_v1  ;;  %v4682_v1 = vadd.f32 %v1244_v30, %v1068_v9  ;;  %v1072_v30 = vld [vmem:[#allocation4 + $0x248] sm:$0xff] }
 0x680   :  { %v4700_v27 = vadd.f32 %v1260_v24, %v1072_v30 }
 0x681   :  { %1301 = vmax.xlane.f32.xlu0 %v1300_v41  ;;  %v4687_v41 = vadd.f32 %v4612_v62, %v1063_v17  ;;  %v1351_v25 = vsel %vm639_vm1, %v4682_v1, -inf }
 0x683   :  { %1316 = vmax.xlane.f32.xlu1 %v1315_v11  ;;  %v1069_v11 = vld [vmem:[#allocation4 + $0x230] sm:$0xff]  ;;  %v1336_v62 = vsel %vm639_vm1, %v4687_v41, -inf }
 0x685   :  { %1304 = vmax.xlane.f32.xlu0 %v1303_v46  ;;  %v1273_v46 = vpop.f32.mrf.mxu1 }
 0x687   :  { %1334 = vmax.xlane.f32.xlu1 %v1333_v20  ;;  %v4696_v20 = vadd.f32 %v4614_v8, %v1069_v11  ;;  %v3812_v6 = vpop.f32.mrf.mxu1 }
 0x689   :  { %1319 = vmax.xlane.f32.xlu0 %v1318_v55  ;;  %v1369_v55 = vsel %vm639_vm1, %v4693_v16, -inf  ;;  %v1354_v8 = vsel %vm639_vm1, %v4696_v20, -inf  ;;  %v1276_v49 = vpop.f32.mrf.mxu1 }
 0x68a   :  { %v4720_v9 = vadd.f32 %v1276_v49, %v1076_v7 }
 0x68b   :  { %1328 = vmax.xlane.f32.xlu1 %v1327_v29  ;;  %v1078_v29 = vld [vmem:[#allocation4 + $0x278] sm:$0xff] }
 0x68c   :  { %v4711_v61 = vadd.f32 %v3812_v6, %v1078_v29 }
 0x68d   :  { %1313 = vmax.xlane.f32.xlu0 %v1312_v0  ;;  %v1073_v0 = vld [vmem:[#allocation4 + $0x250] sm:$0xff] }
 0x68e   :  { %v4714_v40 = vadd.f32 %v4650_v32, %v1073_v0  ;;  %v1375_v32 = vsel %vm639_vm1, %v4720_v9, -inf }
 0x68f   :  { %1346 = vmax.xlane.f32.xlu1 %v1345_v38  ;;  %v1363_v38 = vsel %vm639_vm1, %v4700_v27, -inf }
 0x690   :  { %v1366_v17 = vsel %vm639_vm1, %v4714_v40, -inf }
 0x691   :  { %1331 = vmax.xlane.f32.xlu0 %v1330_v57  ;;  %v1071_v57 = vld [vmem:[#allocation4 + $0x240] sm:$0xff] }
 0x692   :  { %v4722_v24 = vadd.f32 %v1257_v31, %v1071_v57 }
 0x693   :  { %1340 = vmax.xlane.f32.xlu1 %v1339_v63  ;;  %v1381_v63 = vsel %vm639_vm1, %v4711_v61, -inf }
 0x694   :  { %v1360_v33 = vsel %vm639_vm1, %v4722_v24, -inf }
 0x695   :  { %1325 = vmax.xlane.f32.xlu0 %v1324_v2  ;;  %v1077_v2 = vld [vmem:[#allocation4 + $0x270] sm:$0xff] }
 0x697   :  { %1358 = vmax.xlane.f32.xlu1 %v1357_v12  ;;  %v4728_v12 = vadd.f32 %v3811_v35, %v1077_v2 }
 0x699   :  { %1343 = vmax.xlane.f32.xlu0 %v1342_v13  ;;  %v1075_v13 = vld [vmem:[#allocation4 + $0x260] sm:$0xff]  ;;  %v1378_v31 = vsel %vm639_vm1, %v4728_v12, -inf }
 0x69a   :  { %v4732_v11 = vadd.f32 %v1273_v46, %v1075_v13 }
 0x69b   :  { %1352 = vmax.xlane.f32.xlu1 %v1351_v25 }
 0x69c   :  { %v1372_v25 = vsel %vm639_vm1, %v4732_v11, -inf }
 0x69d   :  { %1337 = vmax.xlane.f32.xlu0 %v1336_v62 }
 0x69f   :  { %1370 = vmax.xlane.f32.xlu1 %v1369_v55 }
 0x6a1   :  { %1355 = vmax.xlane.f32.xlu0 %v1354_v8 }
 0x6a3   :  { %1364 = vmax.xlane.f32.xlu1 %v1363_v38 }
 0x6a5   :  { %1349 = vmax.xlane.f32.xlu0 %v1348_v10 }
 0x6a7   :  { %1382 = vmax.xlane.f32.xlu1 %v1381_v63 }
 0x6a9   :  { %1367 = vmax.xlane.f32.xlu0 %v1366_v17 }
 0x6ab   :  { %1376 = vmax.xlane.f32.xlu1 %v1375_v32 }
 0x6ad   :  { %1361 = vmax.xlane.f32.xlu0 %v1360_v33 }
 0x6b1   :  { %1379 = vmax.xlane.f32.xlu0 %v1378_v31 }
 0x6b5   :  { %1373 = vmax.xlane.f32.xlu0 %v1372_v25 }
 0x6c9   :  { %v1296_v30 = vpop.xlane.xlu0 %1295 }
 0x6ca   :  { %v1386_v35 = vsub.f32 %v4588_v45, %v1296_v30 }
 0x6cc   :  { %v1420_v62 = vmul.f32 1.442695, %v1386_v35 }
 0x6cd   :  { %v1290_v23 = vpop.xlane.xlu0 %1289 }
 0x6ce   :  { %4087 = vpow2.f32 %v1420_v62  ;;  %v1384_v55 = vsub.f32 %v4590_v47, %v1290_v23 }
 0x6cf   :  { %v1293_v29 = vpop.xlane.xlu1 %1292 }
 0x6d0   :  { %v1416_v6 = vmul.f32 1.442695, %v1384_v55  ;;  %v1385_v46 = vsub.f32 %v4596_v53, %v1293_v29 }
 0x6d1   :  { %v1299_v8 = vpop.xlane.xlu0 %1298 }
 0x6d2   :  { %4089 = vpow2.f32 %v1416_v6  ;;  %v1387_v0 = vsub.f32 %v4594_v36, %v1299_v8  ;;  %v1418_v49 = vmul.f32 1.442695, %v1385_v46 }
 0x6d3   :  { %v1665_v38 = vpop.permute.xlu1 %1664 }
 0x6d4   :  { %v1422_v7 = vmul.f32 1.442695, %v1387_v0  ;;  %3815 = vmatprep.subr.bf16.mxu0 %v1665_v38 }
 0x6d5   :  { %3816 = vmatpush3.bf16.msra.mxu0 %v1665_v38  ;;  %v1663_v10 = vpop.permute.xlu0 %1662 }
 0x6d6   :  { %4091 = vpow2.f32 %v1422_v7  ;;  %3817 = vmatprep.subr.bf16.mxu0 %v1663_v10 }
 0x6d7   :  { %4093 = vpow2.f32 %v1418_v49 }
 0x6d9   :  { %3818 = vmatpush3.bf16.msra.mxu0 %v1663_v10 }
 0x6db   :  { %v4742_v45 = vpop.eup %4087 }
 0x6dc   :  { %v1486_v47 = vsel %vm639_vm1, %v4742_v45, 0.0 }
 0x6dd   :  { %1487 = vadd.xlane.f32.xlu0 %v1486_v47 }
 0x6df   :  { %v4746_v53 = vpop.eup %4089 }
 0x6e0   :  { %v1480_v36 = vsel %vm639_vm1, %v4746_v53, 0.0 }
 0x6e1   :  { %1481 = vadd.xlane.f32.xlu0 %v1480_v36 }
 0x6e3   :  { %v4750_v57 = vpop.eup %4091 }
 0x6e4   :  { %v1489_v63 = vsel %vm639_vm1, %v4750_v57, 0.0  ;;  %v4754_v17 = vpop.eup %4093 }
 0x6e5   :  { %1490 = vadd.xlane.f32.xlu1 %v1489_v63  ;;  %v1483_v2 = vsel %vm639_vm1, %v4754_v17, 0.0 }
 0x6e9   :  { %1484 = vadd.xlane.f32.xlu1 %v1483_v2 }
 0x704   :  { %v1311_v32 = vpop.xlane.xlu1 %1310 }
 0x705   :  { %v1391_v33 = vsub.f32 %v4616_v4, %v1311_v32 }
 0x706   :  { %v1308_v13 = vpop.xlane.xlu0 %1307 }
 0x707   :  { %v1430_v31 = vmul.f32 1.442695, %v1391_v33  ;;  %v1390_v25 = vsub.f32 %v4618_v22, %v1308_v13 }
 0x708   :  { %v1323_v30 = vpop.xlane.xlu1 %1322 }
 0x709   :  { %4095 = vpow2.f32 %v1430_v31  ;;  %v1428_v35 = vmul.f32 1.442695, %v1390_v25  ;;  %v1395_v22 = vsub.f32 %v4620_v5, %v1323_v30 }
 0x70a   :  { %v1302_v62 = vpop.xlane.xlu0 %1301 }
 0x70b   :  { %4097 = vpow2.f32 %v1428_v35  ;;  %v1388_v23 = vsub.f32 %v4626_v15, %v1302_v62 }
 0x70c   :  { %v1317_v29 = vpop.xlane.xlu1 %1316 }
 0x70d   :  { %v1424_v55 = vmul.f32 1.442695, %v1388_v23  ;;  %v1393_v63 = vsub.f32 %v4630_v19, %v1317_v29 }
 0x70e   :  { %v1305_v6 = vpop.xlane.xlu0 %1304 }
 0x70f   :  { %4099 = vpow2.f32 %v1424_v55  ;;  %v1389_v46 = vsub.f32 %v4634_v37, %v1305_v6  ;;  %v1438_v37 = vmul.f32 1.442695, %v1395_v22  ;;  %v1434_v31 = vmul.f32 1.442695, %v1393_v63 }
 0x710   :  { %v1335_v38 = vpop.xlane.xlu1 %1334 }
 0x711   :  { %v1426_v8 = vmul.f32 1.442695, %v1389_v46  ;;  %v1399_v13 = vsub.f32 %v4640_v18, %v1335_v38 }
 0x712   :  { %v1320_v0 = vpop.xlane.xlu0 %1319 }
 0x713   :  { %4101 = vpow2.f32 %v1426_v8  ;;  %v1394_v4 = vsub.f32 %v4642_v43, %v1320_v0 }
 0x714   :  { %v1329_v2 = vpop.xlane.xlu1 %1328 }
 0x715   :  { %v1436_v49 = vmul.f32 1.442695, %v1394_v4  ;;  %v1397_v25 = vsub.f32 %v4646_v50, %v1329_v2 }
 0x716   :  { %v4764_v7 = vpop.eup %4095  ;;  %v1314_v10 = vpop.xlane.xlu0 %1313 }
 0x717   :  { %4103 = vpow2.f32 %v1436_v49  ;;  %v1392_v15 = vsub.f32 %v4652_v21, %v1314_v10  ;;  %v1501_v47 = vsel %vm639_vm1, %v4764_v7, 0.0  ;;  %v1442_v55 = vmul.f32 1.442695, %v1397_v25 }
 0x718   :  { %v4769_v36 = vpop.eup %4097  ;;  %1502 = vadd.xlane.f32.xlu1 %v1501_v47  ;;  %v1347_v50 = vpop.xlane.xlu1 %1346 }
 0x719   :  { %v1432_v43 = vmul.f32 1.442695, %v1392_v15  ;;  %v1498_v5 = vsel %vm639_vm1, %v4769_v36, 0.0  ;;  %v1403_v10 = vsub.f32 %v4658_v56, %v1347_v50 }
 0x71a   :  { %v1332_v32 = vpop.xlane.xlu0 %1331  ;;  %1499 = vadd.xlane.f32.xlu0 %v1498_v5 }
 0x71b   :  { %4105 = vpow2.f32 %v1432_v43  ;;  %v1398_v33 = vsub.f32 %v4660_v34, %v1332_v32  ;;  %v1446_v34 = vmul.f32 1.442695, %v1399_v13  ;;  %v1454_v5 = vmul.f32 1.442695, %v1403_v10 }
 0x71c   :  { %v4775_v21 = vpop.eup %4099  ;;  %4107 = vpow2.f32 %v1438_v37  ;;  %v1341_v15 = vpop.xlane.xlu1 %1340 }
 0x71d   :  { %v1444_v30 = vmul.f32 1.442695, %v1398_v33  ;;  %v1492_v19 = vsel %vm639_vm1, %v4775_v21, 0.0  ;;  %v1401_v43 = vsub.f32 %v4664_v42, %v1341_v15 }
 0x71e   :  { %v1326_v35 = vpop.xlane.xlu0 %1325  ;;  %1493 = vadd.xlane.f32.xlu0 %v1492_v19 }
 0x71f   :  { %4109 = vpow2.f32 %v1444_v30  ;;  %v1396_v62 = vsub.f32 %v4669_v44, %v1326_v35  ;;  %v1450_v13 = vmul.f32 1.442695, %v1401_v43 }
 0x720   :  { %v4782_v23 = vpop.eup %4101  ;;  %4111 = vpow2.f32 %v1434_v31  ;;  %v1359_v31 = vpop.xlane.xlu1 %1358 }
 0x721   :  { %v1440_v29 = vmul.f32 1.442695, %v1396_v62  ;;  %v1495_v18 = vsel %vm639_vm1, %v4782_v23, 0.0  ;;  %v1407_v50 = vsub.f32 %v4675_v3, %v1359_v31 }
 0x722   :  { %v1344_v6 = vpop.xlane.xlu0 %1343  ;;  %1496 = vadd.xlane.f32.xlu1 %v1495_v18 }
 0x723   :  { %4113 = vpow2.f32 %v1440_v29  ;;  %v1402_v46 = vsub.f32 %v4678_v14, %v1344_v6 }
 0x724   :  { %v4787_v8 = vpop.eup %4103  ;;  %4115 = vpow2.f32 %v1446_v34  ;;  %v1353_v18 = vpop.xlane.xlu1 %1352 }
 0x725   :  { %4117 = vpow2.f32 %v1442_v55  ;;  %v1452_v44 = vmul.f32 1.442695, %v1402_v46  ;;  %v1510_v0 = vsel %vm639_vm1, %v4787_v8, 0.0 }
 0x726   :  { %v1338_v4 = vpop.xlane.xlu0 %1337  ;;  %1511 = vadd.xlane.f32.xlu1 %v1510_v0 }
 0x727   :  { %v1400_v22 = vsub.f32 %v4687_v41, %v1338_v4  ;;  %4119 = vpow2.f32 %v1452_v44  ;;  %v1462_v4 = vmul.f32 1.442695, %v1407_v50 }
 0x728   :  { %v4792_v38 = vpop.eup %4105  ;;  %v1371_v0 = vpop.xlane.xlu1 %1370 }
 0x729   :  { %v4794_v49 = vpop.eup %4107  ;;  %v1448_v14 = vmul.f32 1.442695, %v1400_v22  ;;  %v1504_v47 = vsel %vm639_vm1, %v4792_v38, 0.0 }
 0x72a   :  { %v1356_v37 = vpop.xlane.xlu0 %1355  ;;  %1505 = vadd.xlane.f32.xlu1 %v1504_v47  ;;  %v1513_v41 = vsel %vm639_vm1, %v4794_v49, 0.0 }
 0x72b   :  { %4121 = vpow2.f32 %v1448_v14  ;;  %v1406_v62 = vsub.f32 %v4696_v20, %v1356_v37 }
 0x72c   :  { %v4799_v63 = vpop.eup %4109  ;;  %4123 = vpow2.f32 %v1454_v5  ;;  %v1365_v5 = vpop.xlane.xlu1 %1364 }
 0x72d   :  { %v1522_v56 = vsel %vm639_vm1, %v4799_v63, 0.0  ;;  %v4806_v2 = vpop.eup %4111  ;;  %4125 = vpow2.f32 %v1450_v13  ;;  %v1460_v46 = vmul.f32 1.442695, %v1406_v62 }
 0x72e   :  { %v1350_v32 = vpop.xlane.xlu0 %1349  ;;  %1514 = vadd.xlane.f32.xlu1 %v1513_v41  ;;  %1523 = vadd.xlane.f32.xlu0 %v1522_v56  ;;  %v1507_v30 = vsel %vm639_vm1, %v4806_v2, 0.0 }
 0x72f   :  { %v1404_v42 = vsub.f32 %v4705_v39, %v1350_v32 }
 0x730   :  { %v4808_v33 = vpop.eup %4113  ;;  %v1383_v31 = vpop.xlane.xlu1 %1382 }
 0x731   :  { %v4810_v25 = vpop.eup %4115  ;;  %v1516_v19 = vsel %vm639_vm1, %v4808_v33, 0.0  ;;  %v1456_v34 = vmul.f32 1.442695, %v1404_v42 }
 0x732   :  { %v4817_v35 = vpop.eup %4117  ;;  %1508 = vadd.xlane.f32.xlu1 %v1507_v30  ;;  %1517 = vadd.xlane.f32.xlu0 %v1516_v19  ;;  %v1525_v39 = vsel %vm639_vm1, %v4810_v25, 0.0  ;;  %v1368_v6 = vpop.xlane.xlu0 %1367 }
 0x733   :  { %v1519_v55 = vsel %vm639_vm1, %v4817_v35, 0.0  ;;  %4127 = vpow2.f32 %v1456_v34  ;;  %v1410_v22 = vsub.f32 %v4714_v40, %v1368_v6  ;;  %v1411_v40 = vsub.f32 %v4693_v16, %v1371_v0 }
 0x734   :  { %v4824_v29 = vpop.eup %4119  ;;  %4129 = vpow2.f32 %v1460_v46 }
 0x735   :  { %v1534_v20 = vsel %vm639_vm1, %v4824_v29, 0.0  ;;  %4131 = vpow2.f32 %v1462_v4  ;;  %v1468_v47 = vmul.f32 1.442695, %v1410_v22  ;;  %v1470_v42 = vmul.f32 1.442695, %v1411_v40 }
 0x736   :  { %1520 = vadd.xlane.f32.xlu1 %v1519_v55  ;;  %1526 = vadd.xlane.f32.xlu0 %v1525_v39  ;;  %v1362_v14 = vpop.xlane.xlu0 %1361 }
 0x737   :  { %v1408_v37 = vsub.f32 %v4722_v24, %v1362_v14  ;;  %4133 = vpow2.f32 %v1468_v47  ;;  %v1409_v24 = vsub.f32 %v4700_v27, %v1365_v5  ;;  %v1377_v27 = vpop.xlane.xlu1 %1376 }
 0x738   :  { %v4829_v44 = vpop.eup %4121  ;;  %v1413_v6 = vsub.f32 %v4720_v9, %v1377_v27 }
 0x739   :  { %v1528_v10 = vsel %vm639_vm1, %v4829_v44, 0.0  ;;  %v4834_v15 = vpop.eup %4123  ;;  %v1464_v56 = vmul.f32 1.442695, %v1408_v37  ;;  %v1466_v16 = vmul.f32 1.442695, %v1409_v24 }
 0x73a   :  { %1535 = vadd.xlane.f32.xlu1 %v1534_v20  ;;  %v4836_v3 = vpop.eup %4125  ;;  %v1537_v43 = vsel %vm639_vm1, %v4834_v15, 0.0  ;;  %v1380_v41 = vpop.xlane.xlu0 %1379  ;;  %v1474_v0 = vmul.f32 1.442695, %v1413_v6 }
 0x73b   :  { %v1531_v32 = vsel %vm639_vm1, %v4836_v3, 0.0  ;;  %4135 = vpow2.f32 %v1464_v56  ;;  %v1414_v9 = vsub.f32 %v4728_v12, %v1380_v41 }
 0x73c   :  { %4137 = vpow2.f32 %v1470_v42 }
 0x73d   :  { %4139 = vpow2.f32 %v1466_v16 }
 0x73e   :  { %1529 = vadd.xlane.f32.xlu1 %v1528_v10  ;;  %v1374_v62 = vpop.xlane.xlu0 %1373 }
 0x73f   :  { %v1412_v34 = vsub.f32 %v4732_v11, %v1374_v62  ;;  %v1415_v11 = vsub.f32 %v4711_v61, %v1383_v31  ;;  %v1476_v61 = vmul.f32 1.442695, %v1414_v9 }
 0x740   :  { %v4844_v13 = vpop.eup %4127 }
 0x741   :  { %v1540_v30 = vsel %vm639_vm1, %v4844_v13, 0.0  ;;  %v4849_v19 = vpop.eup %4129  ;;  %v1472_v50 = vmul.f32 1.442695, %v1412_v34  ;;  %v1478_v14 = vmul.f32 1.442695, %v1415_v11 }
 0x742   :  { %1538 = vadd.xlane.f32.xlu1 %v1537_v43  ;;  %v1546_v55 = vsel %vm639_vm1, %v4849_v19, 0.0  ;;  %v4856_v39 = vpop.eup %4131 }
 0x743   :  { %v1549_v46 = vsel %vm639_vm1, %v4856_v39, 0.0  ;;  %4141 = vpow2.f32 %v1472_v50 }
 0x744   :  { %v4861_v20 = vpop.eup %4133  ;;  %4143 = vpow2.f32 %v1474_v0 }
 0x745   :  { %v1558_v4 = vsel %vm639_vm1, %v4861_v20, 0.0 }
 0x746   :  { %1532 = vadd.xlane.f32.xlu1 %v1531_v32 }
 0x748   :  { %v4867_v22 = vpop.eup %4135 }
 0x749   :  { %v1552_v47 = vsel %vm639_vm1, %v4867_v22, 0.0 }
 0x74a   :  { %1541 = vadd.xlane.f32.xlu1 %v1540_v30 }
 0x74c   :  { %1660 = vrot.lane.b32.xlu0 %v4531_v26, %s4344_s11  ;;  %v1405_v26 = vsub.f32 %v4682_v1, %v1353_v18  ;;  %v4872_v1 = vpop.eup %4137 }
 0x74d   :  { %v1561_v18 = vsel %vm639_vm1, %v4872_v1, 0.0  ;;  %v4876_v37 = vpop.eup %4139 }
 0x74e   :  { %1547 = vadd.xlane.f32.xlu1 %v1546_v55  ;;  %v1458_v10 = vmul.f32 1.442695, %v1405_v26  ;;  %v1555_v12 = vsel %vm639_vm1, %v4876_v37, 0.0 }
 0x750   :  { %4145 = vpow2.f32 %v1458_v10  ;;  %v4880_v43 = vpop.eup %4141 }
 0x751   :  { %4147 = vpow2.f32 %v1478_v14  ;;  %v1564_v5 = vsel %vm639_vm1, %v4880_v43, 0.0  ;;  %v4884_v41 = vpop.eup %4143 }
 0x752   :  { %1550 = vadd.xlane.f32.xlu1 %v1549_v46  ;;  %4149 = vpow2.f32 %v1476_v61  ;;  %v1567_v32 = vsel %vm639_vm1, %v4884_v41, 0.0 }
 0x756   :  { %1559 = vadd.xlane.f32.xlu1 %v1558_v4 }
 0x75a   :  { %1553 = vadd.xlane.f32.xlu1 %v1552_v47 }
 0x75d   :  { %v4886_v40 = vpop.eup %4145 }
 0x75e   :  { %1562 = vadd.xlane.f32.xlu1 %v1561_v18  ;;  %v4890_v31 = vpop.eup %4147  ;;  %v1543_v42 = vsel %vm639_vm1, %v4886_v40, 0.0 }
 0x75f   :  { %v4894_v24 = vpop.eup %4149  ;;  %v1573_v30 = vsel %vm639_vm1, %v4890_v31, 0.0 }
 0x760   :  { %v1570_v34 = vsel %vm639_vm1, %v4894_v24, 0.0 }
 0x762   :  { %1556 = vadd.xlane.f32.xlu1 %v1555_v12 }
 0x766   :  { %1565 = vadd.xlane.f32.xlu1 %v1564_v5  ;;  %v1488_v56 = vpop.xlane.xlu0 %1487 }
 0x767   :  { %4151 = vrcp.f32 %v1488_v56 }
 0x76a   :  { %1568 = vadd.xlane.f32.xlu1 %v1567_v32  ;;  %v1482_v62 = vpop.xlane.xlu0 %1481 }
 0x76b   :  { %1544 = vadd.xlane.f32.xlu0 %v1543_v42 }
 0x76e   :  { %v1491_v16 = vpop.xlane.xlu1 %1490  ;;  %1574 = vadd.xlane.f32.xlu1 %v1573_v30 }
 0x76f   :  { %4153 = vrcp.f32 %v1491_v16  ;;  %1571 = vadd.xlane.f32.xlu0 %v1570_v34 }
 0x770   :  { %4155 = vrcp.f32 %v1482_v62 }
 0x772   :  { %v1485_v55 = vpop.xlane.xlu1 %1484 }
 0x773   :  { %4157 = vrcp.f32 %v1485_v55 }
 0x774   :  { %v4152_v27 = vpop.eup %4151 }
 0x775   :  { %v1610_v50 = vmul.f32 %v4152_v27, %v4742_v45 }
 0x77c   :  { %v4154_v6 = vpop.eup %4153 }
 0x77d   :  { %v1611_v46 = vmul.f32 %v4154_v6, %v4750_v57  ;;  %v4156_v26 = vpop.eup %4155 }
 0x77e   :  { %v1608_v4 = vmul.f32 %v4156_v26, %v4746_v53 }
 0x77f   :  { %v1641_v11 = vpack.c.bf16 %v1611_v46, %v1610_v50 }
 0x780   :  { %v4158_v0 = vpop.eup %4157 }
 0x781   :  { %v1609_v10 = vmul.f32 %v4158_v0, %v4754_v17 }
 0x783   :  { %v1640_v9 = vpack.c.bf16 %v1609_v10, %v1608_v4 }
 0x785   :  { %3821 = vmatprep.mubr.msk.bf16.mxu0 %vm639_vm1, %v1640_v9 }
 0x7a1   :  { %v1503_v14 = vpop.xlane.xlu1 %1502 }
 0x7a3   :  { %v1500_v61 = vpop.xlane.xlu0 %1499 }
 0x7a7   :  { %v1494_v12 = vpop.xlane.xlu0 %1493 }
 0x7ab   :  { %v1497_v47 = vpop.xlane.xlu1 %1496 }
 0x7ac   :  { %4159 = vrcp.f32 %v1497_v47 }
 0x7ad   :  { %4161 = vrcp.f32 %v1494_v12 }
 0x7ae   :  { %4163 = vrcp.f32 %v1500_v61 }
 0x7af   :  { %v1512_v18 = vpop.xlane.xlu1 %1511  ;;  %4165 = vrcp.f32 %v1503_v14 }
 0x7b3   :  { %v1506_v5 = vpop.xlane.xlu1 %1505 }
 0x7b7   :  { %v1515_v45 = vpop.xlane.xlu1 %1514  ;;  %v1524_v57 = vpop.xlane.xlu0 %1523 }
 0x7b9   :  { %v4160_v42 = vpop.eup %4159 }
 0x7ba   :  { %v4162_v30 = vpop.eup %4161  ;;  %v1613_v34 = vmul.f32 %v4160_v42, %v4782_v23 }
 0x7bb   :  { %v1509_v56 = vpop.xlane.xlu1 %1508  ;;  %v1518_v32 = vpop.xlane.xlu0 %1517  ;;  %v1612_v55 = vmul.f32 %v4162_v30, %v4775_v21 }
 0x7bc   :  { %4167 = vrcp.f32 %v1509_v56  ;;  %v4164_v27 = vpop.eup %4163 }
 0x7bd   :  { %4169 = vrcp.f32 %v1506_v5  ;;  %v1642_v50 = vpack.c.bf16 %v1613_v34, %v1612_v55  ;;  %v4166_v46 = vpop.eup %4165  ;;  %v1614_v4 = vmul.f32 %v4164_v27, %v4769_v36 }
 0x7be   :  { %4171 = vrcp.f32 %v1515_v45  ;;  %v1615_v9 = vmul.f32 %v4166_v46, %v4764_v7 }
 0x7bf   :  { %v1521_v53 = vpop.xlane.xlu1 %1520  ;;  %v1527_v17 = vpop.xlane.xlu0 %1526 }
 0x7c0   :  { %4173 = vrcp.f32 %v1521_v53  ;;  %v1643_v14 = vpack.c.bf16 %v1615_v9, %v1614_v4 }
 0x7c1   :  { %4175 = vrcp.f32 %v1512_v18 }
 0x7c2   :  { %4177 = vrcp.f32 %v1518_v32 }
 0x7c3   :  { %v1536_v62 = vpop.xlane.xlu1 %1535  ;;  %v1661_v16 = vpop.permute.xlu0 %1660  ;;  %4179 = vrcp.f32 %v1527_v17 }
 0x7c4   :  { %3819 = vmatprep.subr.bf16.mxu0 %v1661_v16  ;;  %4181 = vrcp.f32 %v1524_v57 }
 0x7c5   :  { %3820 = vmatpush3.bf16.msra.mxu0 %v1661_v16 }
 0x7c7   :  { %v1530_v6 = vpop.xlane.xlu1 %1529 }
 0x7c8   :  { %3822 = vmatmul.mubr.msk.bf16.vlgmr.msra.gmra.mxu0 %vm639_vm1, %v1641_v11  ;;  %4183 = vrcp.f32 %v1530_v6 }
 0x7c9   :  { %v4168_v26 = vpop.eup %4167  ;;  %3825 = vmatprep.mubr.msk.bf16.mxu0 %vm639_vm1, %v1642_v50 }
 0x7ca   :  { %v4170_v0 = vpop.eup %4169  ;;  %v1617_v10 = vmul.f32 %v4168_v26, %v4806_v2 }
 0x7cb   :  { %v1539_v23 = vpop.xlane.xlu1 %1538  ;;  %v1616_v21 = vmul.f32 %v4170_v0, %v4792_v38  ;;  %v4172_v47 = vpop.eup %4171 }
 0x7cc   :  { %v1619_v2 = vmul.f32 %v4172_v47, %v4794_v49 }
 0x7cd   :  { %v1644_v11 = vpack.c.bf16 %v1617_v10, %v1616_v21  ;;  %v4174_v18 = vpop.eup %4173 }
 0x7ce   :  { %v4176_v12 = vpop.eup %4175  ;;  %v1621_v7 = vmul.f32 %v4174_v18, %v4817_v35 }
 0x7cf   :  { %v1533_v61 = vpop.xlane.xlu1 %1532  ;;  %v4178_v36 = vpop.eup %4177  ;;  %v1618_v38 = vmul.f32 %v4176_v12, %v4787_v8 }
 0x7d0   :  { %4185 = vrcp.f32 %v1533_v61  ;;  %3826 = vmatmul.mubr.msk.bf16.gmra.mxu0 %vm639_vm1, %v1643_v14  ;;  %v1620_v45 = vmul.f32 %v4178_v36, %v4808_v33  ;;  %v4180_v56 = vpop.eup %4179 }
 0x7d1   :  { %3829 = vmatprep.mubr.msk.bf16.mxu0 %vm639_vm1, %v1644_v11  ;;  %4187 = vrcp.f32 %v1539_v23  ;;  %v1645_v57 = vpack.c.bf16 %v1619_v2, %v1618_v38  ;;  %v4182_v17 = vpop.eup %4181  ;;  %v1623_v42 = vmul.f32 %v4180_v56, %v4810_v25 }
 0x7d2   :  { %4189 = vrcp.f32 %v1536_v62  ;;  %v1646_v53 = vpack.c.bf16 %v1621_v7, %v1620_v45  ;;  %v1622_v35 = vmul.f32 %v4182_v17, %v4799_v63 }
 0x7d3   :  { %v1542_v5 = vpop.xlane.xlu1 %1541 }
 0x7d4   :  { %v1647_v16 = vpack.c.bf16 %v1623_v42, %v1622_v35  ;;  %4191 = vrcp.f32 %v1542_v5  ;;  %v4263_v35 = vld [vmem:[#allocation4 + $0x90] sm:$0xff] }
 0x7d5   :  { %v4184_v49 = vpop.eup %4183 }
 0x7d6   :  { %v1624_v8 = vmul.f32 %v4184_v49, %v4829_v44 }
 0x7d7   :  { %v1548_v32 = vpop.xlane.xlu1 %1547 }
 0x7d8   :  { %3830 = vmatmul.mubr.msk.bf16.gmra.mxu0 %vm639_vm1, %v1645_v57  ;;  %4193 = vrcp.f32 %v1548_v32 }
 0x7d9   :  { %3833 = vmatprep.mubr.msk.bf16.mxu0 %vm639_vm1, %v1646_v53 }
 0x7db   :  { %v1551_v30 = vpop.xlane.xlu1 %1550 }
 0x7dc   :  { %4195 = vrcp.f32 %v1551_v30 }
 0x7dd   :  { %v4186_v62 = vpop.eup %4185 }
 0x7de   :  { %v1625_v33 = vmul.f32 %v4186_v62, %v4836_v3  ;;  %v4188_v34 = vpop.eup %4187 }
 0x7df   :  { %v1560_v55 = vpop.xlane.xlu1 %1559  ;;  %v4190_v6 = vpop.eup %4189  ;;  %v1627_v25 = vmul.f32 %v4188_v34, %v4834_v15  ;;  %v4265_v34 = vld [vmem:[#allocation4 + $0x80] sm:$0xff] }
 0x7e0   :  { %3834 = vmatmul.mubr.msk.bf16.gmra.mxu0 %vm639_vm1, %v1647_v16  ;;  %v1648_v27 = vpack.c.bf16 %v1625_v33, %v1624_v8  ;;  %v1626_v46 = vmul.f32 %v4190_v6, %v4824_v29  ;;  %v4264_v16 = vld [vmem:[#allocation4 + $0x98] sm:$0xff] }
 0x7e1   :  { %v4192_v15 = vpop.eup %4191 }
 0x7e2   :  { %3837 = vmatprep.mubr.msk.bf16.mxu0 %vm639_vm1, %v1648_v27  ;;  %v1649_v63 = vpack.c.bf16 %v1627_v25, %v1626_v46  ;;  %v1628_v11 = vmul.f32 %v4192_v15, %v4844_v13 }
 0x7e3   :  { %v1554_v50 = vpop.xlane.xlu1 %1553 }
 0x7e5   :  { %v4194_v29 = vpop.eup %4193 }
 0x7e6   :  { %v1630_v36 = vmul.f32 %v4194_v29, %v4849_v19 }
 0x7e7   :  { %v1563_v26 = vpop.xlane.xlu1 %1562 }
 0x7e8   :  { %3838 = vmatmul.mubr.msk.bf16.gmra.mxu0 %vm639_vm1, %v1649_v63  ;;  %v4267_v63 = vld [vmem:[#allocation4 + $0xb0] sm:$0xff] }
 0x7e9   :  { %v4196_v10 = vpop.eup %4195 }
 0x7ea   :  { %v1631_v61 = vmul.f32 %v4196_v10, %v4856_v39 }
 0x7eb   :  { %v1557_v44 = vpop.xlane.xlu1 %1556 }
 0x7ec   :  { %4197 = vrcp.f32 %v1557_v44  ;;  %v1651_v7 = vpack.c.bf16 %v1631_v61, %v1630_v36  ;;  %v4268_v44 = vld [vmem:[#allocation4 + $0xb8] sm:$0xff] }
 0x7ed   :  { %4199 = vrcp.f32 %v1554_v50 }
 0x7ef   :  { %v1566_v3 = vpop.xlane.xlu1 %1565 }
 0x7f3   :  { %v1569_v4 = vpop.xlane.xlu1 %1568 }
 0x7f4   :  { %v1545_v0 = vpop.xlane.xlu0 %1544 }
 0x7f5   :  { %4201 = vrcp.f32 %v1545_v0 }
 0x7f6   :  { %4203 = vrcp.f32 %v1563_v26 }
 0x7f7   :  { %4205 = vrcp.f32 %v1569_v4  ;;  %v1575_v23 = vpop.xlane.xlu1 %1574  ;;  %v4269_v4 = vld [vmem:[#allocation4 + $0xa0] sm:$0xff] }
 0x7f8   :  { %4207 = vrcp.f32 %v1560_v55  ;;  %v1572_v9 = vpop.xlane.xlu0 %1571 }
 0x7f9   :  { %4209 = vrcp.f32 %v1566_v3  ;;  %v4198_v21 = vpop.eup %4197 }
 0x7fa   :  { %v4200_v14 = vpop.eup %4199  ;;  %4211 = vrcp.f32 %v1575_v23  ;;  %v1633_v12 = vmul.f32 %v4198_v21, %v4876_v37  ;;  %v4270_v23 = vld [vmem:[#allocation4 + $0xa8] sm:$0xff]  ;;  %v4045_v21 = vld [vmem:[#allocation2 + $0xd0] ss:$8 sps:$4 sm:$0xff]  }
 0x7fb   :  { %4213 = vrcp.f32 %v1572_v9  ;;  %v1632_v5 = vmul.f32 %v4200_v14, %v4867_v22  ;;  %3853 = vmatprep.subr.bf16.mxu0 %v4045_v21 }
 0x7fc   :  { %3854 = vmatpush3.bf16.msra.mxu0 %v4045_v21  ;;  %v4279_v21 = vld [vmem:[#allocation4 + $0xe0] sm:$0xff] }
 0x7fd   :  { %v1652_v45 = vpack.c.bf16 %v1633_v12, %v1632_v5 }
 0x802   :  { %v4202_v47 = vpop.eup %4201 }
 0x803   :  { %v1629_v18 = vmul.f32 %v4202_v47, %v4886_v40  ;;  %v4204_v38 = vpop.eup %4203 }
 0x804   :  { %v4206_v57 = vpop.eup %4205  ;;  %v1635_v40 = vmul.f32 %v4204_v38, %v4872_v1  ;;  %v4035_v1 = vld [vmem:[#allocation2 + $0x2a4] ss:$8 sps:$4 sm:$0xff]  }
 0x805   :  { %v1650_v2 = vpack.c.bf16 %v1629_v18, %v1628_v11  ;;  %v4208_v39 = vpop.eup %4207  ;;  %v1637_v37 = vmul.f32 %v4206_v57, %v4884_v41  ;;  %2009 = vmatprep.mubr.bf16.mxu1 %v4035_v1 }
 0x806   :  { %v4210_v13 = vpop.eup %4209  ;;  %v1634_v19 = vmul.f32 %v4208_v39, %v4861_v20 }
 0x807   :  { %3841 = vmatprep.mubr.msk.bf16.mxu0 %vm639_vm1, %v1650_v2  ;;  %v1636_v22 = vmul.f32 %v4210_v13, %v4880_v43  ;;  %v4212_v56 = vpop.eup %4211 }
 0x808   :  { %3842 = vmatmul.mubr.msk.bf16.gmra.mxu0 %vm639_vm1, %v1651_v7  ;;  %v1653_v32 = vpack.c.bf16 %v1635_v40, %v1634_v19  ;;  %v4214_v53 = vpop.eup %4213  ;;  %v1639_v49 = vmul.f32 %v4212_v56, %v4890_v31 }
 0x809   :  { %3845 = vmatprep.mubr.msk.bf16.mxu0 %vm639_vm1, %v1652_v45  ;;  %v1654_v17 = vpack.c.bf16 %v1637_v37, %v1636_v22  ;;  %v1638_v42 = vmul.f32 %v4214_v53, %v4894_v24  ;;  %v4266_v24 = vld [vmem:[#allocation4 + $0x88] sm:$0xff] }
 0x80b   :  { %v1655_v30 = vpack.c.bf16 %v1639_v49, %v1638_v42 }
 0x810   :  { %3846 = vmatmul.mubr.msk.bf16.gmra.mxu0 %vm639_vm1, %v1653_v32 }
 0x811   :  { %3849 = vmatprep.mubr.msk.bf16.mxu0 %vm639_vm1, %v1654_v17  ;;  %v4271_v17 = vld [vmem:[#allocation4 + $0xf8] sm:$0xff] }
 0x818   :  { %3850 = vmatmul.mubr.msk.bf16.gmra.mxu0 %vm639_vm1, %v1655_v30  ;;  %v4272_v30 = vld [vmem:[#allocation4 + $0x170] sm:$0xff] }
 0x888   :  { %v3823_v20 = vpop.f32.mrf.mxu0 }
 0x889   :  { %v4948_v62 = vmul.f32 %v4263_v35, %v3823_v20  ;;  %v4273_v20 = vld [vmem:[#allocation4 + $0x178] sm:$0xff] }
 0x88a   :  { %v1754_v41 = vpop.f32.mrf.mxu0 }
 0x88b   :  { %v4952_v55 = vmul.f32 %v4265_v34, %v1754_v41 }
 0x88c   :  { %v3824_v43 = vpop.f32.mrf.mxu0 }
 0x88d   :  { %v4950_v8 = vmul.f32 %v4264_v16, %v3824_v43  ;;  %v4274_v43 = vld [vmem:[#allocation4 + $0xf0] sm:$0xff] }
 0x88e   :  { %v1757_v33 = vpop.f32.mrf.mxu0 }
 0x88f   :  { %v1922_v31 = vpack.c.bf16 %v4950_v8, %v4948_v62  ;;  %v4956_v27 = vmul.f32 %v4266_v24, %v1757_v33  ;;  %v4275_v33 = vld [vmem:[#allocation4 + $0x160] sm:$0xff] }
 0x890   :  { %v3827_v6 = vpop.f32.mrf.mxu0  ;;  %v4046_v62 = vld [vmem:[#allocation2 + $0xc0] ss:$8 sps:$4 sm:$0xff]  }
 0x891   :  { %v1921_v25 = vpack.c.bf16 %v4956_v27, %v4952_v55  ;;  %v4960_v26 = vmul.f32 %v4267_v63, %v3827_v6  ;;  %v4276_v6 = vld [vmem:[#allocation4 + $0x168] sm:$0xff]  ;;  %3855 = vmatprep.subr.bf16.mxu0 %v4046_v62 }
 0x892   :  { %v1770_v50 = vpop.f32.mrf.mxu0  ;;  %v4277_v63 = vld [vmem:[#allocation4 + $0xe8] sm:$0xff]  ;;  %3856 = vmatpush3.bf16.msra.mxu0 %v4046_v62 }
 0x893   :  { %v4964_v15 = vmul.f32 %v4269_v4, %v1770_v50 }
 0x894   :  { %v3828_v46 = vpop.f32.mrf.mxu0 }
 0x895   :  { %v4962_v3 = vmul.f32 %v4268_v44, %v3828_v46 }
 0x896   :  { %v1773_v0 = vpop.f32.mrf.mxu0 }
 0x897   :  { %v1924_v29 = vpack.c.bf16 %v4962_v3, %v4960_v26  ;;  %v4968_v10 = vmul.f32 %v4270_v23, %v1773_v0  ;;  %v4278_v0 = vld [vmem:[#allocation4 + $0x158] sm:$0xff]  ;;  %v4033_v26 = vld [vmem:[#allocation2 + $0x2a0] ss:$8 sps:$4 sm:$0xff]  }
 0x898   :  { %v3831_v14 = vpop.f32.mrf.mxu0  ;;  %v4036_v3 = vld [vmem:[#allocation2 + $0x2b4] ss:$8 sps:$4 sm:$0xff]  }
 0x899   :  { %v1923_v9 = vpack.c.bf16 %v4968_v10, %v4964_v15  ;;  %v4038_v15 = vld [vmem:[#allocation2 + $0x2b0] ss:$8 sps:$4 sm:$0xff]   ;;  %v4041_v10 = vld [vmem:[#allocation2 + $0x2c0] ss:$8 sps:$4 sm:$0xff]  }
 0x89a   :  { %v4972_v47 = vpop.f32.mrf.mxu0 }
 0x89c   :  { %v3832_v61 = vpop.f32.mrf.mxu0 }
 0x89e   :  { %v1789_v11 = vpop.f32.mrf.mxu0 }
 0x8a0   :  { %v3835_v18 = vpop.f32.mrf.mxu0 }
 0x8a1   :  { %v1895_v35 = vmul.f32 %v4274_v43, %v3835_v18  ;;  %v4281_v18 = vld [vmem:[#allocation4 + $0xd8] sm:$0xff] }
 0x8a2   :  { %v1802_v12 = vpop.f32.mrf.mxu0 }
 0x8a4   :  { %v3836_v36 = vpop.f32.mrf.mxu0 }
 0x8a5   :  { %v1896_v42 = vmul.f32 %v4271_v17, %v3836_v36  ;;  %v1893_v36 = vmul.f32 %v4279_v21, %v1802_v12  ;;  %v4286_v12 = vld [vmem:[#allocation4 + $0x138] sm:$0xff] }
 0x8a6   :  { %v1805_v2 = vpop.f32.mrf.mxu0 }
 0x8a7   :  { %v1928_v46 = vpack.c.bf16 %v1896_v42, %v1895_v35  ;;  %v1894_v44 = vmul.f32 %v4277_v63, %v1805_v2  ;;  %v4284_v2 = vld [vmem:[#allocation4 + $0x140] sm:$0xff]  ;;  %v4285_v35 = vld [vmem:[#allocation4 + $0xc8] sm:$0xff] }
 0x8a8   :  { %v4974_v5 = vpop.f32.mrf.mxu0 }
 0x8aa   :  { %v4976_v7 = vpop.f32.mrf.mxu0 }
 0x8ac   :  { %v4978_v38 = vpop.f32.mrf.mxu0 }
 0x8ae   :  { %v4980_v45 = vpop.f32.mrf.mxu0 }
 0x8c8   :  { %v3843_v57 = vpop.f32.mrf.mxu0 }
 0x8ca   :  { %v4982_v39 = vpop.f32.mrf.mxu0 }
 0x8cc   :  { %v3844_v13 = vpop.f32.mrf.mxu0 }
 0x8ce   :  { %v1837_v40 = vpop.f32.mrf.mxu0 }
 0x8d0   :  { %v3847_v37 = vpop.f32.mrf.mxu0 }
 0x8d2   :  { %v1850_v19 = vpop.f32.mrf.mxu0 }
 0x8d3   :  { %v1905_v43 = vmul.f32 %v4284_v2, %v1850_v19  ;;  %v4290_v19 = vld [vmem:[#allocation4 + $0x120] sm:$0xff] }
 0x8d4   :  { %v3848_v22 = vpop.f32.mrf.mxu0  ;;  %v1901_v63 = vmul.f32 %v4290_v19, %v4982_v39  ;;  %v4294_v39 = vld [vmem:[#allocation4 + $0x100] sm:$0xff] }
 0x8d5   :  { %v1908_v4 = vmul.f32 %v4278_v0, %v3848_v22 }
 0x8d6   :  { %v1853_v56 = vpop.f32.mrf.mxu0 }
 0x8d8   :  { %v3851_v32 = vpop.f32.mrf.mxu0 }
 0x8d9   :  { %v1911_v1 = vmul.f32 %v4272_v30, %v3851_v32  ;;  %v4280_v32 = vld [vmem:[#allocation4 + $0x150] sm:$0xff]  ;;  %v1927_v30 = vpack.c.bf16 %v1894_v44, %v1893_v36 }
 0x8da   :  { %v1866_v53 = vpop.f32.mrf.mxu0  ;;  %v1907_v17 = vmul.f32 %v4280_v32, %v3847_v37  ;;  %v4287_v37 = vld [vmem:[#allocation4 + $0xc0] sm:$0xff] }
 0x8db   :  { %v1909_v34 = vmul.f32 %v4275_v33, %v1866_v53  ;;  %v1904_v33 = vmul.f32 %v4286_v12, %v3844_v13 }
 0x8dc   :  { %v3852_v49 = vpop.f32.mrf.mxu0  ;;  %v1934_v53 = vpack.c.bf16 %v1908_v4, %v1907_v17  ;;  %v4293_v4 = vld [vmem:[#allocation4 + $0x108] sm:$0xff] }
 0x8dd   :  { %v1912_v41 = vmul.f32 %v4273_v20, %v3852_v49  ;;  %v1892_v49 = vmul.f32 %v4281_v18, %v3832_v61  ;;  %v4288_v61 = vld [vmem:[#allocation4 + $0x130] sm:$0xff] }
 0x8de   :  { %v1869_v16 = vpop.f32.mrf.mxu0 }
 0x8df   :  { %v1936_v24 = vpack.c.bf16 %v1912_v41, %v1911_v1  ;;  %v1910_v50 = vmul.f32 %v4276_v6, %v1869_v16  ;;  %v4282_v1 = vld [vmem:[#allocation4 + $0x148] sm:$0xff]  ;;  %v4283_v41 = vld [vmem:[#allocation4 + $0xd0] sm:$0xff]  ;;  %v1890_v16 = vmul.f32 %v4285_v35, %v1789_v11  ;;  %v1903_v6 = vmul.f32 %v4288_v61, %v3843_v57  ;;  %v4291_v11 = vld [vmem:[#allocation4 + $0x118] sm:$0xff] }
 0x8e0   :  { %v1906_v20 = vmul.f32 %v4282_v1, %v1853_v56  ;;  %v1891_v42 = vmul.f32 %v4283_v41, %v3831_v14  ;;  %v4289_v14 = vld [vmem:[#allocation4 + $0x128] sm:$0xff]  ;;  %v1900_v13 = vmul.f32 %v4291_v11, %v4978_v38  ;;  %v1897_v38 = vmul.f32 %v4294_v39, %v4976_v7  ;;  %v3447_v11 = vld [vmem:[#allocation4 + $0x283] ss:$0 sm:$0xff] }
 0x8e1   :  { %v1935_v23 = vpack.c.bf16 %v1910_v50, %v1909_v34  ;;  %3587 = vmatprep.subr.bf16.mxu1 %v1936_v24  ;;  %v1889_v24 = vmul.f32 %v4287_v37, %v4972_v47  ;;  %v1932_v50 = vpack.c.bf16 %v1904_v33, %v1903_v6  ;;  %v4292_v47 = vld [vmem:[#allocation4 + $0x110] sm:$0xff] }
 0x8e2   :  { %3588 = vmatpush3.bf16.msra.mxu1 %v1928_v46  ;;  %v1926_v22 = vpack.c.bf16 %v1892_v49, %v1891_v42  ;;  %v1933_v34 = vpack.c.bf16 %v1906_v20, %v1905_v43  ;;  %v1902_v46 = vmul.f32 %v4289_v14, %v1837_v40  ;;  %v1899_v57 = vmul.f32 %v4292_v47, %v4974_v5  ;;  %v4044_v5 = vld [vmem:[#allocation2 + $0x2d0] ss:$8 sps:$4 sm:$0xff]  }
 0x8e3   :  { %3589 = vmatprep.subr.bf16.mxu1 %v1935_v23  ;;  %v1925_v56 = vpack.c.bf16 %v1890_v16, %v1889_v24  ;;  %v1898_v40 = vmul.f32 %v4293_v4, %v4980_v45  ;;  %v4047_v24 = vld [vmem:[#allocation2 + $0x2e0] ss:$8 sps:$4 sm:$0xff]  }
 0x8e4   :  { %v1931_v44 = vpack.c.bf16 %v1902_v46, %v1901_v63  ;;  %v1930_v0 = vpack.c.bf16 %v1900_v13, %v1899_v57 }
 0x8e5   :  { %v1929_v23 = vpack.c.bf16 %v1898_v40, %v1897_v38 }
 0x8e6   :  { %3590 = vmatpush3.bf16.msra.mxu1 %v1927_v30 }
 0x8e7   :  { %3591 = vmatprep.subr.bf16.mxu1 %v1934_v53 }
 0x8ea   :  { %3592 = vmatpush3.bf16.msra.mxu1 %v1926_v22 }
 0x8eb   :  { %3593 = vmatprep.subr.bf16.mxu1 %v1933_v34 }
 0x8ee   :  { %3594 = vmatpush3.bf16.msra.mxu1 %v1925_v56 }
 0x8ef   :  { %3595 = vmatprep.subr.bf16.mxu1 %v1932_v50 }
 0x8f2   :  { %3596 = vmatpush3.bf16.msra.mxu1 %v1924_v29  ;;  %v4039_v29 = vld [vmem:[#allocation2 + $0x2c4] ss:$8 sps:$4 sm:$0xff]  }
 0x8f3   :  { %3597 = vmatprep.subr.bf16.mxu1 %v1931_v44 }
 0x8f6   :  { %3598 = vmatpush3.bf16.msra.mxu1 %v1923_v9  ;;  %v4042_v9 = vld [vmem:[#allocation2 + $0x2d4] ss:$8 sps:$4 sm:$0xff]  }
 0x8f7   :  { %3599 = vmatprep.subr.bf16.mxu1 %v1930_v0 }
 0x8fa   :  { %3600 = vmatpush3.bf16.msra.mxu1 %v1922_v31 }
 0x8fb   :  { %3601 = vmatprep.subr.bf16.mxu1 %v1929_v23 }
 0x8fe   :  { %3602 = vmatpush3.bf16.msra.mxu1 %v1921_v25 }
 0x901   :  { %2010 = vmatmul.mubr.bf16.vlgmr.msra.gmra.mxu1 %v4033_v26 }
 0x902   :  { %2017 = vmatprep.mubr.bf16.mxu1 %v4036_v3 }
 0x909   :  { %2018 = vmatmul.mubr.bf16.gmra.mxu1 %v4038_v15 }
 0x90a   :  { %2025 = vmatprep.mubr.bf16.mxu1 %v4039_v29 }
 0x911   :  { %2026 = vmatmul.mubr.bf16.gmra.mxu1 %v4041_v10 }
 0x912   :  { %2033 = vmatprep.mubr.bf16.mxu1 %v4042_v9 }
 0x919   :  { %2034 = vmatmul.mubr.bf16.gmra.mxu1 %v4044_v5 }
 0x91a   :  { %3873 = vmatprep.mubr.msk.bf16.mxu1 %vm639_vm1, %v4047_v24 }
 0x9c1   :  { %v3603_v8 = vpop.f32.mrf.mxu1 }
 0x9c3   :  { %v3604_v31 = vpop.f32.mrf.mxu1 }
 0x9c4   :  { %v3605_v25 = vadd.f32 %v3604_v31, %v3603_v8 }
 0x9c5   :  { %v3606_v55 = vpop.f32.mrf.mxu1 }
 0x9c7   :  { %v3607_v27 = vpop.f32.mrf.mxu1 }
 0x9c8   :  { %v3608_v7 = vadd.f32 %v3607_v27, %v3606_v55 }
 0x9c9   :  { %v3609_v45 = vpop.f32.mrf.mxu1 }
 0x9ca   :  { %v2046_v21 = vpack.c.bf16 %v3608_v7, %v3605_v25 }
 0x9cb   :  { %v3610_v36 = vpop.f32.mrf.mxu1 }
 0x9cc   :  { %3857 = vmatprep.mubr.msk.bf16.mxu0 %vm73_vm0, %v2046_v21  ;;  %v3611_v18 = vadd.f32 %v3610_v36, %v3609_v45  ;;  %v4048_v45 = vld [vmem:[#allocation2 + $0x2f0] ss:$8 sps:$4 sm:$0xff]   ;;  %v4049_v21 = vld [vmem:[#allocation2 + $0x300] ss:$8 sps:$4 sm:$0xff]  }
 0x9cd   :  { %v3612_v32 = vpop.f32.mrf.mxu1  ;;  %v4050_v36 = vld [vmem:[#allocation2 + $0x310] ss:$8 sps:$4 sm:$0xff]  }
 0x9cf   :  { %v3613_v17 = vpop.f32.mrf.mxu1 }
 0x9d0   :  { %v3614_v49 = vadd.f32 %v3613_v17, %v3612_v32  ;;  %v4051_v32 = vld [vmem:[#allocation2 + $0x320] ss:$8 sps:$4 sm:$0xff]  }
 0x9d1   :  { %v3615_v30 = vpop.f32.mrf.mxu1  ;;  %v4053_v17 = vld [vmem:[#allocation2 + $0x360] ss:$8 sps:$4 sm:$0xff]  }
 0x9d2   :  { %v2047_v53 = vpack.c.bf16 %v3614_v49, %v3611_v18 }
 0x9d3   :  { %v3616_v1 = vpop.f32.mrf.mxu1 }
 0x9d4   :  { %3858 = vmatmul.mubr.msk.bf16.vlgmr.msra.gmra.mxu0 %vm73_vm0, %v2047_v53  ;;  %v3617_v42 = vadd.f32 %v3616_v1, %v3615_v30 }
 0x9d5   :  { %v3618_v20 = vpop.f32.mrf.mxu1 }
 0x9d7   :  { %v3619_v41 = vpop.f32.mrf.mxu1 }
 0x9d8   :  { %v3620_v2 = vadd.f32 %v3619_v41, %v3618_v20 }
 0x9d9   :  { %v3621_v43 = vpop.f32.mrf.mxu1 }
 0x9da   :  { %v2048_v22 = vpack.c.bf16 %v3620_v2, %v3617_v42 }
 0x9db   :  { %v3622_v35 = vpop.f32.mrf.mxu1 }
 0x9dc   :  { %3861 = vmatprep.mubr.msk.bf16.mxu0 %vm73_vm0, %v2048_v22  ;;  %v3623_v33 = vadd.f32 %v3622_v35, %v3621_v43 }
 0x9dd   :  { %v3624_v16 = vpop.f32.mrf.mxu1 }
 0x9df   :  { %v3625_v12 = vpop.f32.mrf.mxu1 }
 0x9e0   :  { %v3626_v34 = vadd.f32 %v3625_v12, %v3624_v16 }
 0x9e2   :  { %v2049_v37 = vpack.c.bf16 %v3626_v34, %v3623_v33 }
 0x9e4   :  { %3862 = vmatmul.mubr.msk.bf16.gmra.mxu0 %vm73_vm0, %v2049_v37 }
 0x9e5   :  { %3889 = vmatprep.mubr.msk.bf16.mxu0 %vm639_vm1, %v4047_v24 }
 0xa94   :  { %v3859_v61 = vpop.f32.mrf.mxu0 }
 0xa95   :  { %v2141_v0 = vadd.f32 %v3859_v61, %v4498_v54 }
 0xa96   :  { %v2108_v6 = vpop.f32.mrf.mxu0 }
 0xa97   :  { %v5031_v26 = vadd.f32 %v3447_v11, %v2141_v0  ;;  %v2139_v3 = vadd.f32 %v2108_v6, %v4492_v52 }
 0xa98   :  { %v3860_v56 = vpop.f32.mrf.mxu0 }
 0xa99   :  { %v2142_v13 = vadd.f32 %v3860_v56, %v4489_v51  ;;  %v5044_v5 = vadd.f32 %v3447_v11, %v2139_v3  ;;  %v2271_v8 = vmul.f32 %v5031_v26, %v5031_v26 }
 0xa9a   :  { %v2111_v50 = vpop.f32.mrf.mxu0 }
 0xa9b   :  { %v5020_v38 = vadd.f32 %v3447_v11, %v2142_v13  ;;  %v2269_v25 = vmul.f32 %v5044_v5, %v5044_v5 }
 0xa9d   :  { %v2272_v52 = vmul.f32 %v5020_v38, %v5020_v38  ;;  %v2169_v62 = vpack.c.bf16 %v5020_v38, %v5031_v26 }
 0xa9f   :  { %v2278_v31 = vpack.c.bf16 %v2272_v52, %v2271_v8 }
 0xaa4   :  { %v3863_v14 = vpop.f32.mrf.mxu0 }
 0xaa5   :  { %v2145_v46 = vadd.f32 %v3863_v14, %v4516_v48 }
 0xaa6   :  { %v2124_v19 = vpop.f32.mrf.mxu0 }
 0xaa7   :  { %v2143_v63 = vadd.f32 %v2124_v19, %v4510_v59  ;;  %v5011_v47 = vadd.f32 %v3447_v11, %v2145_v46  ;;  %v2140_v59 = vadd.f32 %v2111_v50, %v4495_v28 }
 0xaa8   :  { %v3864_v44 = vpop.f32.mrf.mxu0 }
 0xaa9   :  { %v2146_v57 = vadd.f32 %v3864_v44, %v4507_v58  ;;  %v5015_v40 = vadd.f32 %v3447_v11, %v2143_v63  ;;  %v2275_v58 = vmul.f32 %v5011_v47, %v5011_v47  ;;  %v5040_v10 = vadd.f32 %v3447_v11, %v2140_v59 }
 0xaaa   :  { %v2127_v4 = vpop.f32.mrf.mxu0 }
 0xaab   :  { %v5017_v39 = vadd.f32 %v3447_v11, %v2146_v57  ;;  %v2144_v48 = vadd.f32 %v2127_v4, %v4513_v60  ;;  %v2273_v15 = vmul.f32 %v5015_v40, %v5015_v40  ;;  %v2270_v55 = vmul.f32 %v5040_v10, %v5040_v10 }
 0xaac   :  { %v2168_v27 = vpack.c.bf16 %v5040_v10, %v5044_v5 }
 0xaad   :  { %v5023_v23 = vadd.f32 %v3447_v11, %v2144_v48  ;;  %v2171_v51 = vpack.c.bf16 %v5017_v39, %v5011_v47  ;;  %v2276_v54 = vmul.f32 %v5017_v39, %v5017_v39  ;;  %v2277_v7 = vpack.c.bf16 %v2270_v55, %v2269_v25 }
 0xaaf   :  { %3865 = vmatprep.subr.bf16.mxu1 %v2171_v51  ;;  %v2170_v60 = vpack.c.bf16 %v5023_v23, %v5015_v40  ;;  %v2280_v28 = vpack.c.bf16 %v2276_v54, %v2275_v58  ;;  %v2274_v29 = vmul.f32 %v5023_v23, %v5023_v23 }
 0xab0   :  { %3866 = vmatpush3.bf16.msra.mxu1 %v2171_v51 }
 0xab1   :  { %3867 = vmatprep.subr.bf16.mxu1 %v2170_v60  ;;  %3881 = vmatprep.subr.bf16.mxu0 %v2280_v28  ;;  %v2279_v9 = vpack.c.bf16 %v2274_v29, %v2273_v15 }
 0xab2   :  { %3882 = vmatpush3.bf16.msra.mxu0 %v2280_v28 }
 0xab3   :  { %3883 = vmatprep.subr.bf16.mxu0 %v2279_v9 }
 0xab4   :  { %3868 = vmatpush3.bf16.msra.mxu1 %v2170_v60 }
 0xab5   :  { %3869 = vmatprep.subr.bf16.mxu1 %v2169_v62 }
 0xab6   :  { %3884 = vmatpush3.bf16.msra.mxu0 %v2279_v9 }
 0xab7   :  { %3885 = vmatprep.subr.bf16.mxu0 %v2278_v31 }
 0xab8   :  { %3870 = vmatpush3.bf16.msra.mxu1 %v2169_v62 }
 0xab9   :  { %3871 = vmatprep.subr.bf16.mxu1 %v2168_v27 }
 0xaba   :  { %3886 = vmatpush3.bf16.msra.mxu0 %v2278_v31 }
 0xabb   :  { %3887 = vmatprep.subr.bf16.mxu0 %v2277_v7 }
 0xabc   :  { %3872 = vmatpush3.bf16.msra.mxu1 %v2168_v27 }
 0xabe   :  { %3888 = vmatpush3.bf16.msra.mxu0 %v2277_v7 }
 0xabf   :  { %3874 = vmatmul.mubr.msk.bf16.vlgmr.msra.gmra.mxu1 %vm639_vm1, %v4048_v45 }
 0xac0   :  { %3877 = vmatprep.mubr.msk.bf16.mxu1 %vm639_vm1, %v4049_v21 }
 0xac1   :  { %3890 = vmatmul.mubr.msk.bf16.vlgmr.msra.gmra.mxu0 %vm639_vm1, %v4048_v45 }
 0xac2   :  { %3893 = vmatprep.mubr.msk.bf16.mxu0 %vm639_vm1, %v4049_v21 }
 0xac7   :  { %3878 = vmatmul.mubr.msk.bf16.gmra.mxu1 %vm639_vm1, %v4050_v36 }
 0xac8   :  { %3905 = vmatprep.mubr.msk.bf16.mxu1 %vm639_vm1, %v4051_v32  ;;  %v2408_v32 = vld [vmem:[#allocation4 + $0x30] sm:$0xff] }
 0xac9   :  { %3894 = vmatmul.mubr.msk.bf16.gmra.mxu0 %vm639_vm1, %v4050_v36 }
 0xaca   :  { %3921 = vmatprep.mubr.msk.bf16.mxu0 %vm639_vm1, %v4053_v17 }
 0xb7f   :  { %v5064_v18 = vpop.f32.mrf.mxu1 }
 0xb80   :  { %v2348_v20 = vmul.f32 %v5064_v18, %v5064_v18 }
 0xb81   :  { %v5066_v49 = vpop.f32.mrf.mxu1  ;;  %v3891_v30 = vpop.f32.mrf.mxu0 }
 0xb82   :  { %v2356_v12 = vsub.f32 %v3891_v30, %v2348_v20  ;;  %v2346_v34 = vmul.f32 %v5066_v49, %v5066_v49 }
 0xb83   :  { %v5068_v53 = vpop.f32.mrf.mxu1  ;;  %v2315_v1 = vpop.f32.mrf.mxu0 }
 0xb84   :  { %v2349_v41 = vmul.f32 %v5068_v53, %v5068_v53  ;;  %v2364_v19 = vmax.f32 %v2356_v12, 0.0  ;;  %v2354_v44 = vsub.f32 %v2315_v1, %v2346_v34  ;;  %v2373_v1 = vsub.f32 %v5020_v38, %v5068_v53  ;;  %v2407_v34 = vld [vmem:[#allocation4 + $0x28] sm:$0xff] }
 0xb85   :  { %v5074_v42 = vpop.f32.mrf.mxu1  ;;  %v3892_v2 = vpop.f32.mrf.mxu0 }
 0xb86   :  { %v2347_v43 = vmul.f32 %v5074_v42, %v5074_v42  ;;  %v2357_v22 = vsub.f32 %v3892_v2, %v2349_v41  ;;  %v2380_v60 = vadd.f32 1e-05, %v2364_v19  ;;  %v2362_v29 = vmax.f32 %v2354_v44, 0.0  ;;  %v2406_v41 = vld [vmem:[#allocation4 + $0x20] sm:$0xff] }
 0xb87   :  { %v3879_v35 = vpop.f32.mrf.mxu1  ;;  %v2318_v16 = vpop.f32.mrf.mxu0  ;;  %v2422_v19 = vld [vmem:[#allocation4 + $0x60] sm:$0xff] }
 0xb88   :  { %v2352_v33 = vmul.f32 %v3879_v35, %v3879_v35  ;;  %v2365_v56 = vmax.f32 %v2357_v22, 0.0  ;;  %v2355_v50 = vsub.f32 %v2318_v16, %v2347_v43  ;;  %v2378_v55 = vadd.f32 1e-05, %v2362_v29  ;;  %v2409_v22 = vld [vmem:[#allocation4 + $0x38] sm:$0xff]  ;;  %v2402_v29 = vld [vmem:[#allocation4] sm:$0xff] }
 0xb89   :  { %v2254_v37 = vpop.f32.mrf.mxu1  ;;  %v3895_v24 = vpop.f32.mrf.mxu0  ;;  %v2376_v25 = vsub.f32 %v5011_v47, %v3879_v35  ;;  %v2372_v35 = vsub.f32 %v5031_v26, %v5064_v18  ;;  %v2370_v18 = vsub.f32 %v5044_v5, %v5066_v49 }
 0xb8a   :  { %v2350_v61 = vmul.f32 %v2254_v37, %v2254_v37  ;;  %v2360_v6 = vsub.f32 %v3895_v24, %v2352_v33  ;;  %v2381_v51 = vadd.f32 1e-05, %v2365_v56  ;;  %v2363_v58 = vmax.f32 %v2355_v50, 0.0  ;;  %v2405_v50 = vld [vmem:[#allocation4 + $0x18] sm:$0xff] }
 0xb8b   :  { %v3880_v14 = vpop.f32.mrf.mxu1  ;;  %v2331_v46 = vpop.f32.mrf.mxu0  ;;  %v2374_v7 = vsub.f32 %v5015_v40, %v2254_v37 }
 0xb8c   :  { %v2368_v63 = vmax.f32 %v2360_v6, 0.0  ;;  %v2353_v11 = vmul.f32 %v3880_v14, %v3880_v14  ;;  %v2358_v13 = vsub.f32 %v2331_v46, %v2350_v61  ;;  %v2379_v62 = vadd.f32 1e-05, %v2363_v58  ;;  %v2424_v61 = vld [vmem:[#allocation4 + $0x70] sm:$0xff]  ;;  %v2425_v6 = vld [vmem:[#allocation4 + $0x78] sm:$0xff] }
 0xb8d   :  { %v2257_v57 = vpop.f32.mrf.mxu1  ;;  %v3896_v0 = vpop.f32.mrf.mxu0  ;;  %v2377_v20 = vsub.f32 %v5017_v39, %v3880_v14  ;;  %v2371_v14 = vsub.f32 %v5040_v10, %v5074_v42  ;;  %v2421_v42 = vld [vmem:[#allocation4 + $0x58] sm:$0xff] }
 0xb8e   :  { %v2384_v4 = vadd.f32 1e-05, %v2368_v63  ;;  %v2366_v48 = vmax.f32 %v2358_v13, 0.0  ;;  %v2351_v59 = vmul.f32 %v2257_v57, %v2257_v57  ;;  %v2361_v54 = vsub.f32 %v3896_v0, %v2353_v11  ;;  %v2423_v63 = vld [vmem:[#allocation4 + $0x68] sm:$0xff] }
 0xb8f   :  { %v2334_v3 = vpop.f32.mrf.mxu0  ;;  %v2375_v43 = vsub.f32 %v5023_v23, %v2257_v57  ;;  %v2404_v57 = vld [vmem:[#allocation4 + $0x10] sm:$0xff] }
 0xb90   :  { %4215 = vrsqrt.f32 %v2384_v4  ;;  %v2382_v28 = vadd.f32 1e-05, %v2366_v48  ;;  %v2359_v15 = vsub.f32 %v2334_v3, %v2351_v59  ;;  %v2369_v9 = vmax.f32 %v2361_v54, 0.0  ;;  %v2403_v54 = vld [vmem:[#allocation4 + $0x8] sm:$0xff] }
 0xb92   :  { %4217 = vrsqrt.f32 %v2382_v28  ;;  %v2367_v52 = vmax.f32 %v2359_v15, 0.0  ;;  %v2385_v8 = vadd.f32 1e-05, %v2369_v9  ;;  %v2420_v15 = vld [vmem:[#allocation4 + $0x50] sm:$0xff] }
 0xb93   :  { %4219 = vrsqrt.f32 %v2381_v51 }
 0xb94   :  { %4221 = vrsqrt.f32 %v2380_v60  ;;  %v2383_v31 = vadd.f32 1e-05, %v2367_v52 }
 0xb95   :  { %4223 = vrsqrt.f32 %v2385_v8 }
 0xb96   :  { %4225 = vrsqrt.f32 %v2383_v31 }
 0xb97   :  { %4227 = vrsqrt.f32 %v2379_v62  ;;  %v2419_v62 = vld [vmem:[#allocation4 + $0x48] sm:$0xff] }
 0xb98   :  { %4229 = vrsqrt.f32 %v2378_v55  ;;  %v2418_v55 = vld [vmem:[#allocation4 + $0x40] sm:$0xff] }
 0xb9d   :  { %v4216_v27 = vpop.eup %4215 }
 0xb9e   :  { %v2400_v21 = vmul.f32 %v4216_v27, %v2376_v25 }
 0xb9f   :  { %v4218_v45 = vpop.eup %4217 }
 0xba0   :  { %v4220_v36 = vpop.eup %4219  ;;  %v2398_v17 = vmul.f32 %v4218_v45, %v2374_v7  ;;  %v2416_v33 = vmul.f32 %v2408_v32, %v2400_v21  ;;  %v4052_v21 = vld [vmem:[#allocation2 + $0x330] ss:$8 sps:$4 sm:$0xff]   ;;  %v4055_v32 = vld [vmem:[#allocation2 + $0x340] ss:$8 sps:$4 sm:$0xff]  }
 0xba1   :  { %v4222_v30 = vpop.eup %4221  ;;  %v2397_v37 = vmul.f32 %v4220_v36, %v2373_v1  ;;  %v4054_v36 = vld [vmem:[#allocation2 + $0x370] ss:$8 sps:$4 sm:$0xff]  }
 0xba2   :  { %v4224_v2 = vpop.eup %4223  ;;  %v2414_v53 = vmul.f32 %v2406_v41, %v2398_v17  ;;  %v2396_v11 = vmul.f32 %v4222_v30, %v2372_v35  ;;  %v5092_v0 = vadd.f32 %v2424_v61, %v2416_v33  ;;  %v4057_v17 = vld [vmem:[#allocation2 + $0x380] ss:$8 sps:$4 sm:$0xff]   ;;  %v4056_v30 = vld [vmem:[#allocation2 + $0x350] ss:$8 sps:$4 sm:$0xff]  }
 0xba3   :  { %v4226_v16 = vpop.eup %4225  ;;  %v2401_v12 = vmul.f32 %v4224_v2, %v2377_v20  ;;  %v2413_v48 = vmul.f32 %v2405_v50, %v2397_v37  ;;  %v4058_v1 = vld [vmem:[#allocation2 + $0x390] ss:$8 sps:$4 sm:$0xff]   ;;  %v4060_v41 = vld [vmem:[#allocation2 + $0xe0] ss:$8 sps:$4 sm:$0xff]   ;;  %v5110_v2 = vld [vmem:[#allocation4 + $0x284] ss:$0 sm:$0xff] }
 0xba4   :  { %v4228_v24 = vpop.eup %4227  ;;  %v2399_v56 = vmul.f32 %v4226_v16, %v2375_v43  ;;  %v5096_v51 = vadd.f32 %v2422_v19, %v2414_v53  ;;  %v2412_v60 = vmul.f32 %v2404_v57, %v2396_v11  ;;  %v4059_v20 = vld [vmem:[#allocation2 + $0xf0] ss:$8 sps:$4 sm:$0xff]   ;;  %v5112_v43 = vld [vmem:[#allocation4 + $0x285] ss:$0 sm:$0xff] }
 0xba5   :  { %v2417_v46 = vmul.f32 %v2409_v22, %v2401_v12  ;;  %v4230_v13 = vpop.eup %4229  ;;  %v2395_v59 = vmul.f32 %v4228_v24, %v2371_v14  ;;  %v2429_v9 = vadd.f32 %v2421_v42, %v2413_v48  ;;  %v5114_v22 = vld [vmem:[#allocation4 + $0x286] ss:$0 sm:$0xff] }
 0xba6   :  { %v2415_v44 = vmul.f32 %v2407_v34, %v2399_v56  ;;  %v2394_v28 = vmul.f32 %v4230_v13, %v2370_v18  ;;  %v2428_v8 = vadd.f32 %v2420_v15, %v2412_v60 }
 0xba7   :  { %v5094_v4 = vadd.f32 %v2425_v6, %v2417_v46  ;;  %v2411_v52 = vmul.f32 %v2403_v54, %v2395_v59  ;;  %v2564_v50 = vmul.f32 %v5112_v43, %v2429_v9 }
 0xba8   :  { %v5098_v58 = vadd.f32 %v2423_v63, %v2415_v44  ;;  %v2410_v31 = vmul.f32 %v2402_v29, %v2394_v28  ;;  %v2444_v27 = vpack.c.bf16 %v2429_v9, %v2428_v8  ;;  %v2563_v33 = vmul.f32 %v5112_v43, %v2428_v8  ;;  %v3479_v63 = vld [vmem:[#allocation4 + $0x287] ss:$0 sm:$0xff] }
 0xba9   :  { %v2446_v3 = vpack.c.bf16 %v5094_v4, %v5092_v0  ;;  %v2427_v25 = vadd.f32 %v2419_v62, %v2411_v52  ;;  %v2567_v62 = vmul.f32 %v5112_v43, %v5092_v0 }
 0xbaa   :  { %v2445_v49 = vpack.c.bf16 %v5098_v58, %v5096_v51  ;;  %v2426_v7 = vadd.f32 %v2418_v55, %v2410_v31 }
 0xbab   :  { %3897 = vmatprep.subr.bf16.mxu1 %v2446_v3  ;;  %3913 = vmatprep.subr.bf16.mxu0 %v2446_v3  ;;  %v2562_v44 = vmul.f32 %v5112_v43, %v2427_v25 }
 0xbac   :  { %3898 = vmatpush3.bf16.msra.mxu1 %v2446_v3  ;;  %3914 = vmatpush3.bf16.msra.mxu0 %v2446_v3  ;;  %v2443_v45 = vpack.c.bf16 %v2427_v25, %v2426_v7  ;;  %v2561_v56 = vmul.f32 %v5112_v43, %v2426_v7 }
 0xbad   :  { %3899 = vmatprep.subr.bf16.mxu1 %v2445_v49  ;;  %3915 = vmatprep.subr.bf16.mxu0 %v2445_v49 }
 0xbb0   :  { %3900 = vmatpush3.bf16.msra.mxu1 %v2445_v49  ;;  %3916 = vmatpush3.bf16.msra.mxu0 %v2445_v49 }
 0xbb1   :  { %3901 = vmatprep.subr.bf16.mxu1 %v2444_v27  ;;  %3917 = vmatprep.subr.bf16.mxu0 %v2444_v27 }
 0xbb4   :  { %3902 = vmatpush3.bf16.msra.mxu1 %v2444_v27  ;;  %3918 = vmatpush3.bf16.msra.mxu0 %v2444_v27 }
 0xbb5   :  { %3903 = vmatprep.subr.bf16.mxu1 %v2443_v45  ;;  %3919 = vmatprep.subr.bf16.mxu0 %v2443_v45 }
 0xbb8   :  { %3904 = vmatpush3.bf16.msra.mxu1 %v2443_v45  ;;  %3920 = vmatpush3.bf16.msra.mxu0 %v2443_v45  ;;  %v2565_v45 = vmul.f32 %v5112_v43, %v5096_v51 }
 0xbb9   :  { %3929 = vmatprep.subr.bf16.mxu1 %v4059_v20 }
 0xbbb   :  { %3906 = vmatmul.mubr.msk.bf16.vlgmr.msra.gmra.mxu1 %vm639_vm1, %v4052_v21  ;;  %3922 = vmatmul.mubr.msk.bf16.vlgmr.msra.gmra.mxu0 %vm639_vm1, %v4054_v36 }
 0xbbc   :  { %3909 = vmatprep.mubr.msk.bf16.mxu1 %vm639_vm1, %v4055_v32  ;;  %3925 = vmatprep.mubr.msk.bf16.mxu0 %vm639_vm1, %v4057_v17  ;;  %v2568_v17 = vmul.f32 %v5112_v43, %v5094_v4 }
 0xbbd   :  { %3930 = vmatpush3.bf16.msra.mxu1 %v4059_v20 }
 0xbbe   :  { %3931 = vmatprep.subr.bf16.mxu1 %v4060_v41 }
 0xbc1   :  { %3932 = vmatpush3.bf16.msra.mxu1 %v4060_v41 }
 0xbc3   :  { %3910 = vmatmul.mubr.msk.bf16.gmra.mxu1 %vm639_vm1, %v4056_v30  ;;  %3926 = vmatmul.mubr.msk.bf16.gmra.mxu0 %vm639_vm1, %v4058_v1 }
 0xc7b   :  { %v3907_v16 = vpop.f32.mrf.mxu1  ;;  %v3923_v35 = vpop.f32.mrf.mxu0 }
 0xc7c   :  { %v2550_v12 = vmul.f32 %v3907_v16, %v5110_v2  ;;  %v2689_v34 = vmul.f32 %v3923_v35, %v5114_v22 }
 0xc7d   :  { %v2513_v37 = vpop.f32.mrf.mxu1  ;;  %v2652_v24 = vpop.f32.mrf.mxu0 }
 0xc7e   :  { %v2571_v61 = vadd.f32 %v2563_v33, %v2550_v12  ;;  %v2548_v6 = vmul.f32 %v5110_v2, %v2513_v37  ;;  %v2687_v13 = vmul.f32 %v5114_v22, %v2652_v24 }
 0xc7f   :  { %v3908_v53 = vpop.f32.mrf.mxu1  ;;  %v3924_v14 = vpop.f32.mrf.mxu0 }
 0xc80   :  { %v2569_v46 = vadd.f32 %v2561_v56, %v2548_v6  ;;  %v2697_v19 = vadd.f32 %v2689_v34, %v2571_v61  ;;  %v2551_v11 = vmul.f32 %v3908_v53, %v5110_v2  ;;  %v2690_v54 = vmul.f32 %v3924_v14, %v5114_v22 }
 0xc81   :  { %v2516_v18 = vpop.f32.mrf.mxu1  ;;  %v2655_v57 = vpop.f32.mrf.mxu0  ;;  %v2566_v56 = vmul.f32 %v5112_v43, %v5098_v58 }
 0xc82   :  { %v2572_v48 = vadd.f32 %v2564_v50, %v2551_v11  ;;  %v2695_v59 = vadd.f32 %v2687_v13, %v2569_v46  ;;  %v2549_v42 = vmul.f32 %v5110_v2, %v2516_v18  ;;  %v2710_v3 = vadd.f32 %v3479_v63, %v2697_v19 }
 0xc83   :  { %v3911_v60 = vpop.f32.mrf.mxu1  ;;  %v3927_v28 = vpop.f32.mrf.mxu0  ;;  %v2688_v29 = vmul.f32 %v5114_v22, %v2655_v57 }
 0xc84   :  { %v2570_v49 = vadd.f32 %v2562_v44, %v2549_v42  ;;  %v2698_v15 = vadd.f32 %v2690_v54, %v2572_v48  ;;  %v2708_v9 = vadd.f32 %v3479_v63, %v2695_v59  ;;  %v2554_v52 = vmul.f32 %v3911_v60, %v5110_v2 }
 0xc85   :  { %v2529_v8 = vpop.f32.mrf.mxu1  ;;  %v2693_v31 = vmul.f32 %v3927_v28, %v5114_v22  ;;  %v2668_v55 = vpop.f32.mrf.mxu0  ;;  %v2718_v21 = vmax.f32 %v2710_v3, 0.0 }
 0xc86   :  { %v2711_v27 = vadd.f32 %v3479_v63, %v2698_v15  ;;  %v2696_v25 = vadd.f32 %v2688_v29, %v2570_v49  ;;  %v2552_v7 = vmul.f32 %v5110_v2, %v2529_v8  ;;  %v2575_v36 = vadd.f32 %v2567_v62, %v2554_v52 }
 0xc87   :  { %v3912_v32 = vpop.f32.mrf.mxu1  ;;  %v3928_v30 = vpop.f32.mrf.mxu0  ;;  %v2716_v16 = vmax.f32 %v2708_v9, 0.0  ;;  %v2691_v12 = vmul.f32 %v5114_v22, %v2668_v55 }
 0xc88   :  { %v2719_v1 = vmax.f32 %v2711_v27, 0.0  ;;  %v2709_v0 = vadd.f32 %v3479_v63, %v2696_v25  ;;  %v2573_v20 = vadd.f32 %v2565_v45, %v2552_v7  ;;  %v2555_v41 = vmul.f32 %v3912_v32, %v5110_v2 }
 0xc89   :  { %v2701_v35 = vadd.f32 %v2693_v31, %v2575_v36  ;;  %v2532_v33 = vpop.f32.mrf.mxu1  ;;  %v2694_v24 = vmul.f32 %v3928_v30, %v5114_v22  ;;  %v2671_v61 = vpop.f32.mrf.mxu0 }
 0xc8a   :  { %v2729_v34 = vpack.c.bf16 %v2719_v1, %v2718_v21  ;;  %v2717_v37 = vmax.f32 %v2709_v0, 0.0  ;;  %v2576_v51 = vadd.f32 %v2568_v17, %v2555_v41  ;;  %v2699_v6 = vadd.f32 %v2691_v12, %v2573_v20 }
 0xc8b   :  { %v2553_v4 = vmul.f32 %v5110_v2, %v2532_v33  ;;  %v2714_v50 = vadd.f32 %v3479_v63, %v2701_v35  ;;  %v2692_v19 = vmul.f32 %v5114_v22, %v2671_v61  ;;  %v3480_v22 = vld [vmem:[#allocation4 + $0x288] ss:$0 sm:$0xff] }
 0xc8c   :  { %v2728_v53 = vpack.c.bf16 %v2717_v37, %v2716_v16  ;;  %v2702_v14 = vadd.f32 %v2694_v24, %v2576_v51  ;;  %v2712_v13 = vadd.f32 %v3479_v63, %v2699_v6 }
 0xc8d   :  { %v2574_v46 = vadd.f32 %v2566_v56, %v2553_v4  ;;  %v2722_v44 = vmax.f32 %v2714_v50, 0.0 }
 0xc8e   :  { %v2715_v11 = vadd.f32 %v3479_v63, %v2702_v14  ;;  %3933 = vmatprep.mubr.msk.bf16.mxu1 %vm73_vm0, %v2728_v53  ;;  %v2720_v59 = vmax.f32 %v2712_v13, 0.0 }
 0xc8f   :  { %v2700_v18 = vadd.f32 %v2692_v19, %v2574_v46  ;;  %3934 = vmatmul.mubr.msk.bf16.vlgmr.msra.gmra.mxu1 %vm73_vm0, %v2729_v34 }
 0xc90   :  { %v2723_v57 = vmax.f32 %v2715_v11, 0.0 }
 0xc91   :  { %v2713_v48 = vadd.f32 %v3479_v63, %v2700_v18 }
 0xc92   :  { %v2731_v2 = vpack.c.bf16 %v2723_v57, %v2722_v44 }
 0xc93   :  { %v2721_v42 = vmax.f32 %v2713_v48, 0.0 }
 0xc95   :  { %v2730_v58 = vpack.c.bf16 %v2721_v42, %v2720_v59 }
 0xc97   :  { %3937 = vmatprep.mubr.msk.bf16.mxu1 %vm73_vm0, %v2730_v58 }
 0xc98   :  { %3938 = vmatmul.mubr.msk.bf16.gmra.mxu1 %vm73_vm0, %v2731_v2 }
 0xd4f   :  { %v3935_v43 = vpop.f32.mrf.mxu1 }
 0xd50   :  { %v2804_v3 = vadd.f32 %v3935_v43, %v3480_v22 }
 0xd51   :  { %v2795_v54 = vpop.f32.mrf.mxu1 }
 0xd52   :  { %v2796_v60 = vadd.f32 %v3480_v22, %v2795_v54  ;;  %v5152_v63 = vadd.f32 %v2804_v3, %v5031_v26 }
 0xd53   :  { %v3936_v28 = vpop.f32.mrf.mxu1 }
 0xd54   :  { %v5149_v49 = vadd.f32 %v2796_v60, %v5044_v5  ;;  %v2807_v29 = vadd.f32 %v3936_v28, %v3480_v22  ;;  %v2862_v26 = vsel %vm73_vm0, %v5152_v63, 0.0 }
 0xd55   :  { %v2798_v15 = vpop.f32.mrf.mxu1 }
 0xd56   :  { %v2799_v9 = vadd.f32 %v3480_v22, %v2798_v15  ;;  %v2856_v52 = vsel %vm73_vm0, %v5149_v49, 0.0  ;;  %v5160_v31 = vadd.f32 %v2807_v29, %v5020_v38 }
 0xd57   :  { %2857 = vadd.xlane.f32.xlu0 %v2856_v52  ;;  %v4061_v52 = vld [vmem:[#allocation2 + $0x110] ss:$8 sps:$4 sm:$0xff]  }
 0xd58   :  { %v5157_v62 = vadd.f32 %v2799_v9, %v5040_v10  ;;  %v3939_v8 = vpop.f32.mrf.mxu1  ;;  %v2865_v38 = vsel %vm73_vm0, %v5160_v31, 0.0  ;;  %3941 = vmatprep.subr.bf16.mxu0 %v4061_v52 }
 0xd59   :  { %v2820_v27 = vadd.f32 %v3939_v8, %v3480_v22  ;;  %3942 = vmatpush3.bf16.msra.mxu0 %v4061_v52  ;;  %v4062_v8 = vld [vmem:[#allocation2 + $0x100] ss:$8 sps:$4 sm:$0xff]   ;;  %v4069_v52 = vld [vmem:[#allocation2 + $0x130] ss:$8 sps:$4 sm:$0xff]  }
 0xd5a   :  { %v2811_v55 = vpop.f32.mrf.mxu1  ;;  %v2859_v5 = vsel %vm73_vm0, %v5157_v62, 0.0  ;;  %3943 = vmatprep.subr.bf16.mxu0 %v4062_v8 }
 0xd5b   :  { %v2812_v25 = vadd.f32 %v3480_v22, %v2811_v55  ;;  %2860 = vadd.xlane.f32.xlu1 %v2859_v5  ;;  %2863 = vadd.xlane.f32.xlu0 %v2862_v26  ;;  %v5172_v21 = vadd.f32 %v2820_v27, %v5011_v47  ;;  %v4063_v55 = vld [vmem:[#allocation2 + $0x190] ss:$8 sps:$4 sm:$0xff]   ;;  %v4064_v5 = vld [vmem:[#allocation2 + $0x180] ss:$8 sps:$4 sm:$0xff]  }
 0xd5c   :  { %v3940_v7 = vpop.f32.mrf.mxu1  ;;  %3953 = vmatprep.subr.bf16.mxu1 %v4063_v55  ;;  %v4065_v26 = vld [vmem:[#allocation2 + $0x170] ss:$8 sps:$4 sm:$0xff]   ;;  %v4066_v27 = vld [vmem:[#allocation2 + $0x160] ss:$8 sps:$4 sm:$0xff]  }
 0xd5d   :  { %v5167_v45 = vadd.f32 %v2812_v25, %v5015_v40  ;;  %v2823_v36 = vadd.f32 %v3940_v7, %v3480_v22  ;;  %v2874_v47 = vsel %vm73_vm0, %v5172_v21, 0.0  ;;  %3944 = vmatpush3.bf16.msra.mxu0 %v4062_v8  ;;  %3954 = vmatpush3.bf16.msra.mxu1 %v4063_v55  ;;  %v4067_v25 = vld [vmem:[#allocation2 + $0x150] ss:$8 sps:$4 sm:$0xff]   ;;  %v3487_v55 = vld [vmem:[#allocation4 + $0x289] ss:$0 sm:$0xff] }
 0xd5e   :  { %v2814_v10 = vpop.f32.mrf.mxu1  ;;  %3955 = vmatprep.subr.bf16.mxu1 %v4064_v5 }
 0xd5f   :  { %v2815_v32 = vadd.f32 %v3480_v22, %v2814_v10  ;;  %2866 = vadd.xlane.f32.xlu1 %v2865_v38  ;;  %v2868_v17 = vsel %vm73_vm0, %v5167_v45, 0.0  ;;  %v5180_v40 = vadd.f32 %v2823_v36, %v5017_v39 }
 0xd60   :  { %2869 = vadd.xlane.f32.xlu0 %v2868_v17 }
 0xd61   :  { %v5177_v30 = vadd.f32 %v2815_v32, %v5023_v23  ;;  %v2877_v0 = vsel %vm73_vm0, %v5180_v40, 0.0  ;;  %3956 = vmatpush3.bf16.msra.mxu1 %v4064_v5 }
 0xd62   :  { %3957 = vmatprep.subr.bf16.mxu1 %v4065_v26 }
 0xd63   :  { %v2871_v1 = vsel %vm73_vm0, %v5177_v30, 0.0 }
 0xd64   :  { %2872 = vadd.xlane.f32.xlu1 %v2871_v1  ;;  %2875 = vadd.xlane.f32.xlu0 %v2874_v47 }
 0xd65   :  { %3958 = vmatpush3.bf16.msra.mxu1 %v4065_v26 }
 0xd66   :  { %3959 = vmatprep.subr.bf16.mxu1 %v4066_v27 }
 0xd68   :  { %2878 = vadd.xlane.f32.xlu1 %v2877_v0 }
 0xd69   :  { %3960 = vmatpush3.bf16.msra.mxu1 %v4066_v27 }
 0xd6a   :  { %3961 = vmatprep.subr.bf16.mxu1 %v4067_v25 }
 0xd6d   :  { %3962 = vmatpush3.bf16.msra.mxu1 %v4067_v25 }
 0xde0   :  { %v2858_v20 = vpop.xlane.xlu0 %2857 }
 0xde1   :  { %v2880_v41 = vmul.f32 0.03125, %v2858_v20 }
 0xde3   :  { %v5189_v23 = vsub.f32 %v5149_v49, %v2880_v41 }
 0xde4   :  { %v2861_v16 = vpop.xlane.xlu1 %2860  ;;  %v2864_v39 = vpop.xlane.xlu0 %2863 }
 0xde5   :  { %v2881_v35 = vmul.f32 0.03125, %v2861_v16  ;;  %v2882_v12 = vmul.f32 0.03125, %v2864_v39  ;;  %v2896_v33 = vmul.f32 %v5189_v23, %v5189_v23 }
 0xde7   :  { %v5194_v34 = vsub.f32 %v5157_v62, %v2881_v35  ;;  %v5197_v37 = vsub.f32 %v5152_v63, %v2882_v12  ;;  %v2904_v51 = vsel %vm73_vm0, %v2896_v33, 0.0 }
 0xde8   :  { %v2867_v24 = vpop.xlane.xlu1 %2866  ;;  %2905 = vadd.xlane.f32.xlu0 %v2904_v51 }
 0xde9   :  { %v2883_v61 = vmul.f32 0.03125, %v2867_v24  ;;  %v2870_v6 = vpop.xlane.xlu0 %2869  ;;  %v2897_v4 = vmul.f32 %v5194_v34, %v5194_v34  ;;  %v2898_v56 = vmul.f32 %v5197_v37, %v5197_v37 }
 0xdea   :  { %v2884_v53 = vmul.f32 0.03125, %v2870_v6 }
 0xdeb   :  { %v5205_v50 = vsub.f32 %v5160_v31, %v2883_v61  ;;  %v2907_v14 = vsel %vm73_vm0, %v2897_v4, 0.0  ;;  %v2910_v46 = vsel %vm73_vm0, %v2898_v56, 0.0 }
 0xdec   :  { %v5210_v19 = vsub.f32 %v5167_v45, %v2884_v53  ;;  %2908 = vadd.xlane.f32.xlu1 %v2907_v14  ;;  %2911 = vadd.xlane.f32.xlu0 %v2910_v46 }
 0xded   :  { %v2873_v11 = vpop.xlane.xlu1 %2872  ;;  %v2876_v13 = vpop.xlane.xlu0 %2875  ;;  %v2899_v18 = vmul.f32 %v5205_v50, %v5205_v50 }
 0xdee   :  { %v2885_v44 = vmul.f32 0.03125, %v2873_v11  ;;  %v2886_v57 = vmul.f32 0.03125, %v2876_v13  ;;  %v2900_v48 = vmul.f32 %v5210_v19, %v5210_v19 }
 0xdef   :  { %v2913_v2 = vsel %vm73_vm0, %v2899_v18, 0.0 }
 0xdf0   :  { %v5218_v59 = vsub.f32 %v5177_v30, %v2885_v44  ;;  %v5221_v42 = vsub.f32 %v5172_v21, %v2886_v57  ;;  %2914 = vadd.xlane.f32.xlu1 %v2913_v2  ;;  %v2916_v58 = vsel %vm73_vm0, %v2900_v48, 0.0 }
 0xdf1   :  { %v2879_v43 = vpop.xlane.xlu1 %2878  ;;  %2917 = vadd.xlane.f32.xlu0 %v2916_v58 }
 0xdf2   :  { %v2887_v22 = vmul.f32 0.03125, %v2879_v43  ;;  %v2901_v54 = vmul.f32 %v5218_v59, %v5218_v59  ;;  %v2902_v3 = vmul.f32 %v5221_v42, %v5221_v42 }
 0xdf4   :  { %v5229_v60 = vsub.f32 %v5180_v40, %v2887_v22  ;;  %v2919_v28 = vsel %vm73_vm0, %v2901_v54, 0.0  ;;  %v2922_v15 = vsel %vm73_vm0, %v2902_v3, 0.0 }
 0xdf5   :  { %2920 = vadd.xlane.f32.xlu1 %v2919_v28  ;;  %2923 = vadd.xlane.f32.xlu0 %v2922_v15 }
 0xdf6   :  { %v2903_v29 = vmul.f32 %v5229_v60, %v5229_v60 }
 0xdf8   :  { %v2925_v9 = vsel %vm73_vm0, %v2903_v29, 0.0 }
 0xdf9   :  { %2926 = vadd.xlane.f32.xlu1 %v2925_v9  ;;  %v4068_v9 = vld [vmem:[#allocation2 + $0x140] ss:$8 sps:$4 sm:$0xff]  }
 0xdfa   :  { %3963 = vmatprep.subr.bf16.mxu1 %v4068_v9 }
 0xdfb   :  { %3964 = vmatpush3.bf16.msra.mxu1 %v4068_v9 }
 0xdfc   :  { %3965 = vmatprep.subr.bf16.mxu1 %v4069_v52 }
 0xdff   :  { %3966 = vmatpush3.bf16.msra.mxu1 %v4069_v52 }
 0xe71   :  { %v2906_v7 = vpop.xlane.xlu0 %2905 }
 0xe72   :  { %v2928_v10 = vmul.f32 0.03125, %v2906_v7 }
 0xe74   :  { %v2936_v38 = vadd.f32 1e-05, %v2928_v10 }
 0xe75   :  { %v2909_v36 = vpop.xlane.xlu1 %2908  ;;  %v2912_v32 = vpop.xlane.xlu0 %2911 }
 0xe76   :  { %v2929_v17 = vmul.f32 0.03125, %v2909_v36  ;;  %v2930_v1 = vmul.f32 0.03125, %v2912_v32  ;;  %4231 = vrsqrt.f32 %v2936_v38 }
 0xe78   :  { %v2937_v47 = vadd.f32 1e-05, %v2929_v17  ;;  %v2938_v0 = vadd.f32 1e-05, %v2930_v1 }
 0xe79   :  { %v2915_v20 = vpop.xlane.xlu1 %2914 }
 0xe7a   :  { %4233 = vrsqrt.f32 %v2937_v47  ;;  %v2931_v41 = vmul.f32 0.03125, %v2915_v20  ;;  %v2918_v16 = vpop.xlane.xlu0 %2917 }
 0xe7b   :  { %v2932_v39 = vmul.f32 0.03125, %v2918_v16  ;;  %4235 = vrsqrt.f32 %v2938_v0 }
 0xe7c   :  { %v2939_v35 = vadd.f32 1e-05, %v2931_v41 }
 0xe7d   :  { %v2940_v12 = vadd.f32 1e-05, %v2932_v39 }
 0xe7e   :  { %4237 = vrsqrt.f32 %v2939_v35  ;;  %v2921_v33 = vpop.xlane.xlu1 %2920  ;;  %v2924_v51 = vpop.xlane.xlu0 %2923 }
 0xe7f   :  { %v2933_v24 = vmul.f32 0.03125, %v2921_v33  ;;  %v2934_v61 = vmul.f32 0.03125, %v2924_v51  ;;  %4239 = vrsqrt.f32 %v2940_v12 }
 0xe81   :  { %v2941_v6 = vadd.f32 1e-05, %v2933_v24  ;;  %v2942_v4 = vadd.f32 1e-05, %v2934_v61 }
 0xe82   :  { %v2927_v56 = vpop.xlane.xlu1 %2926 }
 0xe83   :  { %4241 = vrsqrt.f32 %v2941_v6  ;;  %v2935_v53 = vmul.f32 0.03125, %v2927_v56  ;;  %v4232_v14 = vpop.eup %4231 }
 0xe84   :  { %4243 = vrsqrt.f32 %v2942_v4  ;;  %v2952_v13 = vmul.f32 %v4232_v14, %v5189_v23  ;;  %v3494_v4 = vld [vmem:[#allocation4 + $0x28a] ss:$0 sm:$0xff] }
 0xe85   :  { %v2943_v46 = vadd.f32 1e-05, %v2935_v53 }
 0xe87   :  { %v4234_v11 = vpop.eup %4233  ;;  %4245 = vrsqrt.f32 %v2943_v46 }
 0xe88   :  { %v2953_v18 = vmul.f32 %v4234_v11, %v5194_v34  ;;  %v4236_v44 = vpop.eup %4235 }
 0xe89   :  { %v2954_v2 = vmul.f32 %v4236_v44, %v5197_v37 }
 0xe8a   :  { %v2960_v57 = vpack.c.bf16 %v2953_v18, %v2952_v13 }
 0xe8b   :  { %v4238_v48 = vpop.eup %4237 }
 0xe8c   :  { %v2955_v58 = vmul.f32 %v4238_v48, %v5205_v50  ;;  %3945 = vmatprep.mubr.msk.bf16.mxu0 %vm73_vm0, %v2960_v57  ;;  %v4240_v43 = vpop.eup %4239 }
 0xe8d   :  { %v2956_v3 = vmul.f32 %v4240_v43, %v5210_v19  ;;  %v4070_v19 = vld [vmem:[#allocation2 + $0x120] ss:$8 sps:$4 sm:$0xff]  }
 0xe8e   :  { %v2961_v22 = vpack.c.bf16 %v2955_v58, %v2954_v2  ;;  %3967 = vmatprep.subr.bf16.mxu1 %v4070_v19 }
 0xe8f   :  { %3968 = vmatpush3.bf16.msra.mxu1 %v4070_v19 }
 0xe90   :  { %v4242_v54 = vpop.eup %4241  ;;  %3946 = vmatmul.mubr.msk.bf16.vlgmr.msra.gmra.mxu0 %vm73_vm0, %v2961_v22 }
 0xe91   :  { %v2957_v23 = vmul.f32 %v4242_v54, %v5218_v59  ;;  %v4244_v28 = vpop.eup %4243 }
 0xe92   :  { %v2958_v37 = vmul.f32 %v4244_v28, %v5221_v42 }
 0xe93   :  { %v2962_v34 = vpack.c.bf16 %v2957_v23, %v2956_v3 }
 0xe94   :  { %v4246_v15 = vpop.eup %4245 }
 0xe95   :  { %3949 = vmatprep.mubr.msk.bf16.mxu0 %vm73_vm0, %v2962_v34  ;;  %v2959_v50 = vmul.f32 %v4246_v15, %v5229_v60 }
 0xe97   :  { %v2963_v29 = vpack.c.bf16 %v2959_v50, %v2958_v37 }
 0xe99   :  { %3950 = vmatmul.mubr.msk.bf16.gmra.mxu0 %vm73_vm0, %v2963_v29 }
 0xf50   :  { %v3947_v59 = vpop.f32.mrf.mxu0 }
 0xf51   :  { %v3035_v27 = vadd.f32 %v3947_v59, %v3487_v55 }
 0xf52   :  { %v3026_v8 = vpop.f32.mrf.mxu0 }
 0xf53   :  { %v3027_v26 = vadd.f32 %v3487_v55, %v3026_v8  ;;  %v3059_v32 = vmax.f32 %v3035_v27, 0.0 }
 0xf54   :  { %v3948_v5 = vpop.f32.mrf.mxu0 }
 0xf55   :  { %v3038_v42 = vadd.f32 %v3948_v5, %v3487_v55  ;;  %v3057_v10 = vmax.f32 %v3027_v26, 0.0 }
 0xf56   :  { %v3029_v60 = vpop.f32.mrf.mxu0 }
 0xf57   :  { %v3030_v25 = vadd.f32 %v3487_v55, %v3029_v60  ;;  %v3060_v7 = vmax.f32 %v3038_v42, 0.0 }
 0xf59   :  { %v3058_v38 = vmax.f32 %v3030_v25, 0.0  ;;  %v3951_v36 = vpop.f32.mrf.mxu0  ;;  %v3066_v47 = vpack.c.bf16 %v3060_v7, %v3059_v32 }
 0xf5a   :  { %v3051_v16 = vadd.f32 %v3951_v36, %v3487_v55 }
 0xf5b   :  { %v3065_v17 = vpack.c.bf16 %v3058_v38, %v3057_v10  ;;  %v3042_v1 = vpop.f32.mrf.mxu0 }
 0xf5c   :  { %v3043_v20 = vadd.f32 %v3487_v55, %v3042_v1  ;;  %v3063_v24 = vmax.f32 %v3051_v16, 0.0 }
 0xf5d   :  { %v3952_v0 = vpop.f32.mrf.mxu0  ;;  %3969 = vmatprep.mubr.bf16.mxu1 %v3065_v17 }
 0xf5e   :  { %v3054_v41 = vadd.f32 %v3952_v0, %v3487_v55  ;;  %3970 = vmatmul.mubr.bf16.vlgmr.msra.gmra.mxu1 %v3066_v47  ;;  %v3061_v33 = vmax.f32 %v3043_v20, 0.0 }
 0xf5f   :  { %v3045_v39 = vpop.f32.mrf.mxu0 }
 0xf60   :  { %v3046_v35 = vadd.f32 %v3487_v55, %v3045_v39  ;;  %v3064_v12 = vmax.f32 %v3054_v41, 0.0 }
 0xf62   :  { %v3062_v51 = vmax.f32 %v3046_v35, 0.0  ;;  %v3068_v6 = vpack.c.bf16 %v3064_v12, %v3063_v24 }
 0xf64   :  { %v3067_v61 = vpack.c.bf16 %v3062_v51, %v3061_v33 }
 0xf66   :  { %3973 = vmatprep.mubr.bf16.mxu1 %v3067_v61 }
 0xf67   :  { %3974 = vmatmul.mubr.bf16.gmra.mxu1 %v3068_v6 }
0x101e   :  { %v3971_v56 = vpop.f32.mrf.mxu1 }
0x101f   :  { %v3164_v53 = vadd.f32 %v3971_v56, %v3494_v4 }
0x1020   :  { %v3155_v14 = vpop.f32.mrf.mxu1 }
0x1021   :  { %v3188_v46 = vmul.f32 0.5, %v3164_v53  ;;  %v3156_v11 = vadd.f32 %v3494_v4, %v3155_v14 }
0x1022   :  { %v3972_v13 = vpop.f32.mrf.mxu1 }
0x1023   :  { %v3196_v18 = vadd.f32 %v3188_v46, %v5152_v63  ;;  %v3186_v44 = vmul.f32 0.5, %v3156_v11  ;;  %v3167_v57 = vadd.f32 %v3972_v13, %v3494_v4 }
0x1024   :  { %v3158_v48 = vpop.f32.mrf.mxu1 }
0x1025   :  { %v3194_v2 = vadd.f32 %v3186_v44, %v5149_v49  ;;  %v3189_v58 = vmul.f32 0.5, %v3167_v57  ;;  %v3159_v43 = vadd.f32 %v3494_v4, %v3158_v48  ;;  %v3208_v22 = vsel %vm73_vm0, %v3196_v18, 0.0 }
0x1026   :  { %3209 = vadd.xlane.f32.xlu0 %v3208_v22 }
0x1027   :  { %v3197_v54 = vadd.f32 %v3189_v58, %v5160_v31  ;;  %v3187_v3 = vmul.f32 0.5, %v3159_v43  ;;  %v3975_v23 = vpop.f32.mrf.mxu1  ;;  %v3202_v37 = vsel %vm73_vm0, %v3194_v2, 0.0 }
0x1028   :  { %v3180_v28 = vadd.f32 %v3975_v23, %v3494_v4 }
0x1029   :  { %v3195_v34 = vadd.f32 %v3187_v3, %v5157_v62  ;;  %v3171_v15 = vpop.f32.mrf.mxu1  ;;  %v3211_v63 = vsel %vm73_vm0, %v3197_v54, 0.0 }
0x102a   :  { %v3172_v50 = vadd.f32 %v3494_v4, %v3171_v15  ;;  %3212 = vadd.xlane.f32.xlu1 %v3211_v63  ;;  %3203 = vadd.xlane.f32.xlu0 %v3202_v37  ;;  %v3192_v29 = vmul.f32 0.5, %v3180_v28 }
0x102b   :  { %v3976_v49 = vpop.f32.mrf.mxu1  ;;  %v3205_v31 = vsel %vm73_vm0, %v3195_v34, 0.0 }
0x102c   :  { %v3190_v9 = vmul.f32 0.5, %v3172_v50  ;;  %v3183_v52 = vadd.f32 %v3976_v49, %v3494_v4  ;;  %v3200_v62 = vadd.f32 %v3192_v29, %v5172_v21 }
0x102d   :  { %v3174_v19 = vpop.f32.mrf.mxu1 }
0x102e   :  { %v3198_v59 = vadd.f32 %v3190_v9, %v5167_v45  ;;  %v3175_v8 = vadd.f32 %v3494_v4, %v3174_v19  ;;  %3206 = vadd.xlane.f32.xlu1 %v3205_v31  ;;  %v3193_v55 = vmul.f32 0.5, %v3183_v52  ;;  %v3220_v25 = vsel %vm73_vm0, %v3200_v62, 0.0 }
0x1030   :  { %v3191_v5 = vmul.f32 0.5, %v3175_v8  ;;  %v3214_v26 = vsel %vm73_vm0, %v3198_v59, 0.0  ;;  %v3201_v27 = vadd.f32 %v3193_v55, %v5180_v40 }
0x1031   :  { %3215 = vadd.xlane.f32.xlu0 %v3214_v26 }
0x1032   :  { %v3199_v42 = vadd.f32 %v3191_v5, %v5177_v30  ;;  %v3223_v45 = vsel %vm73_vm0, %v3201_v27, 0.0 }
0x1034   :  { %v3217_v60 = vsel %vm73_vm0, %v3199_v42, 0.0 }
0x1035   :  { %3218 = vadd.xlane.f32.xlu1 %v3217_v60  ;;  %3221 = vadd.xlane.f32.xlu0 %v3220_v25 }
0x1039   :  { %3224 = vadd.xlane.f32.xlu1 %v3223_v45 }
0x10af   :  { %v3210_v7 = vpop.xlane.xlu0 %3209 }
0x10b0   :  { %v3228_v21 = vmul.f32 0.03125, %v3210_v7 }
0x10b2   :  { %v5264_v10 = vsub.f32 %v3196_v18, %v3228_v21  ;;  %v3504_v21 = vld [vmem:[#allocation4 + $0x28c] ss:$0 sm:$0xff] }
0x10b3   :  { %v3213_v38 = vpop.xlane.xlu1 %3212  ;;  %v3204_v36 = vpop.xlane.xlu0 %3203 }
0x10b4   :  { %v3229_v32 = vmul.f32 0.03125, %v3213_v38  ;;  %v3226_v17 = vmul.f32 0.03125, %v3204_v36  ;;  %v3244_v30 = vmul.f32 %v5264_v10, %v5264_v10 }
0x10b6   :  { %v5268_v40 = vsub.f32 %v3197_v54, %v3229_v32  ;;  %v5270_v1 = vsub.f32 %v3194_v2, %v3226_v17  ;;  %v3256_v47 = vsel %vm73_vm0, %v3244_v30, 0.0 }
0x10b7   :  { %v3207_v0 = vpop.xlane.xlu1 %3206  ;;  %3257 = vadd.xlane.f32.xlu0 %v3256_v47 }
0x10b8   :  { %v3227_v20 = vmul.f32 0.03125, %v3207_v0  ;;  %v3245_v41 = vmul.f32 %v5268_v40, %v5268_v40  ;;  %v3242_v16 = vmul.f32 %v5270_v1, %v5270_v1 }
0x10ba   :  { %v5277_v39 = vsub.f32 %v3195_v34, %v3227_v20  ;;  %v3216_v35 = vpop.xlane.xlu0 %3215  ;;  %v3259_v12 = vsel %vm73_vm0, %v3245_v41, 0.0  ;;  %v3250_v33 = vsel %vm73_vm0, %v3242_v16, 0.0 }
0x10bb   :  { %v3230_v51 = vmul.f32 0.03125, %v3216_v35  ;;  %3260 = vadd.xlane.f32.xlu1 %v3259_v12  ;;  %3251 = vadd.xlane.f32.xlu0 %v3250_v33 }
0x10bc   :  { %v3243_v24 = vmul.f32 %v5277_v39, %v5277_v39 }
0x10bd   :  { %v5283_v61 = vsub.f32 %v3198_v59, %v3230_v51 }
0x10be   :  { %v3219_v6 = vpop.xlane.xlu1 %3218  ;;  %v3222_v4 = vpop.xlane.xlu0 %3221  ;;  %v3253_v56 = vsel %vm73_vm0, %v3243_v24, 0.0 }
0x10bf   :  { %v3231_v53 = vmul.f32 0.03125, %v3219_v6  ;;  %v3232_v14 = vmul.f32 0.03125, %v3222_v4  ;;  %3254 = vadd.xlane.f32.xlu1 %v3253_v56  ;;  %v3246_v46 = vmul.f32 %v5283_v61, %v5283_v61 }
0x10c1   :  { %v5288_v11 = vsub.f32 %v3199_v42, %v3231_v53  ;;  %v5290_v13 = vsub.f32 %v3200_v62, %v3232_v14  ;;  %v3262_v18 = vsel %vm73_vm0, %v3246_v46, 0.0 }
0x10c2   :  { %v3225_v44 = vpop.xlane.xlu1 %3224  ;;  %3263 = vadd.xlane.f32.xlu0 %v3262_v18 }
0x10c3   :  { %v3233_v57 = vmul.f32 0.03125, %v3225_v44  ;;  %v3247_v48 = vmul.f32 %v5288_v11, %v5288_v11  ;;  %v3248_v2 = vmul.f32 %v5290_v13, %v5290_v13 }
0x10c5   :  { %v5297_v58 = vsub.f32 %v3201_v27, %v3233_v57  ;;  %v3265_v43 = vsel %vm73_vm0, %v3247_v48, 0.0  ;;  %v3268_v22 = vsel %vm73_vm0, %v3248_v2, 0.0  ;;  %v3503_v27 = vld [vmem:[#allocation4 + $0x28b] ss:$0 sm:$0xff] }
0x10c6   :  { %3266 = vadd.xlane.f32.xlu1 %v3265_v43  ;;  %3269 = vadd.xlane.f32.xlu0 %v3268_v22 }
0x10c7   :  { %v3249_v54 = vmul.f32 %v5297_v58, %v5297_v58 }
0x10c9   :  { %v3271_v3 = vsel %vm73_vm0, %v3249_v54, 0.0 }
0x10ca   :  { %3272 = vadd.xlane.f32.xlu1 %v3271_v3 }
0x1140   :  { %v3258_v23 = vpop.xlane.xlu0 %3257 }
0x1141   :  { %v3276_v28 = vmul.f32 0.03125, %v3258_v23 }
0x1143   :  { %v3284_v34 = vadd.f32 1e-05, %v3276_v28 }
0x1144   :  { %v3261_v15 = vpop.xlane.xlu1 %3260  ;;  %v3252_v63 = vpop.xlane.xlu0 %3251 }
0x1145   :  { %4247 = vrsqrt.f32 %v3284_v34  ;;  %v3277_v37 = vmul.f32 0.03125, %v3261_v15  ;;  %v3274_v50 = vmul.f32 0.03125, %v3252_v63 }
0x1147   :  { %v3285_v49 = vadd.f32 1e-05, %v3277_v37  ;;  %v3282_v29 = vadd.f32 1e-05, %v3274_v50 }
0x1148   :  { %v3255_v9 = vpop.xlane.xlu1 %3254 }
0x1149   :  { %4249 = vrsqrt.f32 %v3285_v49  ;;  %v3275_v52 = vmul.f32 0.03125, %v3255_v9 }
0x114a   :  { %4251 = vrsqrt.f32 %v3282_v29 }
0x114b   :  { %v3283_v19 = vadd.f32 1e-05, %v3275_v52  ;;  %v3264_v31 = vpop.xlane.xlu0 %3263 }
0x114c   :  { %v3278_v59 = vmul.f32 0.03125, %v3264_v31 }
0x114d   :  { %4253 = vrsqrt.f32 %v3283_v19 }
0x114e   :  { %v3286_v8 = vadd.f32 1e-05, %v3278_v59 }
0x114f   :  { %v3267_v62 = vpop.xlane.xlu1 %3266  ;;  %v3270_v55 = vpop.xlane.xlu0 %3269 }
0x1150   :  { %4255 = vrsqrt.f32 %v3286_v8  ;;  %v3279_v5 = vmul.f32 0.03125, %v3267_v62  ;;  %v3280_v26 = vmul.f32 0.03125, %v3270_v55 }
0x1152   :  { %v4248_v42 = vpop.eup %4247  ;;  %v3287_v60 = vadd.f32 1e-05, %v3279_v5  ;;  %v3288_v25 = vadd.f32 1e-05, %v3280_v26 }
0x1153   :  { %v3300_v45 = vmul.f32 %v4248_v42, %v5264_v10  ;;  %v3273_v7 = vpop.xlane.xlu1 %3272 }
0x1154   :  { %4257 = vrsqrt.f32 %v3287_v60  ;;  %v3281_v38 = vmul.f32 0.03125, %v3273_v7 }
0x1155   :  { %v3313_v36 = vmul.f32 %v3503_v27, %v3300_v45  ;;  %4259 = vrsqrt.f32 %v3288_v25 }
0x1156   :  { %v4250_v32 = vpop.eup %4249  ;;  %v3289_v17 = vadd.f32 1e-05, %v3281_v38 }
0x1157   :  { %v4252_v30 = vpop.eup %4251  ;;  %v3326_v47 = vadd.f32 %v3504_v21, %v3313_v36  ;;  %v3301_v0 = vmul.f32 %v4250_v32, %v5268_v40 }
0x1158   :  { %v3298_v20 = vmul.f32 %v4252_v30, %v5270_v1  ;;  %4261 = vrsqrt.f32 %v3289_v17 }
0x1159   :  { %3334 = vst.msk [vmem:[%s5347_s3 + $0x10] sm:$0xff] %vm73_vm0, %v3326_v47  ;;  %v3314_v10 = vmul.f32 %v3503_v27, %v3301_v0 }
0x115a   :  { %v4254_v41 = vpop.eup %4253  ;;  %v3311_v16 = vmul.f32 %v3503_v27, %v3298_v20 }
0x115b   :  { %v3327_v35 = vadd.f32 %v3504_v21, %v3314_v10  ;;  %v3299_v12 = vmul.f32 %v4254_v41, %v5277_v39 }
0x115c   :  { %v3324_v33 = vadd.f32 %v3504_v21, %v3311_v16 }
0x115d   :  { %v4256_v51 = vpop.eup %4255  ;;  %3335 = vst.msk [vmem:[%s5347_s3 + $0x18] sm:$0xff] %vm73_vm0, %v3327_v35  ;;  %v3312_v40 = vmul.f32 %v3503_v27, %v3299_v12 }
0x115e   :  { %3332 = vst.msk [vmem:[%s5347_s3] sm:$0xff] %vm73_vm0, %v3324_v33  ;;  %v3302_v1 = vmul.f32 %v4256_v51, %v5283_v61 }
0x115f   :  { %v3325_v24 = vadd.f32 %v3504_v21, %v3312_v40 }
0x1160   :  { %v3315_v6 = vmul.f32 %v3503_v27, %v3302_v1 }
0x1161   :  { %v4258_v4 = vpop.eup %4257  ;;  %3333 = vst.msk [vmem:[%s5347_s3 + $0x8] sm:$0xff] %vm73_vm0, %v3325_v24 }
0x1162   :  { %v4260_v39 = vpop.eup %4259  ;;  %v3328_v56 = vadd.f32 %v3504_v21, %v3315_v6  ;;  %v3303_v53 = vmul.f32 %v4258_v4, %v5288_v11 }
0x1163   :  { %v3304_v14 = vmul.f32 %v4260_v39, %v5290_v13 }
0x1164   :  { %3336 = vst.msk [vmem:[%s5347_s3 + $0x20] sm:$0xff] %vm73_vm0, %v3328_v56  ;;  %v3316_v61 = vmul.f32 %v3503_v27, %v3303_v53 }
0x1165   :  { %v4262_v46 = vpop.eup %4261  ;;  %v3317_v18 = vmul.f32 %v3503_v27, %v3304_v14 }
0x1166   :  { %v3329_v44 = vadd.f32 %v3504_v21, %v3316_v61  ;;  %v3305_v57 = vmul.f32 %v4262_v46, %v5297_v58 }
0x1167   :  { %v3330_v48 = vadd.f32 %v3504_v21, %v3317_v18 }
0x1168   :  { %3337 = vst.msk [vmem:[%s5347_s3 + $0x28] sm:$0xff] %vm73_vm0, %v3329_v44  ;;  %v3318_v11 = vmul.f32 %v3503_v27, %v3305_v57 }
0x1169   :  { %3338 = vst.msk [vmem:[%s5347_s3 + $0x30] sm:$0xff] %vm73_vm0, %v3330_v48 }
0x116a   :  { %v3331_v13 = vadd.f32 %v3504_v21, %v3318_v11 }
0x116c   :  { %3339 = vst.msk [vmem:[%s5347_s3 + $0x38] sm:$0xff] %vm73_vm0, %v3331_v13 }
0x116d   :  { %3344 = vsyncpa [#allocation3], 1 }
0x116e   :  { %3345 = vsyncpa [#allocation5], 1 }

</bundles_post_ra>
